<compile_context>
chip_gen: v6e
topology: v6e:2x2x1
jax: 0.10.0
libtpu: 0.0.40
codegen_flags: <defaults>
</compile_context>

<pallas_src>
import math
from functools import partial

import jax
import jax.numpy as jnp
from jax.experimental import pallas as pl
from jax.experimental.pallas import tpu as pltpu

LANES = 128               # pad every kernel-output feature dim to this (lane-dense stores)
MXU_DTYPE = jnp.float32   # set to jnp.bfloat16 on v6e/v7x for throughput at larger batch


# ----------------------------------------------------------------------------
# Pallas kernels
# ----------------------------------------------------------------------------
def _conv_relu_kernel(p_ref, w_ref, b_ref, o_ref):
    acc = jnp.dot(p_ref[...].astype(MXU_DTYPE), w_ref[...].astype(MXU_DTYPE),
                  preferred_element_type=jnp.float32)
    o_ref[...] = jnp.maximum(acc + b_ref[...], 0.0)


def _conv_relu_pool_kernel(p_ref, w_ref, b_ref, o_ref, *, block_rows):
    acc = jnp.dot(p_ref[...].astype(MXU_DTYPE), w_ref[...].astype(MXU_DTYPE),
                  preferred_element_type=jnp.float32)
    y = jnp.maximum(acc + b_ref[...], 0.0)
    r = block_rows  # rows were pre-ordered (dh, dw, b, ph, pw): pool = max of 4 row blocks
    o_ref[...] = jnp.maximum(jnp.maximum(y[0:r], y[r:2 * r]),
                             jnp.maximum(y[2 * r:3 * r], y[3 * r:4 * r]))


def _conv_pool_fc_kernel(p_ref, w3_ref, b3_ref, wf1_ref, bf1_ref, wf2_ref, bf2_ref,
                         wf3_ref, bf3_ref, o_ref, *, batch, positions, channels):
    # conv3 + bias + relu; rows ordered (dh, dw, ph, pw, b)
    y = jnp.dot(p_ref[...].astype(MXU_DTYPE), w3_ref[...].astype(MXU_DTYPE),
                preferred_element_type=jnp.float32)
    y = jnp.maximum(y + b3_ref[...], 0.0)                       # (4*positions*batch, 128)

    # 2x2/2 maxpool = max over the 4 contiguous row blocks
    r = positions * batch
    pooled = jnp.maximum(jnp.maximum(y[0:r], y[r:2 * r]),
                         jnp.maximum(y[2 * r:3 * r], y[3 * r:4 * r]))   # (positions*batch, 128)

    # fc1 over the NCHW-flattened 400 features as a sum of per-spatial-position
    # (B,16)x(16,128) dots; the matching (p-major, c-minor) weight permutation
    # was applied once at pack time, so no in-kernel reshape/gather is needed.
    h = jnp.zeros((batch, wf1_ref.shape[1]), jnp.float32)
    for p in range(positions):
        blk = pooled[p * batch:(p + 1) * batch, 0:channels]
        h = h + jnp.dot(blk.astype(MXU_DTYPE),
                        wf1_ref[p * channels:(p + 1) * channels, :].astype(MXU_DTYPE),
                        preferred_element_type=jnp.float32)
    h = jnp.maximum(h + bf1_ref[...], 0.0)

    h = jnp.maximum(jnp.dot(h.astype(MXU_DTYPE), wf2_ref[...].astype(MXU_DTYPE),
                            preferred_element_type=jnp.float32) + bf2_ref[...], 0.0)
    # TODO(synk): nn.Dropout(p=0.5) is identity at inference; training-time RNG mask not reproduced.
    o_ref[...] = jnp.dot(h.astype(MXU_DTYPE), wf3_ref[...].astype(MXU_DTYPE),
                         preferred_element_type=jnp.float32) + bf3_ref[...]


# ----------------------------------------------------------------------------
# pallas_call wrappers (single full-array block, everything resident in VMEM)
# ----------------------------------------------------------------------------
def _full_spec(shape):
    return pl.BlockSpec(shape, lambda i: (0,) * len(shape))


def _call_single_block(kernel, out_shape, *operands):
    return pl.pallas_call(
        kernel,
        out_shape=jax.ShapeDtypeStruct(out_shape, jnp.float32),
        grid=(1,),
        in_specs=[_full_spec(op.shape) for op in operands],
        out_specs=_full_spec(out_shape),
        compiler_params=pltpu.CompilerParams(dimension_semantics=("arbitrary",)),
    )(*operands)


def conv_relu(patches, w, b):
    return _call_single_block(_conv_relu_kernel, (patches.shape[0], LANES), patches, w, b)


def conv_relu_pool(patches, w, b):
    m = patches.shape[0]
    return _call_single_block(partial(_conv_relu_pool_kernel, block_rows=m // 4),
                              (m // 4, LANES), patches, w, b)


def conv_pool_fc_head(patches, pk, batch):
    return _call_single_block(
        partial(_conv_pool_fc_kernel, batch=batch, positions=25, channels=16),
        (batch, LANES),
        patches, pk["c3_w"], pk["c3_b"], pk["f1_w"], pk["f1_b"],
        pk["f2_w"], pk["f2_b"], pk["f3_w"], pk["f3_b"])


# ----------------------------------------------------------------------------
# Glue (plain JAX): NHWC im2col + pool-friendly row ordering
# ----------------------------------------------------------------------------
def _im2col_nhwc(a, k):
    # a: (B, H, W, C) -> (B, OH, OW, C*k*k) with K ordered (c, di, dj), c-major.
    B, H, W, C = a.shape
    OH, OW = H - k + 1, W - k + 1
    wins = [a[:, di:di + OH, dj:dj + OW, :] for di in range(k) for dj in range(k)]
    p = jnp.stack(wins, axis=-1)                 # (B, OH, OW, C, k*k)
    return p.reshape(B, OH, OW, C * k * k)


def _pool_grouped_rows(p, batch_inner):
    """Order patch rows so a following 2x2/2 maxpool is a max over 4 contiguous row blocks.

    p: (B, 2*PH, 2*PW, K). Returns (4*B*PH*PW, K); rows ordered
    (dh, dw, ph, pw, b) if batch_inner else (dh, dw, b, ph, pw).
    """
    B, OH, OW, K = p.shape
    PH, PW = OH // 2, OW // 2
    q = p.reshape(B, PH, 2, PW, 2, K)
    perm = (2, 4, 1, 3, 0, 5) if batch_inner else (2, 4, 0, 1, 3, 5)
    return q.transpose(perm).reshape(4 * B * PH * PW, K)


# ----------------------------------------------------------------------------
# Parameters: PyTorch-style init + one-time packing (transpose/permute/pad)
# ----------------------------------------------------------------------------
def init_params(key):
    def uni(k, shape, fan_in):
        bound = 1.0 / math.sqrt(fan_in)
        return jax.random.uniform(k, shape, jnp.float32, -bound, bound)

    ks = jax.random.split(key, 12)
    return {
        "conv1_w": uni(ks[0], (6, 1, 3, 3), 1 * 3 * 3),
        "conv1_b": uni(ks[1], (6,), 1 * 3 * 3),
        "conv2_w": uni(ks[2], (6, 6, 3, 3), 6 * 3 * 3),
        "conv2_b": uni(ks[3], (6,), 6 * 3 * 3),
        "conv3_w": uni(ks[4], (16, 6, 3, 3), 6 * 3 * 3),
        "conv3_b": uni(ks[5], (16,), 6 * 3 * 3),
        "fc1_w": uni(ks[6], (120, 400), 400),
        "fc1_b": uni(ks[7], (120,), 400),
        "fc2_w": uni(ks[8], (48, 120), 120),
        "fc2_b": uni(ks[9], (48,), 120),
        "fc3_w": uni(ks[10], (24, 48), 48),
        "fc3_b": uni(ks[11], (24,), 48),
    }


def pack_params(p):
    """One-time packing: im2col weight layout, FC transposes, fc1 permutation, pad N->128."""
    def conv_pack(w, b):
        oc = w.shape[0]
        k = w.shape[1] * w.shape[2] * w.shape[3]
        wm = jnp.pad(w.reshape(oc, k).T, ((0, 0), (0, LANES - oc)))       # (K, 128)
        bm = jnp.pad(b, (0, LANES - oc)).reshape(1, LANES)
        return wm.astype(jnp.float32), bm.astype(jnp.float32)

    c1w, c1b = conv_pack(p["conv1_w"], p["conv1_b"])
    c2w, c2b = conv_pack(p["conv2_w"], p["conv2_b"])
    c3w, c3b = conv_pack(p["conv3_w"], p["conv3_b"])

    # fc1: PyTorch weight (120, 400) acts on the NCHW flatten k = c*25 + (ph*5 + pw).
    # The kernel contracts with (p-major, c-minor) pooled rows, so permute to (p, c) rows.
    f1 = p["fc1_w"].reshape(120, 16, 25).transpose(2, 1, 0).reshape(400, 120)
    f1w = jnp.pad(f1, ((0, 0), (0, LANES - 120))).astype(jnp.float32)     # (400, 128)
    f1b = jnp.pad(p["fc1_b"], (0, LANES - 120)).reshape(1, LANES).astype(jnp.float32)
    f2w = jnp.pad(p["fc2_w"].T, ((0, LANES - 120), (0, LANES - 48))).astype(jnp.float32)
    f2b = jnp.pad(p["fc2_b"], (0, LANES - 48)).reshape(1, LANES).astype(jnp.float32)
    f3w = jnp.pad(p["fc3_w"].T, ((0, LANES - 48), (0, LANES - 24))).astype(jnp.float32)
    f3b = jnp.pad(p["fc3_b"], (0, LANES - 24)).reshape(1, LANES).astype(jnp.float32)

    return {"c1_w": c1w, "c1_b": c1b, "c2_w": c2w, "c2_b": c2b, "c3_w": c3w, "c3_b": c3b,
            "f1_w": f1w, "f1_b": f1b, "f2_w": f2w, "f2_b": f2b, "f3_w": f3w, "f3_b": f3b}


# ----------------------------------------------------------------------------
# Forward pass (mirrors Net.forward)
# ----------------------------------------------------------------------------
def net_forward(packed, x):
    B = x.shape[0]
    a = x.transpose(0, 2, 3, 1)                                    # NCHW -> NHWC (boundary only)

    # conv1 + relu
    p1 = _im2col_nhwc(a, 3).reshape(B * 26 * 26, 9)
    y1 = conv_relu(p1, packed["c1_w"], packed["c1_b"])             # (B*676, 128)
    a = y1[:, :6].reshape(B, 26, 26, 6)

    # conv2 + relu + maxpool(2,2)  (pool fused into the kernel via row grouping)
    p2 = _pool_grouped_rows(_im2col_nhwc(a, 3), batch_inner=False)
    y2 = conv_relu_pool(p2, packed["c2_w"], packed["c2_b"])        # (B*144, 128), rows (b,ph,pw)
    a = y2[:, :6].reshape(B, 12, 12, 6)

    # conv3 + relu + maxpool(2,2) + view(-1,400) + fc1 + relu + fc2 + relu + [dropout] + fc3
    p3 = _pool_grouped_rows(_im2col_nhwc(a, 3), batch_inner=True)
    out = conv_pool_fc_head(p3, packed, B)                         # (B, 128) lane-dense
    return out[:, :24]


if __name__ == "__main__":
    key = jax.random.PRNGKey(0)
    pkey, xkey = jax.random.split(key)
    params = init_params(pkey)
    packed = pack_params(params)     # one-time weight packing (kept out of the forward)
    # Input spatial size 28x28 is implied by x.view(-1, 16*5*5) after the conv/pool chain.
    x = jax.random.normal(xkey, (2, 1, 28, 28), dtype=jnp.float32)
    out = jax.jit(net_forward)(packed, x)
    out = jax.block_until_ready(out)
    assert out.shape == (2, 24), out.shape
    print("KERNEL_OK")
</pallas_src>

<mosaic_0001>
module attributes {stable_mosaic.version = 11 : i64} {
  func.func @_conv_relu_kernel(%arg0: i32, %arg1: memref<1352x9xf32, #tpu.memory_space<vmem>>, %arg2: memref<9x128xf32, #tpu.memory_space<vmem>>, %arg3: memref<1x128xf32, #tpu.memory_space<vmem>>, %arg4: memref<1352x128xf32, #tpu.memory_space<vmem>>) attributes {dimension_semantics = [#tpu.dimension_semantics<arbitrary>], iteration_bounds = array<i64: 1>, scalar_prefetch = 0 : i64, scratch_operands = 0 : i64, tpu.core_type = #tpu.core_type<tc>, window_params = [{pipeline_mode = #tpu.pipeline_mode<synchronous>, transform_indices = @transform_0, window_bounds = array<i64: 1352, 9>}, {pipeline_mode = #tpu.pipeline_mode<synchronous>, transform_indices = @transform_1, window_bounds = array<i64: 9, 128>}, {pipeline_mode = #tpu.pipeline_mode<synchronous>, transform_indices = @transform_2, window_bounds = array<i64: 1, 128>}, {pipeline_mode = #tpu.pipeline_mode<synchronous>, transform_indices = @transform_3, window_bounds = array<i64: 1352, 128>}]} {
    %c0 = arith.constant 0 : index
    %c0_0 = arith.constant 0 : index
    %0 = vector.load %arg1[%c0, %c0_0] : memref<1352x9xf32, #tpu.memory_space<vmem>>, vector<1352x9xf32>
    %c0_1 = arith.constant 0 : index
    %c0_2 = arith.constant 0 : index
    %1 = vector.load %arg2[%c0_1, %c0_2] : memref<9x128xf32, #tpu.memory_space<vmem>>, vector<9x128xf32>
    %cst = arith.constant dense<0.000000e+00> : vector<1352x128xf32>
    %2 = tpu.matmul %0, %1, %cst {dimension_numbers = #tpu.dot_dimension_numbers<[1], [0], [0], [1], [0, 0, 1, 1], [], []>} : vector<1352x9xf32>, vector<9x128xf32>, vector<1352x128xf32> -> vector<1352x128xf32>
    %c0_3 = arith.constant 0 : index
    %c0_4 = arith.constant 0 : index
    %3 = vector.load %arg3[%c0_3, %c0_4] : memref<1x128xf32, #tpu.memory_space<vmem>>, vector<1x128xf32>
    %4 = vector.broadcast %3 : vector<1x128xf32> to vector<1352x128xf32>
    %5 = arith.addf %2, %4 : vector<1352x128xf32>
    %cst_5 = arith.constant 0.000000e+00 : f32
    %6 = vector.broadcast %cst_5 : f32 to vector<1352x128xf32>
    %7 = arith.maximumf %5, %6 : vector<1352x128xf32>
    %c0_6 = arith.constant 0 : index
    %c0_7 = arith.constant 0 : index
    %8 = vector.load %arg4[%c0_6, %c0_7] : memref<1352x128xf32, #tpu.memory_space<vmem>>, vector<1352x128xf32>
    tpu.vector_store %arg4[%c0_6, %c0_7], %7 {strides = array<i32>} : memref<1352x128xf32, #tpu.memory_space<vmem>>, vector<1352x128xf32>,
    return
  }
  func.func @transform_0(%arg0: i32) -> (i32, i32) {
    %c0_i32 = arith.constant 0 : i32
    %c0_i32_0 = arith.constant 0 : i32
    %c0_i32_1 = arith.constant 0 : i32
    return %c0_i32, %c0_i32_0 : i32, i32
  }
  func.func @transform_1(%arg0: i32) -> (i32, i32) {
    %c0_i32 = arith.constant 0 : i32
    %c0_i32_0 = arith.constant 0 : i32
    %c0_i32_1 = arith.constant 0 : i32
    return %c0_i32, %c0_i32_0 : i32, i32
  }
  func.func @transform_2(%arg0: i32) -> (i32, i32) {
    %c0_i32 = arith.constant 0 : i32
    %c0_i32_0 = arith.constant 0 : i32
    %c0_i32_1 = arith.constant 0 : i32
    return %c0_i32, %c0_i32_0 : i32, i32
  }
  func.func @transform_3(%arg0: i32) -> (i32, i32) {
    %c0_i32 = arith.constant 0 : i32
    %c0_i32_0 = arith.constant 0 : i32
    %c0_i32_1 = arith.constant 0 : i32
    return %c0_i32, %c0_i32_0 : i32, i32
  }
}

module attributes {stable_mosaic.version = 11 : i64} {
  func.func @_conv_relu_pool_kernel(%arg0: i32, %arg1: memref<1152x54xf32, #tpu.memory_space<vmem>>, %arg2: memref<54x128xf32, #tpu.memory_space<vmem>>, %arg3: memref<1x128xf32, #tpu.memory_space<vmem>>, %arg4: memref<288x128xf32, #tpu.memory_space<vmem>>) attributes {dimension_semantics = [#tpu.dimension_semantics<arbitrary>], iteration_bounds = array<i64: 1>, scalar_prefetch = 0 : i64, scratch_operands = 0 : i64, tpu.core_type = #tpu.core_type<tc>, window_params = [{pipeline_mode = #tpu.pipeline_mode<synchronous>, transform_indices = @transform_0, window_bounds = array<i64: 1152, 54>}, {pipeline_mode = #tpu.pipeline_mode<synchronous>, transform_indices = @transform_1, window_bounds = array<i64: 54, 128>}, {pipeline_mode = #tpu.pipeline_mode<synchronous>, transform_indices = @transform_2, window_bounds = array<i64: 1, 128>}, {pipeline_mode = #tpu.pipeline_mode<synchronous>, transform_indices = @transform_3, window_bounds = array<i64: 288, 128>}]} {
    %c0 = arith.constant 0 : index
    %c0_0 = arith.constant 0 : index
    %0 = vector.load %arg1[%c0, %c0_0] : memref<1152x54xf32, #tpu.memory_space<vmem>>, vector<1152x54xf32>
    %c0_1 = arith.constant 0 : index
    %c0_2 = arith.constant 0 : index
    %1 = vector.load %arg2[%c0_1, %c0_2] : memref<54x128xf32, #tpu.memory_space<vmem>>, vector<54x128xf32>
    %cst = arith.constant dense<0.000000e+00> : vector<1152x128xf32>
    %2 = tpu.matmul %0, %1, %cst {dimension_numbers = #tpu.dot_dimension_numbers<[1], [0], [0], [1], [0, 0, 1, 1], [], []>} : vector<1152x54xf32>, vector<54x128xf32>, vector<1152x128xf32> -> vector<1152x128xf32>
    %c0_3 = arith.constant 0 : index
    %c0_4 = arith.constant 0 : index
    %3 = vector.load %arg3[%c0_3, %c0_4] : memref<1x128xf32, #tpu.memory_space<vmem>>, vector<1x128xf32>
    %4 = vector.broadcast %3 : vector<1x128xf32> to vector<1152x128xf32>
    %5 = arith.addf %2, %4 : vector<1152x128xf32>
    %cst_5 = arith.constant 0.000000e+00 : f32
    %6 = vector.broadcast %cst_5 : f32 to vector<1152x128xf32>
    %7 = arith.maximumf %5, %6 : vector<1152x128xf32>
    %8 = vector.extract_strided_slice %7 {offsets = [0, 0], sizes = [288, 128], strides = [1, 1]} : vector<1152x128xf32> to vector<288x128xf32>
    %9 = vector.extract_strided_slice %7 {offsets = [288, 0], sizes = [288, 128], strides = [1, 1]} : vector<1152x128xf32> to vector<288x128xf32>
    %10 = arith.maximumf %8, %9 : vector<288x128xf32>
    %11 = vector.extract_strided_slice %7 {offsets = [576, 0], sizes = [288, 128], strides = [1, 1]} : vector<1152x128xf32> to vector<288x128xf32>
    %12 = vector.extract_strided_slice %7 {offsets = [864, 0], sizes = [288, 128], strides = [1, 1]} : vector<1152x128xf32> to vector<288x128xf32>
    %13 = arith.maximumf %11, %12 : vector<288x128xf32>
    %14 = arith.maximumf %10, %13 : vector<288x128xf32>
    %c0_6 = arith.constant 0 : index
    %c0_7 = arith.constant 0 : index
    %15 = vector.load %arg4[%c0_6, %c0_7] : memref<288x128xf32, #tpu.memory_space<vmem>>, vector<288x128xf32>
    tpu.vector_store %arg4[%c0_6, %c0_7], %14 {strides = array<i32>} : memref<288x128xf32, #tpu.memory_space<vmem>>, vector<288x128xf32>,
    return
  }
  func.func @transform_0(%arg0: i32) -> (i32, i32) {
    %c0_i32 = arith.constant 0 : i32
    %c0_i32_0 = arith.constant 0 : i32
    %c0_i32_1 = arith.constant 0 : i32
    return %c0_i32, %c0_i32_0 : i32, i32
  }
  func.func @transform_1(%arg0: i32) -> (i32, i32) {
    %c0_i32 = arith.constant 0 : i32
    %c0_i32_0 = arith.constant 0 : i32
    %c0_i32_1 = arith.constant 0 : i32
    return %c0_i32, %c0_i32_0 : i32, i32
  }
  func.func @transform_2(%arg0: i32) -> (i32, i32) {
    %c0_i32 = arith.constant 0 : i32
    %c0_i32_0 = arith.constant 0 : i32
    %c0_i32_1 = arith.constant 0 : i32
    return %c0_i32, %c0_i32_0 : i32, i32
  }
  func.func @transform_3(%arg0: i32) -> (i32, i32) {
    %c0_i32 = arith.constant 0 : i32
    %c0_i32_0 = arith.constant 0 : i32
    %c0_i32_1 = arith.constant 0 : i32
    return %c0_i32, %c0_i32_0 : i32, i32
  }
}

module attributes {stable_mosaic.version = 11 : i64} {
  func.func @_conv_pool_fc_kernel(%arg0: i32, %arg1: memref<200x54xf32, #tpu.memory_space<vmem>>, %arg2: memref<54x128xf32, #tpu.memory_space<vmem>>, %arg3: memref<1x128xf32, #tpu.memory_space<vmem>>, %arg4: memref<400x128xf32, #tpu.memory_space<vmem>>, %arg5: memref<1x128xf32, #tpu.memory_space<vmem>>, %arg6: memref<128x128xf32, #tpu.memory_space<vmem>>, %arg7: memref<1x128xf32, #tpu.memory_space<vmem>>, %arg8: memref<128x128xf32, #tpu.memory_space<vmem>>, %arg9: memref<1x128xf32, #tpu.memory_space<vmem>>, %arg10: memref<2x128xf32, #tpu.memory_space<vmem>>) attributes {dimension_semantics = [#tpu.dimension_semantics<arbitrary>], iteration_bounds = array<i64: 1>, scalar_prefetch = 0 : i64, scratch_operands = 0 : i64, tpu.core_type = #tpu.core_type<tc>, window_params = [{pipeline_mode = #tpu.pipeline_mode<synchronous>, transform_indices = @transform_0, window_bounds = array<i64: 200, 54>}, {pipeline_mode = #tpu.pipeline_mode<synchronous>, transform_indices = @transform_1, window_bounds = array<i64: 54, 128>}, {pipeline_mode = #tpu.pipeline_mode<synchronous>, transform_indices = @transform_2, window_bounds = array<i64: 1, 128>}, {pipeline_mode = #tpu.pipeline_mode<synchronous>, transform_indices = @transform_3, window_bounds = array<i64: 400, 128>}, {pipeline_mode = #tpu.pipeline_mode<synchronous>, transform_indices = @transform_4, window_bounds = array<i64: 1, 128>}, {pipeline_mode = #tpu.pipeline_mode<synchronous>, transform_indices = @transform_5, window_bounds = array<i64: 128, 128>}, {pipeline_mode = #tpu.pipeline_mode<synchronous>, transform_indices = @transform_6, window_bounds = array<i64: 1, 128>}, {pipeline_mode = #tpu.pipeline_mode<synchronous>, transform_indices = @transform_7, window_bounds = array<i64: 128, 128>}, {pipeline_mode = #tpu.pipeline_mode<synchronous>, transform_indices = @transform_8, window_bounds = array<i64: 1, 128>}, {pipeline_mode = #tpu.pipeline_mode<synchronous>, transform_indices = @transform_9, window_bounds = array<i64: 2, 128>}]} {
    %c0 = arith.constant 0 : index
    %c0_0 = arith.constant 0 : index
    %0 = vector.load %arg1[%c0, %c0_0] : memref<200x54xf32, #tpu.memory_space<vmem>>, vector<200x54xf32>
    %c0_1 = arith.constant 0 : index
    %c0_2 = arith.constant 0 : index
    %1 = vector.load %arg2[%c0_1, %c0_2] : memref<54x128xf32, #tpu.memory_space<vmem>>, vector<54x128xf32>
    %cst = arith.constant dense<0.000000e+00> : vector<200x128xf32>
    %2 = tpu.matmul %0, %1, %cst {dimension_numbers = #tpu.dot_dimension_numbers<[1], [0], [0], [1], [0, 0, 1, 1], [], []>} : vector<200x54xf32>, vector<54x128xf32>, vector<200x128xf32> -> vector<200x128xf32>
    %c0_3 = arith.constant 0 : index
    %c0_4 = arith.constant 0 : index
    %3 = vector.load %arg3[%c0_3, %c0_4] : memref<1x128xf32, #tpu.memory_space<vmem>>, vector<1x128xf32>
    %4 = vector.broadcast %3 : vector<1x128xf32> to vector<200x128xf32>
    %5 = arith.addf %2, %4 : vector<200x128xf32>
    %cst_5 = arith.constant 0.000000e+00 : f32
    %6 = vector.broadcast %cst_5 : f32 to vector<200x128xf32>
    %7 = arith.maximumf %5, %6 : vector<200x128xf32>
    %8 = vector.extract_strided_slice %7 {offsets = [0, 0], sizes = [50, 128], strides = [1, 1]} : vector<200x128xf32> to vector<50x128xf32>
    %9 = vector.extract_strided_slice %7 {offsets = [50, 0], sizes = [50, 128], strides = [1, 1]} : vector<200x128xf32> to vector<50x128xf32>
    %10 = arith.maximumf %8, %9 : vector<50x128xf32>
    %11 = vector.extract_strided_slice %7 {offsets = [100, 0], sizes = [50, 128], strides = [1, 1]} : vector<200x128xf32> to vector<50x128xf32>
    %12 = vector.extract_strided_slice %7 {offsets = [150, 0], sizes = [50, 128], strides = [1, 1]} : vector<200x128xf32> to vector<50x128xf32>
    %13 = arith.maximumf %11, %12 : vector<50x128xf32>
    %14 = arith.maximumf %10, %13 : vector<50x128xf32>
    %cst_6 = arith.constant 0.000000e+00 : f32
    %15 = vector.broadcast %cst_6 : f32 to vector<2x128xf32>
    %16 = vector.extract_strided_slice %14 {offsets = [0, 0], sizes = [2, 16], strides = [1, 1]} : vector<50x128xf32> to vector<2x16xf32>
    %c0_7 = arith.constant 0 : index
    %c0_8 = arith.constant 0 : index
    %17 = vector.load %arg4[%c0_7, %c0_8] : memref<400x128xf32, #tpu.memory_space<vmem>>, vector<16x128xf32>
    %cst_9 = arith.constant dense<0.000000e+00> : vector<2x128xf32>
    %18 = tpu.matmul %16, %17, %cst_9 {dimension_numbers = #tpu.dot_dimension_numbers<[1], [0], [0], [1], [0, 0, 1, 1], [], []>} : vector<2x16xf32>, vector<16x128xf32>, vector<2x128xf32> -> vector<2x128xf32>
    %19 = arith.addf %15, %18 : vector<2x128xf32>
    %20 = vector.extract_strided_slice %14 {offsets = [2, 0], sizes = [2, 16], strides = [1, 1]} : vector<50x128xf32> to vector<2x16xf32>
    %c16 = arith.constant 16 : index
    %c0_10 = arith.constant 0 : index
    %21 = vector.load %arg4[%c16, %c0_10] : memref<400x128xf32, #tpu.memory_space<vmem>>, vector<16x128xf32>
    %cst_11 = arith.constant dense<0.000000e+00> : vector<2x128xf32>
    %22 = tpu.matmul %20, %21, %cst_11 {dimension_numbers = #tpu.dot_dimension_numbers<[1], [0], [0], [1], [0, 0, 1, 1], [], []>} : vector<2x16xf32>, vector<16x128xf32>, vector<2x128xf32> -> vector<2x128xf32>
    %23 = arith.addf %19, %22 : vector<2x128xf32>
    %24 = vector.extract_strided_slice %14 {offsets = [4, 0], sizes = [2, 16], strides = [1, 1]} : vector<50x128xf32> to vector<2x16xf32>
    %c32 = arith.constant 32 : index
    %c0_12 = arith.constant 0 : index
    %25 = vector.load %arg4[%c32, %c0_12] : memref<400x128xf32, #tpu.memory_space<vmem>>, vector<16x128xf32>
    %cst_13 = arith.constant dense<0.000000e+00> : vector<2x128xf32>
    %26 = tpu.matmul %24, %25, %cst_13 {dimension_numbers = #tpu.dot_dimension_numbers<[1], [0], [0], [1], [0, 0, 1, 1], [], []>} : vector<2x16xf32>, vector<16x128xf32>, vector<2x128xf32> -> vector<2x128xf32>
    %27 = arith.addf %23, %26 : vector<2x128xf32>
    %28 = vector.extract_strided_slice %14 {offsets = [6, 0], sizes = [2, 16], strides = [1, 1]} : vector<50x128xf32> to vector<2x16xf32>
    %c48 = arith.constant 48 : index
    %c0_14 = arith.constant 0 : index
    %29 = vector.load %arg4[%c48, %c0_14] : memref<400x128xf32, #tpu.memory_space<vmem>>, vector<16x128xf32>
    %cst_15 = arith.constant dense<0.000000e+00> : vector<2x128xf32>
    %30 = tpu.matmul %28, %29, %cst_15 {dimension_numbers = #tpu.dot_dimension_numbers<[1], [0], [0], [1], [0, 0, 1, 1], [], []>} : vector<2x16xf32>, vector<16x128xf32>, vector<2x128xf32> -> vector<2x128xf32>
    %31 = arith.addf %27, %30 : vector<2x128xf32>
    %32 = vector.extract_strided_slice %14 {offsets = [8, 0], sizes = [2, 16], strides = [1, 1]} : vector<50x128xf32> to vector<2x16xf32>
    %c64 = arith.constant 64 : index
    %c0_16 = arith.constant 0 : index
    %33 = vector.load %arg4[%c64, %c0_16] : memref<400x128xf32, #tpu.memory_space<vmem>>, vector<16x128xf32>
    %cst_17 = arith.constant dense<0.000000e+00> : vector<2x128xf32>
    %34 = tpu.matmul %32, %33, %cst_17 {dimension_numbers = #tpu.dot_dimension_numbers<[1], [0], [0], [1], [0, 0, 1, 1], [], []>} : vector<2x16xf32>, vector<16x128xf32>, vector<2x128xf32> -> vector<2x128xf32>
    %35 = arith.addf %31, %34 : vector<2x128xf32>
    %36 = vector.extract_strided_slice %14 {offsets = [10, 0], sizes = [2, 16], strides = [1, 1]} : vector<50x128xf32> to vector<2x16xf32>
    %c80 = arith.constant 80 : index
    %c0_18 = arith.constant 0 : index
    %37 = vector.load %arg4[%c80, %c0_18] : memref<400x128xf32, #tpu.memory_space<vmem>>, vector<16x128xf32>
    %cst_19 = arith.constant dense<0.000000e+00> : vector<2x128xf32>
    %38 = tpu.matmul %36, %37, %cst_19 {dimension_numbers = #tpu.dot_dimension_numbers<[1], [0], [0], [1], [0, 0, 1, 1], [], []>} : vector<2x16xf32>, vector<16x128xf32>, vector<2x128xf32> -> vector<2x128xf32>
    %39 = arith.addf %35, %38 : vector<2x128xf32>
    %40 = vector.extract_strided_slice %14 {offsets = [12, 0], sizes = [2, 16], strides = [1, 1]} : vector<50x128xf32> to vector<2x16xf32>
    %c96 = arith.constant 96 : index
    %c0_20 = arith.constant 0 : index
    %41 = vector.load %arg4[%c96, %c0_20] : memref<400x128xf32, #tpu.memory_space<vmem>>, vector<16x128xf32>
    %cst_21 = arith.constant dense<0.000000e+00> : vector<2x128xf32>
    %42 = tpu.matmul %40, %41, %cst_21 {dimension_numbers = #tpu.dot_dimension_numbers<[1], [0], [0], [1], [0, 0, 1, 1], [], []>} : vector<2x16xf32>, vector<16x128xf32>, vector<2x128xf32> -> vector<2x128xf32>
    %43 = arith.addf %39, %42 : vector<2x128xf32>
    %44 = vector.extract_strided_slice %14 {offsets = [14, 0], sizes = [2, 16], strides = [1, 1]} : vector<50x128xf32> to vector<2x16xf32>
    %c112 = arith.constant 112 : index
    %c0_22 = arith.constant 0 : index
    %45 = vector.load %arg4[%c112, %c0_22] : memref<400x128xf32, #tpu.memory_space<vmem>>, vector<16x128xf32>
    %cst_23 = arith.constant dense<0.000000e+00> : vector<2x128xf32>
    %46 = tpu.matmul %44, %45, %cst_23 {dimension_numbers = #tpu.dot_dimension_numbers<[1], [0], [0], [1], [0, 0, 1, 1], [], []>} : vector<2x16xf32>, vector<16x128xf32>, vector<2x128xf32> -> vector<2x128xf32>
    %47 = arith.addf %43, %46 : vector<2x128xf32>
    %48 = vector.extract_strided_slice %14 {offsets = [16, 0], sizes = [2, 16], strides = [1, 1]} : vector<50x128xf32> to vector<2x16xf32>
    %c128 = arith.constant 128 : index
    %c0_24 = arith.constant 0 : index
    %49 = vector.load %arg4[%c128, %c0_24] : memref<400x128xf32, #tpu.memory_space<vmem>>, vector<16x128xf32>
    %cst_25 = arith.constant dense<0.000000e+00> : vector<2x128xf32>
    %50 = tpu.matmul %48, %49, %cst_25 {dimension_numbers = #tpu.dot_dimension_numbers<[1], [0], [0], [1], [0, 0, 1, 1], [], []>} : vector<2x16xf32>, vector<16x128xf32>, vector<2x128xf32> -> vector<2x128xf32>
    %51 = arith.addf %47, %50 : vector<2x128xf32>
    %52 = vector.extract_strided_slice %14 {offsets = [18, 0], sizes = [2, 16], strides = [1, 1]} : vector<50x128xf32> to vector<2x16xf32>
    %c144 = arith.constant 144 : index
    %c0_26 = arith.constant 0 : index
    %53 = vector.load %arg4[%c144, %c0_26] : memref<400x128xf32, #tpu.memory_space<vmem>>, vector<16x128xf32>
    %cst_27 = arith.constant dense<0.000000e+00> : vector<2x128xf32>
    %54 = tpu.matmul %52, %53, %cst_27 {dimension_numbers = #tpu.dot_dimension_numbers<[1], [0], [0], [1], [0, 0, 1, 1], [], []>} : vector<2x16xf32>, vector<16x128xf32>, vector<2x128xf32> -> vector<2x128xf32>
    %55 = arith.addf %51, %54 : vector<2x128xf32>
    %56 = vector.extract_strided_slice %14 {offsets = [20, 0], sizes = [2, 16], strides = [1, 1]} : vector<50x128xf32> to vector<2x16xf32>
    %c160 = arith.constant 160 : index
    %c0_28 = arith.constant 0 : index
    %57 = vector.load %arg4[%c160, %c0_28] : memref<400x128xf32, #tpu.memory_space<vmem>>, vector<16x128xf32>
    %cst_29 = arith.constant dense<0.000000e+00> : vector<2x128xf32>
    %58 = tpu.matmul %56, %57, %cst_29 {dimension_numbers = #tpu.dot_dimension_numbers<[1], [0], [0], [1], [0, 0, 1, 1], [], []>} : vector<2x16xf32>, vector<16x128xf32>, vector<2x128xf32> -> vector<2x128xf32>
    %59 = arith.addf %55, %58 : vector<2x128xf32>
    %60 = vector.extract_strided_slice %14 {offsets = [22, 0], sizes = [2, 16], strides = [1, 1]} : vector<50x128xf32> to vector<2x16xf32>
    %c176 = arith.constant 176 : index
    %c0_30 = arith.constant 0 : index
    %61 = vector.load %arg4[%c176, %c0_30] : memref<400x128xf32, #tpu.memory_space<vmem>>, vector<16x128xf32>
    %cst_31 = arith.constant dense<0.000000e+00> : vector<2x128xf32>
    %62 = tpu.matmul %60, %61, %cst_31 {dimension_numbers = #tpu.dot_dimension_numbers<[1], [0], [0], [1], [0, 0, 1, 1], [], []>} : vector<2x16xf32>, vector<16x128xf32>, vector<2x128xf32> -> vector<2x128xf32>
    %63 = arith.addf %59, %62 : vector<2x128xf32>
    %64 = vector.extract_strided_slice %14 {offsets = [24, 0], sizes = [2, 16], strides = [1, 1]} : vector<50x128xf32> to vector<2x16xf32>
    %c192 = arith.constant 192 : index
    %c0_32 = arith.constant 0 : index
    %65 = vector.load %arg4[%c192, %c0_32] : memref<400x128xf32, #tpu.memory_space<vmem>>, vector<16x128xf32>
    %cst_33 = arith.constant dense<0.000000e+00> : vector<2x128xf32>
    %66 = tpu.matmul %64, %65, %cst_33 {dimension_numbers = #tpu.dot_dimension_numbers<[1], [0], [0], [1], [0, 0, 1, 1], [], []>} : vector<2x16xf32>, vector<16x128xf32>, vector<2x128xf32> -> vector<2x128xf32>
    %67 = arith.addf %63, %66 : vector<2x128xf32>
    %68 = vector.extract_strided_slice %14 {offsets = [26, 0], sizes = [2, 16], strides = [1, 1]} : vector<50x128xf32> to vector<2x16xf32>
    %c208 = arith.constant 208 : index
    %c0_34 = arith.constant 0 : index
    %69 = vector.load %arg4[%c208, %c0_34] : memref<400x128xf32, #tpu.memory_space<vmem>>, vector<16x128xf32>
    %cst_35 = arith.constant dense<0.000000e+00> : vector<2x128xf32>
    %70 = tpu.matmul %68, %69, %cst_35 {dimension_numbers = #tpu.dot_dimension_numbers<[1], [0], [0], [1], [0, 0, 1, 1], [], []>} : vector<2x16xf32>, vector<16x128xf32>, vector<2x128xf32> -> vector<2x128xf32>
    %71 = arith.addf %67, %70 : vector<2x128xf32>
    %72 = vector.extract_strided_slice %14 {offsets = [28, 0], sizes = [2, 16], strides = [1, 1]} : vector<50x128xf32> to vector<2x16xf32>
    %c224 = arith.constant 224 : index
    %c0_36 = arith.constant 0 : index
    %73 = vector.load %arg4[%c224, %c0_36] : memref<400x128xf32, #tpu.memory_space<vmem>>, vector<16x128xf32>
    %cst_37 = arith.constant dense<0.000000e+00> : vector<2x128xf32>
    %74 = tpu.matmul %72, %73, %cst_37 {dimension_numbers = #tpu.dot_dimension_numbers<[1], [0], [0], [1], [0, 0, 1, 1], [], []>} : vector<2x16xf32>, vector<16x128xf32>, vector<2x128xf32> -> vector<2x128xf32>
    %75 = arith.addf %71, %74 : vector<2x128xf32>
    %76 = vector.extract_strided_slice %14 {offsets = [30, 0], sizes = [2, 16], strides = [1, 1]} : vector<50x128xf32> to vector<2x16xf32>
    %c240 = arith.constant 240 : index
    %c0_38 = arith.constant 0 : index
    %77 = vector.load %arg4[%c240, %c0_38] : memref<400x128xf32, #tpu.memory_space<vmem>>, vector<16x128xf32>
    %cst_39 = arith.constant dense<0.000000e+00> : vector<2x128xf32>
    %78 = tpu.matmul %76, %77, %cst_39 {dimension_numbers = #tpu.dot_dimension_numbers<[1], [0], [0], [1], [0, 0, 1, 1], [], []>} : vector<2x16xf32>, vector<16x128xf32>, vector<2x128xf32> -> vector<2x128xf32>
    %79 = arith.addf %75, %78 : vector<2x128xf32>
    %80 = vector.extract_strided_slice %14 {offsets = [32, 0], sizes = [2, 16], strides = [1, 1]} : vector<50x128xf32> to vector<2x16xf32>
    %c256 = arith.constant 256 : index
    %c0_40 = arith.constant 0 : index
    %81 = vector.load %arg4[%c256, %c0_40] : memref<400x128xf32, #tpu.memory_space<vmem>>, vector<16x128xf32>
    %cst_41 = arith.constant dense<0.000000e+00> : vector<2x128xf32>
    %82 = tpu.matmul %80, %81, %cst_41 {dimension_numbers = #tpu.dot_dimension_numbers<[1], [0], [0], [1], [0, 0, 1, 1], [], []>} : vector<2x16xf32>, vector<16x128xf32>, vector<2x128xf32> -> vector<2x128xf32>
    %83 = arith.addf %79, %82 : vector<2x128xf32>
    %84 = vector.extract_strided_slice %14 {offsets = [34, 0], sizes = [2, 16], strides = [1, 1]} : vector<50x128xf32> to vector<2x16xf32>
    %c272 = arith.constant 272 : index
    %c0_42 = arith.constant 0 : index
    %85 = vector.load %arg4[%c272, %c0_42] : memref<400x128xf32, #tpu.memory_space<vmem>>, vector<16x128xf32>
    %cst_43 = arith.constant dense<0.000000e+00> : vector<2x128xf32>
    %86 = tpu.matmul %84, %85, %cst_43 {dimension_numbers = #tpu.dot_dimension_numbers<[1], [0], [0], [1], [0, 0, 1, 1], [], []>} : vector<2x16xf32>, vector<16x128xf32>, vector<2x128xf32> -> vector<2x128xf32>
    %87 = arith.addf %83, %86 : vector<2x128xf32>
    %88 = vector.extract_strided_slice %14 {offsets = [36, 0], sizes = [2, 16], strides = [1, 1]} : vector<50x128xf32> to vector<2x16xf32>
    %c288 = arith.constant 288 : index
    %c0_44 = arith.constant 0 : index
    %89 = vector.load %arg4[%c288, %c0_44] : memref<400x128xf32, #tpu.memory_space<vmem>>, vector<16x128xf32>
    %cst_45 = arith.constant dense<0.000000e+00> : vector<2x128xf32>
    %90 = tpu.matmul %88, %89, %cst_45 {dimension_numbers = #tpu.dot_dimension_numbers<[1], [0], [0], [1], [0, 0, 1, 1], [], []>} : vector<2x16xf32>, vector<16x128xf32>, vector<2x128xf32> -> vector<2x128xf32>
    %91 = arith.addf %87, %90 : vector<2x128xf32>
    %92 = vector.extract_strided_slice %14 {offsets = [38, 0], sizes = [2, 16], strides = [1, 1]} : vector<50x128xf32> to vector<2x16xf32>
    %c304 = arith.constant 304 : index
    %c0_46 = arith.constant 0 : index
    %93 = vector.load %arg4[%c304, %c0_46] : memref<400x128xf32, #tpu.memory_space<vmem>>, vector<16x128xf32>
    %cst_47 = arith.constant dense<0.000000e+00> : vector<2x128xf32>
    %94 = tpu.matmul %92, %93, %cst_47 {dimension_numbers = #tpu.dot_dimension_numbers<[1], [0], [0], [1], [0, 0, 1, 1], [], []>} : vector<2x16xf32>, vector<16x128xf32>, vector<2x128xf32> -> vector<2x128xf32>
    %95 = arith.addf %91, %94 : vector<2x128xf32>
    %96 = vector.extract_strided_slice %14 {offsets = [40, 0], sizes = [2, 16], strides = [1, 1]} : vector<50x128xf32> to vector<2x16xf32>
    %c320 = arith.constant 320 : index
    %c0_48 = arith.constant 0 : index
    %97 = vector.load %arg4[%c320, %c0_48] : memref<400x128xf32, #tpu.memory_space<vmem>>, vector<16x128xf32>
    %cst_49 = arith.constant dense<0.000000e+00> : vector<2x128xf32>
    %98 = tpu.matmul %96, %97, %cst_49 {dimension_numbers = #tpu.dot_dimension_numbers<[1], [0], [0], [1], [0, 0, 1, 1], [], []>} : vector<2x16xf32>, vector<16x128xf32>, vector<2x128xf32> -> vector<2x128xf32>
    %99 = arith.addf %95, %98 : vector<2x128xf32>
    %100 = vector.extract_strided_slice %14 {offsets = [42, 0], sizes = [2, 16], strides = [1, 1]} : vector<50x128xf32> to vector<2x16xf32>
    %c336 = arith.constant 336 : index
    %c0_50 = arith.constant 0 : index
    %101 = vector.load %arg4[%c336, %c0_50] : memref<400x128xf32, #tpu.memory_space<vmem>>, vector<16x128xf32>
    %cst_51 = arith.constant dense<0.000000e+00> : vector<2x128xf32>
    %102 = tpu.matmul %100, %101, %cst_51 {dimension_numbers = #tpu.dot_dimension_numbers<[1], [0], [0], [1], [0, 0, 1, 1], [], []>} : vector<2x16xf32>, vector<16x128xf32>, vector<2x128xf32> -> vector<2x128xf32>
    %103 = arith.addf %99, %102 : vector<2x128xf32>
    %104 = vector.extract_strided_slice %14 {offsets = [44, 0], sizes = [2, 16], strides = [1, 1]} : vector<50x128xf32> to vector<2x16xf32>
    %c352 = arith.constant 352 : index
    %c0_52 = arith.constant 0 : index
    %105 = vector.load %arg4[%c352, %c0_52] : memref<400x128xf32, #tpu.memory_space<vmem>>, vector<16x128xf32>
    %cst_53 = arith.constant dense<0.000000e+00> : vector<2x128xf32>
    %106 = tpu.matmul %104, %105, %cst_53 {dimension_numbers = #tpu.dot_dimension_numbers<[1], [0], [0], [1], [0, 0, 1, 1], [], []>} : vector<2x16xf32>, vector<16x128xf32>, vector<2x128xf32> -> vector<2x128xf32>
    %107 = arith.addf %103, %106 : vector<2x128xf32>
    %108 = vector.extract_strided_slice %14 {offsets = [46, 0], sizes = [2, 16], strides = [1, 1]} : vector<50x128xf32> to vector<2x16xf32>
    %c368 = arith.constant 368 : index
    %c0_54 = arith.constant 0 : index
    %109 = vector.load %arg4[%c368, %c0_54] : memref<400x128xf32, #tpu.memory_space<vmem>>, vector<16x128xf32>
    %cst_55 = arith.constant dense<0.000000e+00> : vector<2x128xf32>
    %110 = tpu.matmul %108, %109, %cst_55 {dimension_numbers = #tpu.dot_dimension_numbers<[1], [0], [0], [1], [0, 0, 1, 1], [], []>} : vector<2x16xf32>, vector<16x128xf32>, vector<2x128xf32> -> vector<2x128xf32>
    %111 = arith.addf %107, %110 : vector<2x128xf32>
    %112 = vector.extract_strided_slice %14 {offsets = [48, 0], sizes = [2, 16], strides = [1, 1]} : vector<50x128xf32> to vector<2x16xf32>
    %c384 = arith.constant 384 : index
    %c0_56 = arith.constant 0 : index
    %113 = vector.load %arg4[%c384, %c0_56] : memref<400x128xf32, #tpu.memory_space<vmem>>, vector<16x128xf32>
    %cst_57 = arith.constant dense<0.000000e+00> : vector<2x128xf32>
    %114 = tpu.matmul %112, %113, %cst_57 {dimension_numbers = #tpu.dot_dimension_numbers<[1], [0], [0], [1], [0, 0, 1, 1], [], []>} : vector<2x16xf32>, vector<16x128xf32>, vector<2x128xf32> -> vector<2x128xf32>
    %115 = arith.addf %111, %114 : vector<2x128xf32>
    %c0_58 = arith.constant 0 : index
    %c0_59 = arith.constant 0 : index
    %116 = vector.load %arg5[%c0_58, %c0_59] : memref<1x128xf32, #tpu.memory_space<vmem>>, vector<1x128xf32>
    %117 = vector.broadcast %116 : vector<1x128xf32> to vector<2x128xf32>
    %118 = arith.addf %115, %117 : vector<2x128xf32>
    %cst_60 = arith.constant 0.000000e+00 : f32
    %119 = vector.broadcast %cst_60 : f32 to vector<2x128xf32>
    %120 = arith.maximumf %118, %119 : vector<2x128xf32>
    %c0_61 = arith.constant 0 : index
    %c0_62 = arith.constant 0 : index
    %121 = vector.load %arg6[%c0_61, %c0_62] : memref<128x128xf32, #tpu.memory_space<vmem>>, vector<128x128xf32>
    %cst_63 = arith.constant dense<0.000000e+00> : vector<2x128xf32>
    %122 = tpu.matmul %120, %121, %cst_63 {dimension_numbers = #tpu.dot_dimension_numbers<[1], [0], [0], [1], [0, 0, 1, 1], [], []>} : vector<2x128xf32>, vector<128x128xf32>, vector<2x128xf32> -> vector<2x128xf32>
    %c0_64 = arith.constant 0 : index
    %c0_65 = arith.constant 0 : index
    %123 = vector.load %arg7[%c0_64, %c0_65] : memref<1x128xf32, #tpu.memory_space<vmem>>, vector<1x128xf32>
    %124 = vector.broadcast %123 : vector<1x128xf32> to vector<2x128xf32>
    %125 = arith.addf %122, %124 : vector<2x128xf32>
    %cst_66 = arith.constant 0.000000e+00 : f32
    %126 = vector.broadcast %cst_66 : f32 to vector<2x128xf32>
    %127 = arith.maximumf %125, %126 : vector<2x128xf32>
    %c0_67 = arith.constant 0 : index
    %c0_68 = arith.constant 0 : index
    %128 = vector.load %arg8[%c0_67, %c0_68] : memref<128x128xf32, #tpu.memory_space<vmem>>, vector<128x128xf32>
    %cst_69 = arith.constant dense<0.000000e+00> : vector<2x128xf32>
    %129 = tpu.matmul %127, %128, %cst_69 {dimension_numbers = #tpu.dot_dimension_numbers<[1], [0], [0], [1], [0, 0, 1, 1], [], []>} : vector<2x128xf32>, vector<128x128xf32>, vector<2x128xf32> -> vector<2x128xf32>
    %c0_70 = arith.constant 0 : index
    %c0_71 = arith.constant 0 : index
    %130 = vector.load %arg9[%c0_70, %c0_71] : memref<1x128xf32, #tpu.memory_space<vmem>>, vector<1x128xf32>
    %131 = vector.broadcast %130 : vector<1x128xf32> to vector<2x128xf32>
    %132 = arith.addf %129, %131 : vector<2x128xf32>
    %c0_72 = arith.constant 0 : index
    %c0_73 = arith.constant 0 : index
    %133 = vector.load %arg10[%c0_72, %c0_73] : memref<2x128xf32, #tpu.memory_space<vmem>>, vector<2x128xf32>
    tpu.vector_store %arg10[%c0_72, %c0_73], %132 {strides = array<i32>} : memref<2x128xf32, #tpu.memory_space<vmem>>, vector<2x128xf32>,
    return
  }
  func.func @transform_0(%arg0: i32) -> (i32, i32) {
    %c0_i32 = arith.constant 0 : i32
    %c0_i32_0 = arith.constant 0 : i32
    %c0_i32_1 = arith.constant 0 : i32
    return %c0_i32, %c0_i32_0 : i32, i32
  }
  func.func @transform_1(%arg0: i32) -> (i32, i32) {
    %c0_i32 = arith.constant 0 : i32
    %c0_i32_0 = arith.constant 0 : i32
    %c0_i32_1 = arith.constant 0 : i32
    return %c0_i32, %c0_i32_0 : i32, i32
  }
  func.func @transform_2(%arg0: i32) -> (i32, i32) {
    %c0_i32 = arith.constant 0 : i32
    %c0_i32_0 = arith.constant 0 : i32
    %c0_i32_1 = arith.constant 0 : i32
    return %c0_i32, %c0_i32_0 : i32, i32
  }
  func.func @transform_3(%arg0: i32) -> (i32, i32) {
    %c0_i32 = arith.constant 0 : i32
    %c0_i32_0 = arith.constant 0 : i32
    %c0_i32_1 = arith.constant 0 : i32
    return %c0_i32, %c0_i32_0 : i32, i32
  }
  func.func @transform_4(%arg0: i32) -> (i32, i32) {
    %c0_i32 = arith.constant 0 : i32
    %c0_i32_0 = arith.constant 0 : i32
    %c0_i32_1 = arith.constant 0 : i32
    return %c0_i32, %c0_i32_0 : i32, i32
  }
  func.func @transform_5(%arg0: i32) -> (i32, i32) {
    %c0_i32 = arith.constant 0 : i32
    %c0_i32_0 = arith.constant 0 : i32
    %c0_i32_1 = arith.constant 0 : i32
    return %c0_i32, %c0_i32_0 : i32, i32
  }
  func.func @transform_6(%arg0: i32) -> (i32, i32) {
    %c0_i32 = arith.constant 0 : i32
    %c0_i32_0 = arith.constant 0 : i32
    %c0_i32_1 = arith.constant 0 : i32
    return %c0_i32, %c0_i32_0 : i32, i32
  }
  func.func @transform_7(%arg0: i32) -> (i32, i32) {
    %c0_i32 = arith.constant 0 : i32
    %c0_i32_0 = arith.constant 0 : i32
    %c0_i32_1 = arith.constant 0 : i32
    return %c0_i32, %c0_i32_0 : i32, i32
  }
  func.func @transform_8(%arg0: i32) -> (i32, i32) {
    %c0_i32 = arith.constant 0 : i32
    %c0_i32_0 = arith.constant 0 : i32
    %c0_i32_1 = arith.constant 0 : i32
    return %c0_i32, %c0_i32_0 : i32, i32
  }
  func.func @transform_9(%arg0: i32) -> (i32, i32) {
    %c0_i32 = arith.constant 0 : i32
    %c0_i32_0 = arith.constant 0 : i32
    %c0_i32_1 = arith.constant 0 : i32
    return %c0_i32, %c0_i32_0 : i32, i32
  }
}

</mosaic_0001>

<bundles_post_ra>
// kernel: net_forward.3
= control target key start
LH: loop header
LB: loop body
LE: loop exit
PB: predicated region body
PF: predicated region fallthrough
CT: control target
= control target key end

     0   :  { %vm700_vm0 = vcmask 1040384   ;;  %v2817_v0 = vmov 0.0   ;;  %vm192_vm1 = vcmask 72704   ;;  %vm2818_vm2 = vmmov 0   ;;  %s4545_s1 = inlined_call_operand.vmem [shape: f32[9,128], index: 1, kind: input, shape index: {}]   ;;  %s4546_s0 = inlined_call_operand.vmem [shape: f32[1352,9], index: 0, kind: input, shape index: {}]   ;;  %s4547_s2 = inlined_call_operand.vmem [shape: f32[1,128], index: 2, kind: input, shape index: {}]   ;;  %s4548_s3 = inlined_call_operand.vmem [shape: f32[1352,128], index: 3, kind: output, shape index: {}]  }
   0x1   :  { %2298 = vmatprep.subr.mxu0 %v2817_v0  ;;  %v184_v1 = vld [vmem:[%s4545_s1 + $0x8] sm:$0x1]  ;;  %2809 = vmatprep.subr.mxu1 %v2817_v0  ;;  %v183_v2 = vld [vmem:[%s4545_s1] sm:$0xff]  ;;  %v100_v6 = vld [vmem:[%s4546_s0 + $0x2b0] sm:$0xff] }
   0x2   :  { %2299 = vmatpush3.msk.msra.mxu0 %vm700_vm0, %v184_v1  ;;  %2811 = vmatpush3.msk.msra.mxu1 %vm700_vm0, %v184_v1  ;;  %v14_v3 = vld [vmem:[%s4546_s0] sm:$0xff]  ;;  %v99_v4 = vld [vmem:[%s4546_s0 + $0x2a8] sm:$0xff]  ;;  %v16_v7 = vld [vmem:[%s4546_s0 + $0x10] sm:$0xff] }
   0x3   :  { %2300 = vmatprep.subr.mxu0 %v2817_v0  ;;  %2302 = vmatprep.mubr.msk.f32.mxu0 %vm2818_vm2, %v2817_v0  ;;  %v15_v5 = vld [vmem:[%s4546_s0 + $0x8] sm:$0xff]  ;;  %v101_v8 = vld [vmem:[%s4546_s0 + $0x2b8] sm:$0xff]  ;;  %v102_v10 = vld [vmem:[%s4546_s0 + $0x2c0] sm:$0xff] }
   0x4   :  { %2301 = vmatpush3.msra.mxu0 %v183_v2  ;;  %2810 = vmatprep.subr.mxu1 %v2817_v0  ;;  %v17_v9 = vld [vmem:[%s4546_s0 + $0x18] sm:$0xff]  ;;  %v18_v11 = vld [vmem:[%s4546_s0 + $0x20] sm:$0xff]  ;;  %v103_v12 = vld [vmem:[%s4546_s0 + $0x2c8] sm:$0xff] }
   0x5   :  { %2303 = vmatmul.mubr.msk.f32.vlgmr.msra.gmra.mxu0 %vm192_vm1, %v14_v3  ;;  %2812 = vmatpush3.msra.mxu1 %v183_v2  ;;  %v19_v13 = vld [vmem:[%s4546_s0 + $0x28] sm:$0xff]  ;;  %v104_v14 = vld [vmem:[%s4546_s0 + $0x2d0] sm:$0xff]  ;;  %v105_v16 = vld [vmem:[%s4546_s0 + $0x2d8] sm:$0xff] }
   0x6   :  { %2557 = vmatprep.mubr.msk.f32.mxu1 %vm2818_vm2, %v2817_v0  ;;  %2305 = vmatprep.mubr.msk.f32.mxu0 %vm2818_vm2, %v2817_v0  ;;  %v20_v15 = vld [vmem:[%s4546_s0 + $0x30] sm:$0xff]  ;;  %v21_v17 = vld [vmem:[%s4546_s0 + $0x38] sm:$0xff]  ;;  %v106_v18 = vld [vmem:[%s4546_s0 + $0x2e0] sm:$0xff] }
   0x7   :  { %2558 = vmatmul.mubr.msk.f32.vlgmr.msra.gmra.mxu1 %vm192_vm1, %v99_v4  ;;  %v22_v19 = vld [vmem:[%s4546_s0 + $0x40] sm:$0xff]  ;;  %v107_v20 = vld [vmem:[%s4546_s0 + $0x2e8] sm:$0xff]  ;;  %v108_v22 = vld [vmem:[%s4546_s0 + $0x2f0] sm:$0xff] }
   0x8   :  { %2560 = vmatprep.mubr.msk.f32.mxu1 %vm2818_vm2, %v2817_v0  ;;  %v23_v21 = vld [vmem:[%s4546_s0 + $0x48] sm:$0xff]  ;;  %v24_v23 = vld [vmem:[%s4546_s0 + $0x50] sm:$0xff]  ;;  %v109_v24 = vld [vmem:[%s4546_s0 + $0x2f8] sm:$0xff] }
   0x9   :  { %2306 = vmatmul.mubr.msk.f32.gmra.mxu0 %vm192_vm1, %v15_v5  ;;  %v25_v25 = vld [vmem:[%s4546_s0 + $0x58] sm:$0xff]  ;;  %v110_v26 = vld [vmem:[%s4546_s0 + $0x300] sm:$0xff]  ;;  %v111_v28 = vld [vmem:[%s4546_s0 + $0x308] sm:$0xff] }
   0xa   :  { %2308 = vmatprep.mubr.msk.f32.mxu0 %vm2818_vm2, %v2817_v0  ;;  %v26_v27 = vld [vmem:[%s4546_s0 + $0x60] sm:$0xff]  ;;  %v27_v29 = vld [vmem:[%s4546_s0 + $0x68] sm:$0xff]  ;;  %v112_v30 = vld [vmem:[%s4546_s0 + $0x310] sm:$0xff] }
   0xb   :  { %2561 = vmatmul.mubr.msk.f32.gmra.mxu1 %vm192_vm1, %v100_v6  ;;  %v28_v31 = vld [vmem:[%s4546_s0 + $0x70] sm:$0xff]  ;;  %v113_v32 = vld [vmem:[%s4546_s0 + $0x318] sm:$0xff]  ;;  %v114_v34 = vld [vmem:[%s4546_s0 + $0x320] sm:$0xff] }
   0xc   :  { %2563 = vmatprep.mubr.msk.f32.mxu1 %vm2818_vm2, %v2817_v0  ;;  %v29_v33 = vld [vmem:[%s4546_s0 + $0x78] sm:$0xff]  ;;  %v30_v35 = vld [vmem:[%s4546_s0 + $0x80] sm:$0xff]  ;;  %v115_v36 = vld [vmem:[%s4546_s0 + $0x328] sm:$0xff] }
   0xd   :  { %2309 = vmatmul.mubr.msk.f32.gmra.mxu0 %vm192_vm1, %v16_v7  ;;  %v31_v37 = vld [vmem:[%s4546_s0 + $0x88] sm:$0xff]  ;;  %v116_v38 = vld [vmem:[%s4546_s0 + $0x330] sm:$0xff]  ;;  %v117_v40 = vld [vmem:[%s4546_s0 + $0x338] sm:$0xff] }
   0xe   :  { %2311 = vmatprep.mubr.msk.f32.mxu0 %vm2818_vm2, %v2817_v0  ;;  %v32_v39 = vld [vmem:[%s4546_s0 + $0x90] sm:$0xff]  ;;  %v33_v41 = vld [vmem:[%s4546_s0 + $0x98] sm:$0xff]  ;;  %v118_v42 = vld [vmem:[%s4546_s0 + $0x340] sm:$0xff] }
   0xf   :  { %2564 = vmatmul.mubr.msk.f32.gmra.mxu1 %vm192_vm1, %v101_v8  ;;  %v34_v43 = vld [vmem:[%s4546_s0 + $0xa0] sm:$0xff]  ;;  %v119_v44 = vld [vmem:[%s4546_s0 + $0x348] sm:$0xff]  ;;  %v120_v46 = vld [vmem:[%s4546_s0 + $0x350] sm:$0xff] }
  0x10   :  { %2566 = vmatprep.mubr.msk.f32.mxu1 %vm2818_vm2, %v2817_v0  ;;  %v35_v45 = vld [vmem:[%s4546_s0 + $0xa8] sm:$0xff]  ;;  %v36_v47 = vld [vmem:[%s4546_s0 + $0xb0] sm:$0xff]  ;;  %v121_v48 = vld [vmem:[%s4546_s0 + $0x358] sm:$0xff] }
  0x11   :  { %2312 = vmatmul.mubr.msk.f32.gmra.mxu0 %vm192_vm1, %v17_v9  ;;  %v37_v49 = vld [vmem:[%s4546_s0 + $0xb8] sm:$0xff]  ;;  %v122_v50 = vld [vmem:[%s4546_s0 + $0x360] sm:$0xff]  ;;  %v123_v52 = vld [vmem:[%s4546_s0 + $0x368] sm:$0xff] }
  0x12   :  { %2314 = vmatprep.mubr.msk.f32.mxu0 %vm2818_vm2, %v2817_v0  ;;  %v38_v51 = vld [vmem:[%s4546_s0 + $0xc0] sm:$0xff]  ;;  %v39_v53 = vld [vmem:[%s4546_s0 + $0xc8] sm:$0xff]  ;;  %v124_v54 = vld [vmem:[%s4546_s0 + $0x370] sm:$0xff] }
  0x13   :  { %2567 = vmatmul.mubr.msk.f32.gmra.mxu1 %vm192_vm1, %v102_v10  ;;  %v40_v55 = vld [vmem:[%s4546_s0 + $0xd0] sm:$0xff]  ;;  %v125_v56 = vld [vmem:[%s4546_s0 + $0x378] sm:$0xff]  ;;  %v126_v58 = vld [vmem:[%s4546_s0 + $0x380] sm:$0xff] }
  0x14   :  { %2569 = vmatprep.mubr.msk.f32.mxu1 %vm2818_vm2, %v2817_v0  ;;  %v41_v57 = vld [vmem:[%s4546_s0 + $0xd8] sm:$0xff]  ;;  %v42_v59 = vld [vmem:[%s4546_s0 + $0xe0] sm:$0xff]  ;;  %v127_v60 = vld [vmem:[%s4546_s0 + $0x388] sm:$0xff] }
  0x15   :  { %2315 = vmatmul.mubr.msk.f32.gmra.mxu0 %vm192_vm1, %v18_v11  ;;  %v43_v61 = vld [vmem:[%s4546_s0 + $0xe8] sm:$0xff]  ;;  %v128_v62 = vld [vmem:[%s4546_s0 + $0x390] sm:$0xff]  ;;  %v129_v1 = vld [vmem:[%s4546_s0 + $0x398] sm:$0xff] }
  0x16   :  { %2317 = vmatprep.mubr.msk.f32.mxu0 %vm2818_vm2, %v2817_v0  ;;  %v44_v63 = vld [vmem:[%s4546_s0 + $0xf0] sm:$0xff]  ;;  %v45_v2 = vld [vmem:[%s4546_s0 + $0xf8] sm:$0xff]  ;;  %v130_v3 = vld [vmem:[%s4546_s0 + $0x3a0] sm:$0xff] }
  0x17   :  { %2570 = vmatmul.mubr.msk.f32.gmra.mxu1 %vm192_vm1, %v103_v12  ;;  %v46_v4 = vld [vmem:[%s4546_s0 + $0x100] sm:$0xff]  ;;  %v131_v5 = vld [vmem:[%s4546_s0 + $0x3a8] sm:$0xff]  ;;  %v132_v7 = vld [vmem:[%s4546_s0 + $0x3b0] sm:$0xff] }
  0x18   :  { %2572 = vmatprep.mubr.msk.f32.mxu1 %vm2818_vm2, %v2817_v0  ;;  %v47_v6 = vld [vmem:[%s4546_s0 + $0x108] sm:$0xff]  ;;  %v48_v8 = vld [vmem:[%s4546_s0 + $0x110] sm:$0xff]  ;;  %v133_v9 = vld [vmem:[%s4546_s0 + $0x3b8] sm:$0xff] }
  0x19   :  { %2318 = vmatmul.mubr.msk.f32.gmra.mxu0 %vm192_vm1, %v19_v13  ;;  %v49_v10 = vld [vmem:[%s4546_s0 + $0x118] sm:$0xff]  ;;  %v134_v11 = vld [vmem:[%s4546_s0 + $0x3c0] sm:$0xff]  ;;  %v135_v13 = vld [vmem:[%s4546_s0 + $0x3c8] sm:$0xff] }
  0x1a   :  { %2320 = vmatprep.mubr.msk.f32.mxu0 %vm2818_vm2, %v2817_v0  ;;  %v50_v12 = vld [vmem:[%s4546_s0 + $0x120] sm:$0xff] }
  0x1b   :  { %2573 = vmatmul.mubr.msk.f32.gmra.mxu1 %vm192_vm1, %v104_v14  ;;  %v51_v14 = vld [vmem:[%s4546_s0 + $0x128] sm:$0xff] }
  0x1c   :  { %2575 = vmatprep.mubr.msk.f32.mxu1 %vm2818_vm2, %v2817_v0 }
  0x1d   :  { %2321 = vmatmul.mubr.msk.f32.gmra.mxu0 %vm192_vm1, %v20_v15  ;;  %v136_v15 = vld [vmem:[%s4546_s0 + $0x3d0] sm:$0xff] }
  0x1e   :  { %2323 = vmatprep.mubr.msk.f32.mxu0 %vm2818_vm2, %v2817_v0 }
  0x1f   :  { %2576 = vmatmul.mubr.msk.f32.gmra.mxu1 %vm192_vm1, %v105_v16  ;;  %v52_v16 = vld [vmem:[%s4546_s0 + $0x130] sm:$0xff] }
  0x20   :  { %2578 = vmatprep.mubr.msk.f32.mxu1 %vm2818_vm2, %v2817_v0 }
  0x21   :  { %2324 = vmatmul.mubr.msk.f32.gmra.mxu0 %vm192_vm1, %v21_v17  ;;  %v137_v17 = vld [vmem:[%s4546_s0 + $0x3d8] sm:$0xff] }
  0x22   :  { %2326 = vmatprep.mubr.msk.f32.mxu0 %vm2818_vm2, %v2817_v0 }
  0x23   :  { %2579 = vmatmul.mubr.msk.f32.gmra.mxu1 %vm192_vm1, %v106_v18  ;;  %v53_v18 = vld [vmem:[%s4546_s0 + $0x138] sm:$0xff] }
  0x24   :  { %2581 = vmatprep.mubr.msk.f32.mxu1 %vm2818_vm2, %v2817_v0 }
  0x25   :  { %2327 = vmatmul.mubr.msk.f32.gmra.mxu0 %vm192_vm1, %v22_v19  ;;  %v138_v19 = vld [vmem:[%s4546_s0 + $0x3e0] sm:$0xff] }
  0x26   :  { %2329 = vmatprep.mubr.msk.f32.mxu0 %vm2818_vm2, %v2817_v0 }
  0x27   :  { %2582 = vmatmul.mubr.msk.f32.gmra.mxu1 %vm192_vm1, %v107_v20  ;;  %v54_v20 = vld [vmem:[%s4546_s0 + $0x140] sm:$0xff] }
  0x28   :  { %2584 = vmatprep.mubr.msk.f32.mxu1 %vm2818_vm2, %v2817_v0 }
  0x29   :  { %2330 = vmatmul.mubr.msk.f32.gmra.mxu0 %vm192_vm1, %v23_v21  ;;  %v139_v21 = vld [vmem:[%s4546_s0 + $0x3e8] sm:$0xff] }
  0x2a   :  { %2332 = vmatprep.mubr.msk.f32.mxu0 %vm2818_vm2, %v2817_v0 }
  0x2b   :  { %2585 = vmatmul.mubr.msk.f32.gmra.mxu1 %vm192_vm1, %v108_v22  ;;  %v55_v22 = vld [vmem:[%s4546_s0 + $0x148] sm:$0xff] }
  0x2c   :  { %2587 = vmatprep.mubr.msk.f32.mxu1 %vm2818_vm2, %v2817_v0 }
  0x2d   :  { %2333 = vmatmul.mubr.msk.f32.gmra.mxu0 %vm192_vm1, %v24_v23  ;;  %v140_v23 = vld [vmem:[%s4546_s0 + $0x3f0] sm:$0xff] }
  0x2e   :  { %2335 = vmatprep.mubr.msk.f32.mxu0 %vm2818_vm2, %v2817_v0 }
  0x2f   :  { %2588 = vmatmul.mubr.msk.f32.gmra.mxu1 %vm192_vm1, %v109_v24  ;;  %v56_v24 = vld [vmem:[%s4546_s0 + $0x150] sm:$0xff] }
  0x30   :  { %2590 = vmatprep.mubr.msk.f32.mxu1 %vm2818_vm2, %v2817_v0 }
  0x31   :  { %2336 = vmatmul.mubr.msk.f32.gmra.mxu0 %vm192_vm1, %v25_v25  ;;  %v141_v25 = vld [vmem:[%s4546_s0 + $0x3f8] sm:$0xff] }
  0x32   :  { %2338 = vmatprep.mubr.msk.f32.mxu0 %vm2818_vm2, %v2817_v0 }
  0x33   :  { %2591 = vmatmul.mubr.msk.f32.gmra.mxu1 %vm192_vm1, %v110_v26  ;;  %v57_v26 = vld [vmem:[%s4546_s0 + $0x158] sm:$0xff] }
  0x34   :  { %2593 = vmatprep.mubr.msk.f32.mxu1 %vm2818_vm2, %v2817_v0 }
  0x35   :  { %2339 = vmatmul.mubr.msk.f32.gmra.mxu0 %vm192_vm1, %v26_v27  ;;  %v142_v27 = vld [vmem:[%s4546_s0 + $0x400] sm:$0xff] }
  0x36   :  { %2341 = vmatprep.mubr.msk.f32.mxu0 %vm2818_vm2, %v2817_v0 }
  0x37   :  { %2594 = vmatmul.mubr.msk.f32.gmra.mxu1 %vm192_vm1, %v111_v28  ;;  %v58_v28 = vld [vmem:[%s4546_s0 + $0x160] sm:$0xff] }
  0x38   :  { %2596 = vmatprep.mubr.msk.f32.mxu1 %vm2818_vm2, %v2817_v0 }
  0x39   :  { %2342 = vmatmul.mubr.msk.f32.gmra.mxu0 %vm192_vm1, %v27_v29  ;;  %v143_v29 = vld [vmem:[%s4546_s0 + $0x408] sm:$0xff] }
  0x3a   :  { %2344 = vmatprep.mubr.msk.f32.mxu0 %vm2818_vm2, %v2817_v0 }
  0x3b   :  { %2597 = vmatmul.mubr.msk.f32.gmra.mxu1 %vm192_vm1, %v112_v30  ;;  %v59_v30 = vld [vmem:[%s4546_s0 + $0x168] sm:$0xff] }
  0x3c   :  { %2599 = vmatprep.mubr.msk.f32.mxu1 %vm2818_vm2, %v2817_v0 }
  0x3d   :  { %2345 = vmatmul.mubr.msk.f32.gmra.mxu0 %vm192_vm1, %v28_v31  ;;  %v144_v31 = vld [vmem:[%s4546_s0 + $0x410] sm:$0xff] }
  0x3e   :  { %2347 = vmatprep.mubr.msk.f32.mxu0 %vm2818_vm2, %v2817_v0 }
  0x3f   :  { %2600 = vmatmul.mubr.msk.f32.gmra.mxu1 %vm192_vm1, %v113_v32  ;;  %v60_v32 = vld [vmem:[%s4546_s0 + $0x170] sm:$0xff] }
  0x40   :  { %2602 = vmatprep.mubr.msk.f32.mxu1 %vm2818_vm2, %v2817_v0 }
  0x41   :  { %2348 = vmatmul.mubr.msk.f32.gmra.mxu0 %vm192_vm1, %v29_v33  ;;  %v145_v33 = vld [vmem:[%s4546_s0 + $0x418] sm:$0xff] }
  0x42   :  { %2350 = vmatprep.mubr.msk.f32.mxu0 %vm2818_vm2, %v2817_v0 }
  0x43   :  { %2603 = vmatmul.mubr.msk.f32.gmra.mxu1 %vm192_vm1, %v114_v34  ;;  %v61_v34 = vld [vmem:[%s4546_s0 + $0x178] sm:$0xff] }
  0x44   :  { %2605 = vmatprep.mubr.msk.f32.mxu1 %vm2818_vm2, %v2817_v0 }
  0x45   :  { %2351 = vmatmul.mubr.msk.f32.gmra.mxu0 %vm192_vm1, %v30_v35  ;;  %v146_v35 = vld [vmem:[%s4546_s0 + $0x420] sm:$0xff] }
  0x46   :  { %2353 = vmatprep.mubr.msk.f32.mxu0 %vm2818_vm2, %v2817_v0 }
  0x47   :  { %2606 = vmatmul.mubr.msk.f32.gmra.mxu1 %vm192_vm1, %v115_v36  ;;  %v62_v36 = vld [vmem:[%s4546_s0 + $0x180] sm:$0xff] }
  0x48   :  { %2608 = vmatprep.mubr.msk.f32.mxu1 %vm2818_vm2, %v2817_v0 }
  0x49   :  { %2354 = vmatmul.mubr.msk.f32.gmra.mxu0 %vm192_vm1, %v31_v37  ;;  %v3433_v37 = vld [vmem:[%s4547_s2] ss:$0 sm:$0xff] }
  0x4a   :  { %2356 = vmatprep.mubr.msk.f32.mxu0 %vm2818_vm2, %v2817_v0 }
  0x4b   :  { %2609 = vmatmul.mubr.msk.f32.gmra.mxu1 %vm192_vm1, %v116_v38  ;;  %v147_v38 = vld [vmem:[%s4546_s0 + $0x428] sm:$0xff] }
  0x4c   :  { %2611 = vmatprep.mubr.msk.f32.mxu1 %vm2818_vm2, %v2817_v0 }
  0x4d   :  { %2357 = vmatmul.mubr.msk.f32.gmra.mxu0 %vm192_vm1, %v32_v39 }
  0x4e   :  { %2359 = vmatprep.mubr.msk.f32.mxu0 %vm2818_vm2, %v2817_v0 }
  0x4f   :  { %2612 = vmatmul.mubr.msk.f32.gmra.mxu1 %vm192_vm1, %v117_v40 }
  0x50   :  { %2614 = vmatprep.mubr.msk.f32.mxu1 %vm2818_vm2, %v2817_v0 }
  0x51   :  { %2360 = vmatmul.mubr.msk.f32.gmra.mxu0 %vm192_vm1, %v33_v41  ;;  %v63_v41 = vld [vmem:[%s4546_s0 + $0x188] sm:$0xff] }
  0x52   :  { %2362 = vmatprep.mubr.msk.f32.mxu0 %vm2818_vm2, %v2817_v0 }
  0x53   :  { %2615 = vmatmul.mubr.msk.f32.gmra.mxu1 %vm192_vm1, %v118_v42 }
  0x54   :  { %2617 = vmatprep.mubr.msk.f32.mxu1 %vm2818_vm2, %v2817_v0 }
  0x55   :  { %2363 = vmatmul.mubr.msk.f32.gmra.mxu0 %vm192_vm1, %v34_v43 }
  0x56   :  { %2365 = vmatprep.mubr.msk.f32.mxu0 %vm2818_vm2, %v2817_v0 }
  0x57   :  { %2618 = vmatmul.mubr.msk.f32.gmra.mxu1 %vm192_vm1, %v119_v44 }
  0x58   :  { %2620 = vmatprep.mubr.msk.f32.mxu1 %vm2818_vm2, %v2817_v0 }
  0x59   :  { %2366 = vmatmul.mubr.msk.f32.gmra.mxu0 %vm192_vm1, %v35_v45 }
  0x5a   :  { %2368 = vmatprep.mubr.msk.f32.mxu0 %vm2818_vm2, %v2817_v0 }
  0x5b   :  { %2621 = vmatmul.mubr.msk.f32.gmra.mxu1 %vm192_vm1, %v120_v46  ;;  %v148_v46 = vld [vmem:[%s4546_s0 + $0x430] sm:$0xff] }
  0x5c   :  { %2623 = vmatprep.mubr.msk.f32.mxu1 %vm2818_vm2, %v2817_v0 }
  0x5d   :  { %2369 = vmatmul.mubr.msk.f32.gmra.mxu0 %vm192_vm1, %v36_v47 }
  0x5e   :  { %2371 = vmatprep.mubr.msk.f32.mxu0 %vm2818_vm2, %v2817_v0 }
  0x5f   :  { %2624 = vmatmul.mubr.msk.f32.gmra.mxu1 %vm192_vm1, %v121_v48 }
  0x60   :  { %2626 = vmatprep.mubr.msk.f32.mxu1 %vm2818_vm2, %v2817_v0 }
  0x61   :  { %2372 = vmatmul.mubr.msk.f32.gmra.mxu0 %vm192_vm1, %v37_v49 }
  0x62   :  { %2374 = vmatprep.mubr.msk.f32.mxu0 %vm2818_vm2, %v2817_v0 }
  0x63   :  { %2627 = vmatmul.mubr.msk.f32.gmra.mxu1 %vm192_vm1, %v122_v50 }
  0x64   :  { %2629 = vmatprep.mubr.msk.f32.mxu1 %vm2818_vm2, %v2817_v0 }
  0x65   :  { %2375 = vmatmul.mubr.msk.f32.gmra.mxu0 %vm192_vm1, %v38_v51  ;;  %v64_v51 = vld [vmem:[%s4546_s0 + $0x190] sm:$0xff] }
  0x66   :  { %2377 = vmatprep.mubr.msk.f32.mxu0 %vm2818_vm2, %v2817_v0 }
  0x67   :  { %2630 = vmatmul.mubr.msk.f32.gmra.mxu1 %vm192_vm1, %v123_v52 }
  0x68   :  { %2632 = vmatprep.mubr.msk.f32.mxu1 %vm2818_vm2, %v2817_v0 }
  0x69   :  { %2378 = vmatmul.mubr.msk.f32.gmra.mxu0 %vm192_vm1, %v39_v53 }
  0x6a   :  { %2380 = vmatprep.mubr.msk.f32.mxu0 %vm2818_vm2, %v2817_v0 }
  0x6b   :  { %2633 = vmatmul.mubr.msk.f32.gmra.mxu1 %vm192_vm1, %v124_v54 }
  0x6c   :  { %2635 = vmatprep.mubr.msk.f32.mxu1 %vm2818_vm2, %v2817_v0 }
  0x6d   :  { %2381 = vmatmul.mubr.msk.f32.gmra.mxu0 %vm192_vm1, %v40_v55 }
  0x6e   :  { %2383 = vmatprep.mubr.msk.f32.mxu0 %vm2818_vm2, %v2817_v0 }
  0x6f   :  { %2636 = vmatmul.mubr.msk.f32.gmra.mxu1 %vm192_vm1, %v125_v56  ;;  %v149_v56 = vld [vmem:[%s4546_s0 + $0x438] sm:$0xff] }
  0x70   :  { %2638 = vmatprep.mubr.msk.f32.mxu1 %vm2818_vm2, %v2817_v0 }
  0x71   :  { %2384 = vmatmul.mubr.msk.f32.gmra.mxu0 %vm192_vm1, %v41_v57 }
  0x72   :  { %2386 = vmatprep.mubr.msk.f32.mxu0 %vm2818_vm2, %v2817_v0 }
  0x73   :  { %2639 = vmatmul.mubr.msk.f32.gmra.mxu1 %vm192_vm1, %v126_v58 }
  0x74   :  { %2641 = vmatprep.mubr.msk.f32.mxu1 %vm2818_vm2, %v2817_v0 }
  0x75   :  { %2387 = vmatmul.mubr.msk.f32.gmra.mxu0 %vm192_vm1, %v42_v59 }
  0x76   :  { %2389 = vmatprep.mubr.msk.f32.mxu0 %vm2818_vm2, %v2817_v0 }
  0x77   :  { %2642 = vmatmul.mubr.msk.f32.gmra.mxu1 %vm192_vm1, %v127_v60 }
  0x78   :  { %2644 = vmatprep.mubr.msk.f32.mxu1 %vm2818_vm2, %v2817_v0 }
  0x79   :  { %2390 = vmatmul.mubr.msk.f32.gmra.mxu0 %vm192_vm1, %v43_v61  ;;  %v65_v61 = vld [vmem:[%s4546_s0 + $0x198] sm:$0xff] }
  0x7a   :  { %2392 = vmatprep.mubr.msk.f32.mxu0 %vm2818_vm2, %v2817_v0 }
  0x7b   :  { %2645 = vmatmul.mubr.msk.f32.gmra.mxu1 %vm192_vm1, %v128_v62 }
  0x7c   :  { %2647 = vmatprep.mubr.msk.f32.mxu1 %vm2818_vm2, %v2817_v0 }
  0x7d   :  { %2393 = vmatmul.mubr.msk.f32.gmra.mxu0 %vm192_vm1, %v44_v63 }
  0x7e   :  { %2395 = vmatprep.mubr.msk.f32.mxu0 %vm2818_vm2, %v2817_v0 }
  0x7f   :  { %2648 = vmatmul.mubr.msk.f32.gmra.mxu1 %vm192_vm1, %v129_v1 }
  0x80   :  { %2650 = vmatprep.mubr.msk.f32.mxu1 %vm2818_vm2, %v2817_v0 }
  0x81   :  { %2396 = vmatmul.mubr.msk.f32.gmra.mxu0 %vm192_vm1, %v45_v2 }
  0x82   :  { %2398 = vmatprep.mubr.msk.f32.mxu0 %vm2818_vm2, %v2817_v0 }
  0x83   :  { %2651 = vmatmul.mubr.msk.f32.gmra.mxu1 %vm192_vm1, %v130_v3  ;;  %v150_v3 = vld [vmem:[%s4546_s0 + $0x440] sm:$0xff] }
  0x84   :  { %2653 = vmatprep.mubr.msk.f32.mxu1 %vm2818_vm2, %v2817_v0 }
  0x85   :  { %2399 = vmatmul.mubr.msk.f32.gmra.mxu0 %vm192_vm1, %v46_v4 }
  0x86   :  { %2401 = vmatprep.mubr.msk.f32.mxu0 %vm2818_vm2, %v2817_v0 }
  0x87   :  { %2654 = vmatmul.mubr.msk.f32.gmra.mxu1 %vm192_vm1, %v131_v5 }
  0x88   :  { %2656 = vmatprep.mubr.msk.f32.mxu1 %vm2818_vm2, %v2817_v0 }
  0x89   :  { %2402 = vmatmul.mubr.msk.f32.gmra.mxu0 %vm192_vm1, %v47_v6 }
  0x8a   :  { %2404 = vmatprep.mubr.msk.f32.mxu0 %vm2818_vm2, %v2817_v0 }
  0x8b   :  { %2657 = vmatmul.mubr.msk.f32.gmra.mxu1 %vm192_vm1, %v132_v7 }
  0x8c   :  { %2659 = vmatprep.mubr.msk.f32.mxu1 %vm2818_vm2, %v2817_v0 }
  0x8d   :  { %2405 = vmatmul.mubr.msk.f32.gmra.mxu0 %vm192_vm1, %v48_v8  ;;  %v66_v8 = vld [vmem:[%s4546_s0 + $0x1a0] sm:$0xff] }
  0x8e   :  { %2407 = vmatprep.mubr.msk.f32.mxu0 %vm2818_vm2, %v2817_v0 }
  0x8f   :  { %2660 = vmatmul.mubr.msk.f32.gmra.mxu1 %vm192_vm1, %v133_v9 }
  0x90   :  { %2662 = vmatprep.mubr.msk.f32.mxu1 %vm2818_vm2, %v2817_v0 }
  0x91   :  { %2408 = vmatmul.mubr.msk.f32.gmra.mxu0 %vm192_vm1, %v49_v10 }
  0x92   :  { %2410 = vmatprep.mubr.msk.f32.mxu0 %vm2818_vm2, %v2817_v0 }
  0x93   :  { %2663 = vmatmul.mubr.msk.f32.gmra.mxu1 %vm192_vm1, %v134_v11 }
  0x94   :  { %2665 = vmatprep.mubr.msk.f32.mxu1 %vm2818_vm2, %v2817_v0 }
  0x95   :  { %2411 = vmatmul.mubr.msk.f32.gmra.mxu0 %vm192_vm1, %v50_v12 }
  0x96   :  { %2413 = vmatprep.mubr.msk.f32.mxu0 %vm2818_vm2, %v2817_v0 }
  0x97   :  { %2666 = vmatmul.mubr.msk.f32.gmra.mxu1 %vm192_vm1, %v135_v13  ;;  %v151_v13 = vld [vmem:[%s4546_s0 + $0x448] sm:$0xff] }
  0x98   :  { %2668 = vmatprep.mubr.msk.f32.mxu1 %vm2818_vm2, %v2817_v0 }
  0x99   :  { %2414 = vmatmul.mubr.msk.f32.gmra.mxu0 %vm192_vm1, %v51_v14 }
  0x9a   :  { %2416 = vmatprep.mubr.msk.f32.mxu0 %vm2818_vm2, %v2817_v0 }
  0x9b   :  { %2669 = vmatmul.mubr.msk.f32.gmra.mxu1 %vm192_vm1, %v136_v15 }
  0x9c   :  { %2671 = vmatprep.mubr.msk.f32.mxu1 %vm2818_vm2, %v2817_v0 }
  0x9d   :  { %2417 = vmatmul.mubr.msk.f32.gmra.mxu0 %vm192_vm1, %v52_v16 }
  0x9e   :  { %2419 = vmatprep.mubr.msk.f32.mxu0 %vm2818_vm2, %v2817_v0 }
  0x9f   :  { %2672 = vmatmul.mubr.msk.f32.gmra.mxu1 %vm192_vm1, %v137_v17 }
  0xa0   :  { %2674 = vmatprep.mubr.msk.f32.mxu1 %vm2818_vm2, %v2817_v0 }
  0xa1   :  { %2420 = vmatmul.mubr.msk.f32.gmra.mxu0 %vm192_vm1, %v53_v18  ;;  %v67_v18 = vld [vmem:[%s4546_s0 + $0x1a8] sm:$0xff] }
  0xa2   :  { %2422 = vmatprep.mubr.msk.f32.mxu0 %vm2818_vm2, %v2817_v0 }
  0xa3   :  { %2675 = vmatmul.mubr.msk.f32.gmra.mxu1 %vm192_vm1, %v138_v19 }
  0xa4   :  { %2677 = vmatprep.mubr.msk.f32.mxu1 %vm2818_vm2, %v2817_v0 }
  0xa5   :  { %2423 = vmatmul.mubr.msk.f32.gmra.mxu0 %vm192_vm1, %v54_v20 }
  0xa6   :  { %2425 = vmatprep.mubr.msk.f32.mxu0 %vm2818_vm2, %v2817_v0 }
  0xa7   :  { %2678 = vmatmul.mubr.msk.f32.gmra.mxu1 %vm192_vm1, %v139_v21 }
  0xa8   :  { %2680 = vmatprep.mubr.msk.f32.mxu1 %vm2818_vm2, %v2817_v0 }
  0xa9   :  { %2426 = vmatmul.mubr.msk.f32.gmra.mxu0 %vm192_vm1, %v55_v22 }
  0xaa   :  { %2428 = vmatprep.mubr.msk.f32.mxu0 %vm2818_vm2, %v2817_v0 }
  0xab   :  { %2681 = vmatmul.mubr.msk.f32.gmra.mxu1 %vm192_vm1, %v140_v23  ;;  %v152_v23 = vld [vmem:[%s4546_s0 + $0x450] sm:$0xff] }
  0xac   :  { %2683 = vmatprep.mubr.msk.f32.mxu1 %vm2818_vm2, %v2817_v0 }
  0xad   :  { %2429 = vmatmul.mubr.msk.f32.gmra.mxu0 %vm192_vm1, %v56_v24 }
  0xae   :  { %2431 = vmatprep.mubr.msk.f32.mxu0 %vm2818_vm2, %v2817_v0 }
  0xaf   :  { %2684 = vmatmul.mubr.msk.f32.gmra.mxu1 %vm192_vm1, %v141_v25 }
  0xb0   :  { %2686 = vmatprep.mubr.msk.f32.mxu1 %vm2818_vm2, %v2817_v0 }
  0xb1   :  { %2432 = vmatmul.mubr.msk.f32.gmra.mxu0 %vm192_vm1, %v57_v26 }
  0xb2   :  { %2434 = vmatprep.mubr.msk.f32.mxu0 %vm2818_vm2, %v2817_v0 }
  0xb3   :  { %2687 = vmatmul.mubr.msk.f32.gmra.mxu1 %vm192_vm1, %v142_v27 }
  0xb4   :  { %2689 = vmatprep.mubr.msk.f32.mxu1 %vm2818_vm2, %v2817_v0 }
  0xb5   :  { %2435 = vmatmul.mubr.msk.f32.gmra.mxu0 %vm192_vm1, %v58_v28  ;;  %v68_v28 = vld [vmem:[%s4546_s0 + $0x1b0] sm:$0xff] }
  0xb6   :  { %2437 = vmatprep.mubr.msk.f32.mxu0 %vm2818_vm2, %v2817_v0 }
  0xb7   :  { %2690 = vmatmul.mubr.msk.f32.gmra.mxu1 %vm192_vm1, %v143_v29 }
  0xb8   :  { %2692 = vmatprep.mubr.msk.f32.mxu1 %vm2818_vm2, %v2817_v0 }
  0xb9   :  { %2438 = vmatmul.mubr.msk.f32.gmra.mxu0 %vm192_vm1, %v59_v30 }
  0xba   :  { %2440 = vmatprep.mubr.msk.f32.mxu0 %vm2818_vm2, %v2817_v0 }
  0xbb   :  { %2693 = vmatmul.mubr.msk.f32.gmra.mxu1 %vm192_vm1, %v144_v31 }
  0xbc   :  { %2695 = vmatprep.mubr.msk.f32.mxu1 %vm2818_vm2, %v2817_v0 }
  0xbd   :  { %2441 = vmatmul.mubr.msk.f32.gmra.mxu0 %vm192_vm1, %v60_v32 }
  0xbe   :  { %2443 = vmatprep.mubr.msk.f32.mxu0 %vm2818_vm2, %v2817_v0 }
  0xbf   :  { %2696 = vmatmul.mubr.msk.f32.gmra.mxu1 %vm192_vm1, %v145_v33  ;;  %v153_v33 = vld [vmem:[%s4546_s0 + $0x458] sm:$0xff] }
  0xc0   :  { %2698 = vmatprep.mubr.msk.f32.mxu1 %vm2818_vm2, %v2817_v0 }
  0xc1   :  { %2444 = vmatmul.mubr.msk.f32.gmra.mxu0 %vm192_vm1, %v61_v34 }
  0xc2   :  { %2446 = vmatprep.mubr.msk.f32.mxu0 %vm2818_vm2, %v2817_v0 }
  0xc3   :  { %2699 = vmatmul.mubr.msk.f32.gmra.mxu1 %vm192_vm1, %v146_v35 }
  0xc4   :  { %2701 = vmatprep.mubr.msk.f32.mxu1 %vm2818_vm2, %v2817_v0 }
  0xc5   :  { %v770_v39 = vpop.f32.mrf.mxu0  ;;  %2447 = vmatmul.mubr.msk.f32.gmra.mxu0 %vm192_vm1, %v62_v36 }
  0xc6   :  { %v771_v40 = vadd.f32 %v3433_v37, %v770_v39  ;;  %2449 = vmatprep.mubr.msk.f32.mxu0 %vm2818_vm2, %v2817_v0  ;;  %v69_v39 = vld [vmem:[%s4546_s0 + $0x1b8] sm:$0xff] }
  0xc7   :  { %v2304_v42 = vpop.f32.mrf.mxu0  ;;  %v1195_v43 = vpop.f32.mrf.mxu1  ;;  %2702 = vmatmul.mubr.msk.f32.gmra.mxu1 %vm192_vm1, %v147_v38 }
  0xc8   :  { %v1614_v44 = vmax.f32 %v771_v40, 0.0  ;;  %v1196_v45 = vadd.f32 %v3433_v37, %v1195_v43  ;;  %2704 = vmatprep.mubr.msk.f32.mxu1 %vm2818_vm2, %v2817_v0 }
  0xc9   :  { %v775_v47 = vpop.f32.mrf.mxu0  ;;  %2450 = vmatmul.mubr.msk.f32.gmra.mxu0 %vm192_vm1, %v63_v41  ;;  %v2559_v48 = vpop.f32.mrf.mxu1 }
  0xca   :  { %1783 = vst [vmem:[%s4548_s3] sm:$0xff] %v1614_v44  ;;  %v1699_v49 = vmax.f32 %v1196_v45, 0.0  ;;  %v776_v50 = vadd.f32 %v3433_v37, %v775_v47  ;;  %2452 = vmatprep.mubr.msk.f32.mxu0 %vm2818_vm2, %v2817_v0  ;;  %v154_v44 = vld [vmem:[%s4546_s0 + $0x460] sm:$0xff] }
  0xcb   :  { %v2307_v52 = vpop.f32.mrf.mxu0  ;;  %v1200_v53 = vpop.f32.mrf.mxu1  ;;  %2705 = vmatmul.mubr.msk.f32.gmra.mxu1 %vm192_vm1, %v148_v46 }
  0xcc   :  { %1868 = vst [vmem:[%s4548_s3 + $0x2a8] sm:$0xff] %v1699_v49  ;;  %v1615_v54 = vmax.f32 %v776_v50, 0.0  ;;  %v1201_v55 = vadd.f32 %v3433_v37, %v1200_v53  ;;  %2707 = vmatprep.mubr.msk.f32.mxu1 %vm2818_vm2, %v2817_v0  ;;  %v70_v49 = vld [vmem:[%s4546_s0 + $0x1c0] sm:$0xff] }
  0xcd   :  { %v780_v57 = vpop.f32.mrf.mxu0  ;;  %2453 = vmatmul.mubr.msk.f32.gmra.mxu0 %vm192_vm1, %v64_v51  ;;  %v2562_v58 = vpop.f32.mrf.mxu1 }
  0xce   :  { %1784 = vst [vmem:[%s4548_s3 + $0x8] sm:$0xff] %v1615_v54  ;;  %v1700_v59 = vmax.f32 %v1201_v55, 0.0  ;;  %v781_v60 = vadd.f32 %v3433_v37, %v780_v57  ;;  %2455 = vmatprep.mubr.msk.f32.mxu0 %vm2818_vm2, %v2817_v0  ;;  %v155_v54 = vld [vmem:[%s4546_s0 + $0x468] sm:$0xff] }
  0xcf   :  { %v2310_v62 = vpop.f32.mrf.mxu0  ;;  %v1205_v63 = vpop.f32.mrf.mxu1  ;;  %2708 = vmatmul.mubr.msk.f32.gmra.mxu1 %vm192_vm1, %v149_v56 }
  0xd0   :  { %1869 = vst [vmem:[%s4548_s3 + $0x2b0] sm:$0xff] %v1700_v59  ;;  %v1616_v1 = vmax.f32 %v781_v60, 0.0  ;;  %v1206_v2 = vadd.f32 %v3433_v37, %v1205_v63  ;;  %2710 = vmatprep.mubr.msk.f32.mxu1 %vm2818_vm2, %v2817_v0  ;;  %v71_v59 = vld [vmem:[%s4546_s0 + $0x1c8] sm:$0xff] }
  0xd1   :  { %v785_v4 = vpop.f32.mrf.mxu0  ;;  %2456 = vmatmul.mubr.msk.f32.gmra.mxu0 %vm192_vm1, %v65_v61  ;;  %v2565_v5 = vpop.f32.mrf.mxu1 }
  0xd2   :  { %1785 = vst [vmem:[%s4548_s3 + $0x10] sm:$0xff] %v1616_v1  ;;  %v1701_v6 = vmax.f32 %v1206_v2, 0.0  ;;  %v786_v7 = vadd.f32 %v3433_v37, %v785_v4  ;;  %2458 = vmatprep.mubr.msk.f32.mxu0 %vm2818_vm2, %v2817_v0  ;;  %v156_v1 = vld [vmem:[%s4546_s0 + $0x470] sm:$0xff] }
  0xd3   :  { %v2313_v9 = vpop.f32.mrf.mxu0  ;;  %v1210_v10 = vpop.f32.mrf.mxu1  ;;  %2711 = vmatmul.mubr.msk.f32.gmra.mxu1 %vm192_vm1, %v150_v3 }
  0xd4   :  { %1870 = vst [vmem:[%s4548_s3 + $0x2b8] sm:$0xff] %v1701_v6  ;;  %v1617_v11 = vmax.f32 %v786_v7, 0.0  ;;  %v1211_v12 = vadd.f32 %v3433_v37, %v1210_v10  ;;  %2713 = vmatprep.mubr.msk.f32.mxu1 %vm2818_vm2, %v2817_v0  ;;  %v72_v6 = vld [vmem:[%s4546_s0 + $0x1d0] sm:$0xff] }
  0xd5   :  { %v790_v14 = vpop.f32.mrf.mxu0  ;;  %2459 = vmatmul.mubr.msk.f32.gmra.mxu0 %vm192_vm1, %v66_v8  ;;  %v2568_v15 = vpop.f32.mrf.mxu1 }
  0xd6   :  { %1786 = vst [vmem:[%s4548_s3 + $0x18] sm:$0xff] %v1617_v11  ;;  %v1702_v16 = vmax.f32 %v1211_v12, 0.0  ;;  %v791_v17 = vadd.f32 %v3433_v37, %v790_v14  ;;  %2461 = vmatprep.mubr.msk.f32.mxu0 %vm2818_vm2, %v2817_v0  ;;  %v157_v11 = vld [vmem:[%s4546_s0 + $0x478] sm:$0xff] }
  0xd7   :  { %v2316_v19 = vpop.f32.mrf.mxu0  ;;  %v1215_v20 = vpop.f32.mrf.mxu1  ;;  %2714 = vmatmul.mubr.msk.f32.gmra.mxu1 %vm192_vm1, %v151_v13 }
  0xd8   :  { %1871 = vst [vmem:[%s4548_s3 + $0x2c0] sm:$0xff] %v1702_v16  ;;  %v1618_v21 = vmax.f32 %v791_v17, 0.0  ;;  %v1216_v22 = vadd.f32 %v3433_v37, %v1215_v20  ;;  %2716 = vmatprep.mubr.msk.f32.mxu1 %vm2818_vm2, %v2817_v0  ;;  %v73_v16 = vld [vmem:[%s4546_s0 + $0x1d8] sm:$0xff] }
  0xd9   :  { %v795_v24 = vpop.f32.mrf.mxu0  ;;  %2462 = vmatmul.mubr.msk.f32.gmra.mxu0 %vm192_vm1, %v67_v18  ;;  %v2571_v25 = vpop.f32.mrf.mxu1 }
  0xda   :  { %1787 = vst [vmem:[%s4548_s3 + $0x20] sm:$0xff] %v1618_v21  ;;  %v1703_v26 = vmax.f32 %v1216_v22, 0.0  ;;  %v796_v27 = vadd.f32 %v3433_v37, %v795_v24  ;;  %2464 = vmatprep.mubr.msk.f32.mxu0 %vm2818_vm2, %v2817_v0  ;;  %v158_v21 = vld [vmem:[%s4546_s0 + $0x480] sm:$0xff] }
  0xdb   :  { %v2319_v29 = vpop.f32.mrf.mxu0  ;;  %v1220_v30 = vpop.f32.mrf.mxu1  ;;  %2717 = vmatmul.mubr.msk.f32.gmra.mxu1 %vm192_vm1, %v152_v23 }
  0xdc   :  { %1872 = vst [vmem:[%s4548_s3 + $0x2c8] sm:$0xff] %v1703_v26  ;;  %v1619_v31 = vmax.f32 %v796_v27, 0.0  ;;  %v1221_v32 = vadd.f32 %v3433_v37, %v1220_v30  ;;  %2719 = vmatprep.mubr.msk.f32.mxu1 %vm2818_vm2, %v2817_v0  ;;  %v74_v26 = vld [vmem:[%s4546_s0 + $0x1e0] sm:$0xff] }
  0xdd   :  { %v800_v34 = vpop.f32.mrf.mxu0  ;;  %2465 = vmatmul.mubr.msk.f32.gmra.mxu0 %vm192_vm1, %v68_v28  ;;  %v2574_v35 = vpop.f32.mrf.mxu1 }
  0xde   :  { %1788 = vst [vmem:[%s4548_s3 + $0x28] sm:$0xff] %v1619_v31  ;;  %v1704_v36 = vmax.f32 %v1221_v32, 0.0  ;;  %v801_v38 = vadd.f32 %v3433_v37, %v800_v34  ;;  %2467 = vmatprep.mubr.msk.f32.mxu0 %vm2818_vm2, %v2817_v0  ;;  %v159_v31 = vld [vmem:[%s4546_s0 + $0x488] sm:$0xff] }
  0xdf   :  { %v2322_v40 = vpop.f32.mrf.mxu0  ;;  %v1225_v41 = vpop.f32.mrf.mxu1  ;;  %2720 = vmatmul.mubr.msk.f32.gmra.mxu1 %vm192_vm1, %v153_v33 }
  0xe0   :  { %1873 = vst [vmem:[%s4548_s3 + $0x2d0] sm:$0xff] %v1704_v36  ;;  %v1620_v42 = vmax.f32 %v801_v38, 0.0  ;;  %v1226_v43 = vadd.f32 %v3433_v37, %v1225_v41  ;;  %2722 = vmatprep.mubr.msk.f32.mxu1 %vm2818_vm2, %v2817_v0  ;;  %v75_v36 = vld [vmem:[%s4546_s0 + $0x1e8] sm:$0xff] }
  0xe1   :  { %v805_v45 = vpop.f32.mrf.mxu0  ;;  %2468 = vmatmul.mubr.msk.f32.gmra.mxu0 %vm192_vm1, %v69_v39  ;;  %v2577_v46 = vpop.f32.mrf.mxu1 }
  0xe2   :  { %1789 = vst [vmem:[%s4548_s3 + $0x30] sm:$0xff] %v1620_v42  ;;  %v1705_v47 = vmax.f32 %v1226_v43, 0.0  ;;  %v806_v48 = vadd.f32 %v3433_v37, %v805_v45  ;;  %2470 = vmatprep.mubr.msk.f32.mxu0 %vm2818_vm2, %v2817_v0  ;;  %v160_v42 = vld [vmem:[%s4546_s0 + $0x490] sm:$0xff] }
  0xe3   :  { %v2325_v50 = vpop.f32.mrf.mxu0  ;;  %v1230_v51 = vpop.f32.mrf.mxu1  ;;  %2723 = vmatmul.mubr.msk.f32.gmra.mxu1 %vm192_vm1, %v154_v44 }
  0xe4   :  { %1874 = vst [vmem:[%s4548_s3 + $0x2d8] sm:$0xff] %v1705_v47  ;;  %v1621_v52 = vmax.f32 %v806_v48, 0.0  ;;  %v1231_v53 = vadd.f32 %v3433_v37, %v1230_v51  ;;  %2725 = vmatprep.mubr.msk.f32.mxu1 %vm2818_vm2, %v2817_v0  ;;  %v76_v47 = vld [vmem:[%s4546_s0 + $0x1f0] sm:$0xff] }
  0xe5   :  { %v810_v55 = vpop.f32.mrf.mxu0  ;;  %2471 = vmatmul.mubr.msk.f32.gmra.mxu0 %vm192_vm1, %v70_v49  ;;  %v2580_v56 = vpop.f32.mrf.mxu1 }
  0xe6   :  { %1790 = vst [vmem:[%s4548_s3 + $0x38] sm:$0xff] %v1621_v52  ;;  %v1706_v57 = vmax.f32 %v1231_v53, 0.0  ;;  %v811_v58 = vadd.f32 %v3433_v37, %v810_v55  ;;  %2473 = vmatprep.mubr.msk.f32.mxu0 %vm2818_vm2, %v2817_v0  ;;  %v161_v52 = vld [vmem:[%s4546_s0 + $0x498] sm:$0xff] }
  0xe7   :  { %v2328_v60 = vpop.f32.mrf.mxu0  ;;  %v1235_v61 = vpop.f32.mrf.mxu1  ;;  %2726 = vmatmul.mubr.msk.f32.gmra.mxu1 %vm192_vm1, %v155_v54 }
  0xe8   :  { %1875 = vst [vmem:[%s4548_s3 + $0x2e0] sm:$0xff] %v1706_v57  ;;  %v1622_v62 = vmax.f32 %v811_v58, 0.0  ;;  %v1236_v63 = vadd.f32 %v3433_v37, %v1235_v61  ;;  %2728 = vmatprep.mubr.msk.f32.mxu1 %vm2818_vm2, %v2817_v0  ;;  %v77_v57 = vld [vmem:[%s4546_s0 + $0x1f8] sm:$0xff] }
  0xe9   :  { %v815_v2 = vpop.f32.mrf.mxu0  ;;  %2474 = vmatmul.mubr.msk.f32.gmra.mxu0 %vm192_vm1, %v71_v59  ;;  %v2583_v3 = vpop.f32.mrf.mxu1 }
  0xea   :  { %1791 = vst [vmem:[%s4548_s3 + $0x40] sm:$0xff] %v1622_v62  ;;  %v1707_v4 = vmax.f32 %v1236_v63, 0.0  ;;  %v816_v5 = vadd.f32 %v3433_v37, %v815_v2  ;;  %2476 = vmatprep.mubr.msk.f32.mxu0 %vm2818_vm2, %v2817_v0  ;;  %v162_v62 = vld [vmem:[%s4546_s0 + $0x4a0] sm:$0xff] }
  0xeb   :  { %v2331_v7 = vpop.f32.mrf.mxu0  ;;  %v1240_v8 = vpop.f32.mrf.mxu1  ;;  %2729 = vmatmul.mubr.msk.f32.gmra.mxu1 %vm192_vm1, %v156_v1 }
  0xec   :  { %1876 = vst [vmem:[%s4548_s3 + $0x2e8] sm:$0xff] %v1707_v4  ;;  %v1623_v9 = vmax.f32 %v816_v5, 0.0  ;;  %v1241_v10 = vadd.f32 %v3433_v37, %v1240_v8  ;;  %2731 = vmatprep.mubr.msk.f32.mxu1 %vm2818_vm2, %v2817_v0  ;;  %v78_v4 = vld [vmem:[%s4546_s0 + $0x200] sm:$0xff] }
  0xed   :  { %v820_v12 = vpop.f32.mrf.mxu0  ;;  %2477 = vmatmul.mubr.msk.f32.gmra.mxu0 %vm192_vm1, %v72_v6  ;;  %v2586_v13 = vpop.f32.mrf.mxu1 }
  0xee   :  { %1792 = vst [vmem:[%s4548_s3 + $0x48] sm:$0xff] %v1623_v9  ;;  %v1708_v14 = vmax.f32 %v1241_v10, 0.0  ;;  %v821_v15 = vadd.f32 %v3433_v37, %v820_v12  ;;  %2479 = vmatprep.mubr.msk.f32.mxu0 %vm2818_vm2, %v2817_v0  ;;  %v163_v9 = vld [vmem:[%s4546_s0 + $0x4a8] sm:$0xff] }
  0xef   :  { %v2334_v17 = vpop.f32.mrf.mxu0  ;;  %v1245_v18 = vpop.f32.mrf.mxu1  ;;  %2732 = vmatmul.mubr.msk.f32.gmra.mxu1 %vm192_vm1, %v157_v11 }
  0xf0   :  { %1877 = vst [vmem:[%s4548_s3 + $0x2f0] sm:$0xff] %v1708_v14  ;;  %v1624_v19 = vmax.f32 %v821_v15, 0.0  ;;  %v1246_v20 = vadd.f32 %v3433_v37, %v1245_v18  ;;  %2734 = vmatprep.mubr.msk.f32.mxu1 %vm2818_vm2, %v2817_v0  ;;  %v79_v14 = vld [vmem:[%s4546_s0 + $0x208] sm:$0xff] }
  0xf1   :  { %v825_v22 = vpop.f32.mrf.mxu0  ;;  %2480 = vmatmul.mubr.msk.f32.gmra.mxu0 %vm192_vm1, %v73_v16  ;;  %v2589_v23 = vpop.f32.mrf.mxu1 }
  0xf2   :  { %1793 = vst [vmem:[%s4548_s3 + $0x50] sm:$0xff] %v1624_v19  ;;  %v1709_v24 = vmax.f32 %v1246_v20, 0.0  ;;  %v826_v25 = vadd.f32 %v3433_v37, %v825_v22  ;;  %2482 = vmatprep.mubr.msk.f32.mxu0 %vm2818_vm2, %v2817_v0  ;;  %v164_v19 = vld [vmem:[%s4546_s0 + $0x4b0] sm:$0xff] }
  0xf3   :  { %v2337_v27 = vpop.f32.mrf.mxu0  ;;  %v1250_v28 = vpop.f32.mrf.mxu1  ;;  %2735 = vmatmul.mubr.msk.f32.gmra.mxu1 %vm192_vm1, %v158_v21 }
  0xf4   :  { %1878 = vst [vmem:[%s4548_s3 + $0x2f8] sm:$0xff] %v1709_v24  ;;  %v1625_v29 = vmax.f32 %v826_v25, 0.0  ;;  %v1251_v30 = vadd.f32 %v3433_v37, %v1250_v28  ;;  %2737 = vmatprep.mubr.msk.f32.mxu1 %vm2818_vm2, %v2817_v0  ;;  %v80_v24 = vld [vmem:[%s4546_s0 + $0x210] sm:$0xff] }
  0xf5   :  { %v830_v32 = vpop.f32.mrf.mxu0  ;;  %2483 = vmatmul.mubr.msk.f32.gmra.mxu0 %vm192_vm1, %v74_v26  ;;  %v2592_v33 = vpop.f32.mrf.mxu1 }
  0xf6   :  { %1794 = vst [vmem:[%s4548_s3 + $0x58] sm:$0xff] %v1625_v29  ;;  %v1710_v34 = vmax.f32 %v1251_v30, 0.0  ;;  %v831_v35 = vadd.f32 %v3433_v37, %v830_v32  ;;  %2485 = vmatprep.mubr.msk.f32.mxu0 %vm2818_vm2, %v2817_v0  ;;  %v165_v29 = vld [vmem:[%s4546_s0 + $0x4b8] sm:$0xff] }
  0xf7   :  { %v2340_v38 = vpop.f32.mrf.mxu0  ;;  %v1255_v39 = vpop.f32.mrf.mxu1  ;;  %2738 = vmatmul.mubr.msk.f32.gmra.mxu1 %vm192_vm1, %v159_v31 }
  0xf8   :  { %1879 = vst [vmem:[%s4548_s3 + $0x300] sm:$0xff] %v1710_v34  ;;  %v1626_v40 = vmax.f32 %v831_v35, 0.0  ;;  %v1256_v41 = vadd.f32 %v3433_v37, %v1255_v39  ;;  %2740 = vmatprep.mubr.msk.f32.mxu1 %vm2818_vm2, %v2817_v0  ;;  %v81_v34 = vld [vmem:[%s4546_s0 + $0x218] sm:$0xff] }
  0xf9   :  { %v835_v43 = vpop.f32.mrf.mxu0  ;;  %2486 = vmatmul.mubr.msk.f32.gmra.mxu0 %vm192_vm1, %v75_v36  ;;  %v2595_v44 = vpop.f32.mrf.mxu1 }
  0xfa   :  { %1795 = vst [vmem:[%s4548_s3 + $0x60] sm:$0xff] %v1626_v40  ;;  %v1711_v45 = vmax.f32 %v1256_v41, 0.0  ;;  %v836_v46 = vadd.f32 %v3433_v37, %v835_v43  ;;  %2488 = vmatprep.mubr.msk.f32.mxu0 %vm2818_vm2, %v2817_v0  ;;  %v166_v40 = vld [vmem:[%s4546_s0 + $0x4c0] sm:$0xff] }
  0xfb   :  { %v2343_v48 = vpop.f32.mrf.mxu0  ;;  %v1260_v49 = vpop.f32.mrf.mxu1  ;;  %2741 = vmatmul.mubr.msk.f32.gmra.mxu1 %vm192_vm1, %v160_v42 }
  0xfc   :  { %1880 = vst [vmem:[%s4548_s3 + $0x308] sm:$0xff] %v1711_v45  ;;  %v1627_v50 = vmax.f32 %v836_v46, 0.0  ;;  %v1261_v51 = vadd.f32 %v3433_v37, %v1260_v49  ;;  %2743 = vmatprep.mubr.msk.f32.mxu1 %vm2818_vm2, %v2817_v0  ;;  %v82_v45 = vld [vmem:[%s4546_s0 + $0x220] sm:$0xff] }
  0xfd   :  { %v840_v53 = vpop.f32.mrf.mxu0  ;;  %2489 = vmatmul.mubr.msk.f32.gmra.mxu0 %vm192_vm1, %v76_v47  ;;  %v2598_v54 = vpop.f32.mrf.mxu1 }
  0xfe   :  { %1796 = vst [vmem:[%s4548_s3 + $0x68] sm:$0xff] %v1627_v50  ;;  %v1712_v55 = vmax.f32 %v1261_v51, 0.0  ;;  %v841_v56 = vadd.f32 %v3433_v37, %v840_v53  ;;  %2491 = vmatprep.mubr.msk.f32.mxu0 %vm2818_vm2, %v2817_v0  ;;  %v167_v50 = vld [vmem:[%s4546_s0 + $0x4c8] sm:$0xff] }
  0xff   :  { %v2346_v58 = vpop.f32.mrf.mxu0  ;;  %v1265_v59 = vpop.f32.mrf.mxu1  ;;  %2744 = vmatmul.mubr.msk.f32.gmra.mxu1 %vm192_vm1, %v161_v52 }
 0x100   :  { %1881 = vst [vmem:[%s4548_s3 + $0x310] sm:$0xff] %v1712_v55  ;;  %v1628_v60 = vmax.f32 %v841_v56, 0.0  ;;  %v1266_v61 = vadd.f32 %v3433_v37, %v1265_v59  ;;  %2746 = vmatprep.mubr.msk.f32.mxu1 %vm2818_vm2, %v2817_v0  ;;  %v83_v55 = vld [vmem:[%s4546_s0 + $0x228] sm:$0xff] }
 0x101   :  { %v845_v63 = vpop.f32.mrf.mxu0  ;;  %2492 = vmatmul.mubr.msk.f32.gmra.mxu0 %vm192_vm1, %v77_v57  ;;  %v2601_v1 = vpop.f32.mrf.mxu1 }
 0x102   :  { %1797 = vst [vmem:[%s4548_s3 + $0x70] sm:$0xff] %v1628_v60  ;;  %v1713_v2 = vmax.f32 %v1266_v61, 0.0  ;;  %v846_v3 = vadd.f32 %v3433_v37, %v845_v63  ;;  %2494 = vmatprep.mubr.msk.f32.mxu0 %vm2818_vm2, %v2817_v0  ;;  %v168_v60 = vld [vmem:[%s4546_s0 + $0x4d0] sm:$0xff] }
 0x103   :  { %v2349_v5 = vpop.f32.mrf.mxu0  ;;  %v1270_v6 = vpop.f32.mrf.mxu1  ;;  %2747 = vmatmul.mubr.msk.f32.gmra.mxu1 %vm192_vm1, %v162_v62 }
 0x104   :  { %1882 = vst [vmem:[%s4548_s3 + $0x318] sm:$0xff] %v1713_v2  ;;  %v1629_v7 = vmax.f32 %v846_v3, 0.0  ;;  %v1271_v8 = vadd.f32 %v3433_v37, %v1270_v6  ;;  %2749 = vmatprep.mubr.msk.f32.mxu1 %vm2818_vm2, %v2817_v0  ;;  %v84_v2 = vld [vmem:[%s4546_s0 + $0x230] sm:$0xff] }
 0x105   :  { %v850_v10 = vpop.f32.mrf.mxu0  ;;  %2495 = vmatmul.mubr.msk.f32.gmra.mxu0 %vm192_vm1, %v78_v4  ;;  %v2604_v11 = vpop.f32.mrf.mxu1 }
 0x106   :  { %1798 = vst [vmem:[%s4548_s3 + $0x78] sm:$0xff] %v1629_v7  ;;  %v1714_v12 = vmax.f32 %v1271_v8, 0.0  ;;  %v851_v13 = vadd.f32 %v3433_v37, %v850_v10  ;;  %2497 = vmatprep.mubr.msk.f32.mxu0 %vm2818_vm2, %v2817_v0  ;;  %v169_v7 = vld [vmem:[%s4546_s0 + $0x4d8] sm:$0xff] }
 0x107   :  { %v2352_v15 = vpop.f32.mrf.mxu0  ;;  %v1275_v16 = vpop.f32.mrf.mxu1  ;;  %2750 = vmatmul.mubr.msk.f32.gmra.mxu1 %vm192_vm1, %v163_v9 }
 0x108   :  { %1883 = vst [vmem:[%s4548_s3 + $0x320] sm:$0xff] %v1714_v12  ;;  %v1630_v17 = vmax.f32 %v851_v13, 0.0  ;;  %v1276_v18 = vadd.f32 %v3433_v37, %v1275_v16  ;;  %2752 = vmatprep.mubr.msk.f32.mxu1 %vm2818_vm2, %v2817_v0  ;;  %v85_v12 = vld [vmem:[%s4546_s0 + $0x238] sm:$0xff] }
 0x109   :  { %v855_v20 = vpop.f32.mrf.mxu0  ;;  %2498 = vmatmul.mubr.msk.f32.gmra.mxu0 %vm192_vm1, %v79_v14  ;;  %v2607_v21 = vpop.f32.mrf.mxu1 }
 0x10a   :  { %1799 = vst [vmem:[%s4548_s3 + $0x80] sm:$0xff] %v1630_v17  ;;  %v1715_v22 = vmax.f32 %v1276_v18, 0.0  ;;  %v856_v23 = vadd.f32 %v3433_v37, %v855_v20  ;;  %2500 = vmatprep.mubr.msk.f32.mxu0 %vm2818_vm2, %v2817_v0  ;;  %v170_v17 = vld [vmem:[%s4546_s0 + $0x4e0] sm:$0xff] }
 0x10b   :  { %v2355_v25 = vpop.f32.mrf.mxu0  ;;  %v1280_v26 = vpop.f32.mrf.mxu1  ;;  %2753 = vmatmul.mubr.msk.f32.gmra.mxu1 %vm192_vm1, %v164_v19 }
 0x10c   :  { %1884 = vst [vmem:[%s4548_s3 + $0x328] sm:$0xff] %v1715_v22  ;;  %v1631_v27 = vmax.f32 %v856_v23, 0.0  ;;  %v1281_v28 = vadd.f32 %v3433_v37, %v1280_v26  ;;  %2755 = vmatprep.mubr.msk.f32.mxu1 %vm2818_vm2, %v2817_v0  ;;  %v86_v22 = vld [vmem:[%s4546_s0 + $0x240] sm:$0xff] }
 0x10d   :  { %v860_v30 = vpop.f32.mrf.mxu0  ;;  %2501 = vmatmul.mubr.msk.f32.gmra.mxu0 %vm192_vm1, %v80_v24  ;;  %v2610_v31 = vpop.f32.mrf.mxu1 }
 0x10e   :  { %1800 = vst [vmem:[%s4548_s3 + $0x88] sm:$0xff] %v1631_v27  ;;  %v1716_v32 = vmax.f32 %v1281_v28, 0.0  ;;  %v861_v33 = vadd.f32 %v3433_v37, %v860_v30  ;;  %2503 = vmatprep.mubr.msk.f32.mxu0 %vm2818_vm2, %v2817_v0  ;;  %v171_v27 = vld [vmem:[%s4546_s0 + $0x4e8] sm:$0xff] }
 0x10f   :  { %v2358_v35 = vpop.f32.mrf.mxu0  ;;  %v1285_v36 = vpop.f32.mrf.mxu1  ;;  %2756 = vmatmul.mubr.msk.f32.gmra.mxu1 %vm192_vm1, %v165_v29 }
 0x110   :  { %1885 = vst [vmem:[%s4548_s3 + $0x330] sm:$0xff] %v1716_v32  ;;  %v1632_v38 = vmax.f32 %v861_v33, 0.0  ;;  %v1286_v39 = vadd.f32 %v3433_v37, %v1285_v36  ;;  %2758 = vmatprep.mubr.msk.f32.mxu1 %vm2818_vm2, %v2817_v0  ;;  %v87_v32 = vld [vmem:[%s4546_s0 + $0x248] sm:$0xff] }
 0x111   :  { %v865_v41 = vpop.f32.mrf.mxu0  ;;  %2504 = vmatmul.mubr.msk.f32.gmra.mxu0 %vm192_vm1, %v81_v34  ;;  %v2613_v42 = vpop.f32.mrf.mxu1 }
 0x112   :  { %1801 = vst [vmem:[%s4548_s3 + $0x90] sm:$0xff] %v1632_v38  ;;  %v1717_v43 = vmax.f32 %v1286_v39, 0.0  ;;  %v866_v44 = vadd.f32 %v3433_v37, %v865_v41  ;;  %2506 = vmatprep.mubr.msk.f32.mxu0 %vm2818_vm2, %v2817_v0  ;;  %v172_v38 = vld [vmem:[%s4546_s0 + $0x4f0] sm:$0xff] }
 0x113   :  { %v2361_v46 = vpop.f32.mrf.mxu0  ;;  %v1290_v47 = vpop.f32.mrf.mxu1  ;;  %2759 = vmatmul.mubr.msk.f32.gmra.mxu1 %vm192_vm1, %v166_v40 }
 0x114   :  { %1886 = vst [vmem:[%s4548_s3 + $0x338] sm:$0xff] %v1717_v43  ;;  %v1633_v48 = vmax.f32 %v866_v44, 0.0  ;;  %v1291_v49 = vadd.f32 %v3433_v37, %v1290_v47  ;;  %2761 = vmatprep.mubr.msk.f32.mxu1 %vm2818_vm2, %v2817_v0  ;;  %v88_v43 = vld [vmem:[%s4546_s0 + $0x250] sm:$0xff] }
 0x115   :  { %v870_v51 = vpop.f32.mrf.mxu0  ;;  %2507 = vmatmul.mubr.msk.f32.gmra.mxu0 %vm192_vm1, %v82_v45  ;;  %v2616_v52 = vpop.f32.mrf.mxu1 }
 0x116   :  { %1802 = vst [vmem:[%s4548_s3 + $0x98] sm:$0xff] %v1633_v48  ;;  %v1718_v53 = vmax.f32 %v1291_v49, 0.0  ;;  %v871_v54 = vadd.f32 %v3433_v37, %v870_v51  ;;  %2509 = vmatprep.mubr.msk.f32.mxu0 %vm2818_vm2, %v2817_v0  ;;  %v173_v48 = vld [vmem:[%s4546_s0 + $0x4f8] sm:$0xff] }
 0x117   :  { %v2364_v56 = vpop.f32.mrf.mxu0  ;;  %v1295_v57 = vpop.f32.mrf.mxu1  ;;  %2762 = vmatmul.mubr.msk.f32.gmra.mxu1 %vm192_vm1, %v167_v50 }
 0x118   :  { %1887 = vst [vmem:[%s4548_s3 + $0x340] sm:$0xff] %v1718_v53  ;;  %v1634_v58 = vmax.f32 %v871_v54, 0.0  ;;  %v1296_v59 = vadd.f32 %v3433_v37, %v1295_v57  ;;  %2764 = vmatprep.mubr.msk.f32.mxu1 %vm2818_vm2, %v2817_v0  ;;  %v89_v53 = vld [vmem:[%s4546_s0 + $0x258] sm:$0xff] }
 0x119   :  { %v875_v61 = vpop.f32.mrf.mxu0  ;;  %2510 = vmatmul.mubr.msk.f32.gmra.mxu0 %vm192_vm1, %v83_v55  ;;  %v2619_v62 = vpop.f32.mrf.mxu1 }
 0x11a   :  { %1803 = vst [vmem:[%s4548_s3 + $0xa0] sm:$0xff] %v1634_v58  ;;  %v1719_v63 = vmax.f32 %v1296_v59, 0.0  ;;  %v876_v1 = vadd.f32 %v3433_v37, %v875_v61  ;;  %2512 = vmatprep.mubr.msk.f32.mxu0 %vm2818_vm2, %v2817_v0  ;;  %v174_v58 = vld [vmem:[%s4546_s0 + $0x500] sm:$0xff] }
 0x11b   :  { %v2367_v3 = vpop.f32.mrf.mxu0  ;;  %v1300_v4 = vpop.f32.mrf.mxu1  ;;  %2765 = vmatmul.mubr.msk.f32.gmra.mxu1 %vm192_vm1, %v168_v60 }
 0x11c   :  { %1888 = vst [vmem:[%s4548_s3 + $0x348] sm:$0xff] %v1719_v63  ;;  %v1635_v5 = vmax.f32 %v876_v1, 0.0  ;;  %v1301_v6 = vadd.f32 %v3433_v37, %v1300_v4  ;;  %2767 = vmatprep.mubr.msk.f32.mxu1 %vm2818_vm2, %v2817_v0  ;;  %v90_v63 = vld [vmem:[%s4546_s0 + $0x260] sm:$0xff] }
 0x11d   :  { %v880_v8 = vpop.f32.mrf.mxu0  ;;  %2513 = vmatmul.mubr.msk.f32.gmra.mxu0 %vm192_vm1, %v84_v2  ;;  %v2622_v9 = vpop.f32.mrf.mxu1 }
 0x11e   :  { %1804 = vst [vmem:[%s4548_s3 + $0xa8] sm:$0xff] %v1635_v5  ;;  %v1720_v10 = vmax.f32 %v1301_v6, 0.0  ;;  %v881_v11 = vadd.f32 %v3433_v37, %v880_v8  ;;  %2515 = vmatprep.mubr.msk.f32.mxu0 %vm2818_vm2, %v2817_v0  ;;  %v175_v5 = vld [vmem:[%s4546_s0 + $0x508] sm:$0xff] }
 0x11f   :  { %v2370_v13 = vpop.f32.mrf.mxu0  ;;  %v1305_v14 = vpop.f32.mrf.mxu1  ;;  %2768 = vmatmul.mubr.msk.f32.gmra.mxu1 %vm192_vm1, %v169_v7 }
 0x120   :  { %1889 = vst [vmem:[%s4548_s3 + $0x350] sm:$0xff] %v1720_v10  ;;  %v1636_v15 = vmax.f32 %v881_v11, 0.0  ;;  %v1306_v16 = vadd.f32 %v3433_v37, %v1305_v14  ;;  %2770 = vmatprep.mubr.msk.f32.mxu1 %vm2818_vm2, %v2817_v0  ;;  %v91_v10 = vld [vmem:[%s4546_s0 + $0x268] sm:$0xff] }
 0x121   :  { %v885_v18 = vpop.f32.mrf.mxu0  ;;  %2516 = vmatmul.mubr.msk.f32.gmra.mxu0 %vm192_vm1, %v85_v12  ;;  %v2625_v19 = vpop.f32.mrf.mxu1 }
 0x122   :  { %1805 = vst [vmem:[%s4548_s3 + $0xb0] sm:$0xff] %v1636_v15  ;;  %v1721_v20 = vmax.f32 %v1306_v16, 0.0  ;;  %v886_v21 = vadd.f32 %v3433_v37, %v885_v18  ;;  %2518 = vmatprep.mubr.msk.f32.mxu0 %vm2818_vm2, %v2817_v0  ;;  %v176_v15 = vld [vmem:[%s4546_s0 + $0x510] sm:$0xff] }
 0x123   :  { %v2373_v23 = vpop.f32.mrf.mxu0  ;;  %v1310_v24 = vpop.f32.mrf.mxu1  ;;  %2771 = vmatmul.mubr.msk.f32.gmra.mxu1 %vm192_vm1, %v170_v17 }
 0x124   :  { %1890 = vst [vmem:[%s4548_s3 + $0x358] sm:$0xff] %v1721_v20  ;;  %v1637_v25 = vmax.f32 %v886_v21, 0.0  ;;  %v1311_v26 = vadd.f32 %v3433_v37, %v1310_v24  ;;  %2773 = vmatprep.mubr.msk.f32.mxu1 %vm2818_vm2, %v2817_v0  ;;  %v92_v20 = vld [vmem:[%s4546_s0 + $0x270] sm:$0xff] }
 0x125   :  { %v890_v28 = vpop.f32.mrf.mxu0  ;;  %2519 = vmatmul.mubr.msk.f32.gmra.mxu0 %vm192_vm1, %v86_v22  ;;  %v2628_v29 = vpop.f32.mrf.mxu1 }
 0x126   :  { %1806 = vst [vmem:[%s4548_s3 + $0xb8] sm:$0xff] %v1637_v25  ;;  %v1722_v30 = vmax.f32 %v1311_v26, 0.0  ;;  %v891_v31 = vadd.f32 %v3433_v37, %v890_v28  ;;  %2521 = vmatprep.mubr.msk.f32.mxu0 %vm2818_vm2, %v2817_v0  ;;  %v177_v25 = vld [vmem:[%s4546_s0 + $0x518] sm:$0xff] }
 0x127   :  { %v2376_v33 = vpop.f32.mrf.mxu0  ;;  %v1315_v34 = vpop.f32.mrf.mxu1  ;;  %2774 = vmatmul.mubr.msk.f32.gmra.mxu1 %vm192_vm1, %v171_v27 }
 0x128   :  { %1891 = vst [vmem:[%s4548_s3 + $0x360] sm:$0xff] %v1722_v30  ;;  %v1638_v35 = vmax.f32 %v891_v31, 0.0  ;;  %v1316_v36 = vadd.f32 %v3433_v37, %v1315_v34  ;;  %2776 = vmatprep.mubr.msk.f32.mxu1 %vm2818_vm2, %v2817_v0  ;;  %v93_v30 = vld [vmem:[%s4546_s0 + $0x278] sm:$0xff] }
 0x129   :  { %v895_v39 = vpop.f32.mrf.mxu0  ;;  %2522 = vmatmul.mubr.msk.f32.gmra.mxu0 %vm192_vm1, %v87_v32  ;;  %v2631_v40 = vpop.f32.mrf.mxu1 }
 0x12a   :  { %1807 = vst [vmem:[%s4548_s3 + $0xc0] sm:$0xff] %v1638_v35  ;;  %v1723_v41 = vmax.f32 %v1316_v36, 0.0  ;;  %v896_v42 = vadd.f32 %v3433_v37, %v895_v39  ;;  %2524 = vmatprep.mubr.msk.f32.mxu0 %vm2818_vm2, %v2817_v0  ;;  %v178_v35 = vld [vmem:[%s4546_s0 + $0x520] sm:$0xff] }
 0x12b   :  { %v2379_v44 = vpop.f32.mrf.mxu0  ;;  %v1320_v45 = vpop.f32.mrf.mxu1  ;;  %2777 = vmatmul.mubr.msk.f32.gmra.mxu1 %vm192_vm1, %v172_v38 }
 0x12c   :  { %1892 = vst [vmem:[%s4548_s3 + $0x368] sm:$0xff] %v1723_v41  ;;  %v1639_v46 = vmax.f32 %v896_v42, 0.0  ;;  %v1321_v47 = vadd.f32 %v3433_v37, %v1320_v45  ;;  %2779 = vmatprep.mubr.msk.f32.mxu1 %vm2818_vm2, %v2817_v0  ;;  %v94_v41 = vld [vmem:[%s4546_s0 + $0x280] sm:$0xff] }
 0x12d   :  { %v900_v49 = vpop.f32.mrf.mxu0  ;;  %2525 = vmatmul.mubr.msk.f32.gmra.mxu0 %vm192_vm1, %v88_v43  ;;  %v2634_v50 = vpop.f32.mrf.mxu1 }
 0x12e   :  { %1808 = vst [vmem:[%s4548_s3 + $0xc8] sm:$0xff] %v1639_v46  ;;  %v1724_v51 = vmax.f32 %v1321_v47, 0.0  ;;  %v901_v52 = vadd.f32 %v3433_v37, %v900_v49  ;;  %2527 = vmatprep.mubr.msk.f32.mxu0 %vm2818_vm2, %v2817_v0  ;;  %v179_v46 = vld [vmem:[%s4546_s0 + $0x528] sm:$0xff] }
 0x12f   :  { %v2382_v54 = vpop.f32.mrf.mxu0  ;;  %v1325_v55 = vpop.f32.mrf.mxu1  ;;  %2780 = vmatmul.mubr.msk.f32.gmra.mxu1 %vm192_vm1, %v173_v48 }
 0x130   :  { %1893 = vst [vmem:[%s4548_s3 + $0x370] sm:$0xff] %v1724_v51  ;;  %v1640_v56 = vmax.f32 %v901_v52, 0.0  ;;  %v1326_v57 = vadd.f32 %v3433_v37, %v1325_v55  ;;  %2782 = vmatprep.mubr.msk.f32.mxu1 %vm2818_vm2, %v2817_v0  ;;  %v95_v51 = vld [vmem:[%s4546_s0 + $0x288] sm:$0xff] }
 0x131   :  { %v905_v59 = vpop.f32.mrf.mxu0  ;;  %2528 = vmatmul.mubr.msk.f32.gmra.mxu0 %vm192_vm1, %v89_v53  ;;  %v2637_v60 = vpop.f32.mrf.mxu1 }
 0x132   :  { %1809 = vst [vmem:[%s4548_s3 + $0xd0] sm:$0xff] %v1640_v56  ;;  %v1725_v61 = vmax.f32 %v1326_v57, 0.0  ;;  %v906_v62 = vadd.f32 %v3433_v37, %v905_v59  ;;  %2530 = vmatprep.mubr.msk.f32.mxu0 %vm2818_vm2, %v2817_v0  ;;  %v180_v56 = vld [vmem:[%s4546_s0 + $0x530] sm:$0xff] }
 0x133   :  { %v2385_v1 = vpop.f32.mrf.mxu0  ;;  %v1330_v2 = vpop.f32.mrf.mxu1  ;;  %2783 = vmatmul.mubr.msk.f32.gmra.mxu1 %vm192_vm1, %v174_v58 }
 0x134   :  { %1894 = vst [vmem:[%s4548_s3 + $0x378] sm:$0xff] %v1725_v61  ;;  %v1641_v3 = vmax.f32 %v906_v62, 0.0  ;;  %v1331_v4 = vadd.f32 %v3433_v37, %v1330_v2  ;;  %2785 = vmatprep.mubr.msk.f32.mxu1 %vm2818_vm2, %v2817_v0  ;;  %v96_v61 = vld [vmem:[%s4546_s0 + $0x290] sm:$0xff] }
 0x135   :  { %v910_v6 = vpop.f32.mrf.mxu0  ;;  %2531 = vmatmul.mubr.msk.f32.gmra.mxu0 %vm192_vm1, %v90_v63  ;;  %v2640_v7 = vpop.f32.mrf.mxu1 }
 0x136   :  { %1810 = vst [vmem:[%s4548_s3 + $0xd8] sm:$0xff] %v1641_v3  ;;  %v1726_v8 = vmax.f32 %v1331_v4, 0.0  ;;  %v911_v9 = vadd.f32 %v3433_v37, %v910_v6  ;;  %2533 = vmatprep.mubr.msk.f32.mxu0 %vm2818_vm2, %v2817_v0  ;;  %v181_v3 = vld [vmem:[%s4546_s0 + $0x538] sm:$0xff] }
 0x137   :  { %v2388_v11 = vpop.f32.mrf.mxu0  ;;  %v1335_v12 = vpop.f32.mrf.mxu1  ;;  %2786 = vmatmul.mubr.msk.f32.gmra.mxu1 %vm192_vm1, %v175_v5 }
 0x138   :  { %1895 = vst [vmem:[%s4548_s3 + $0x380] sm:$0xff] %v1726_v8  ;;  %v1642_v13 = vmax.f32 %v911_v9, 0.0  ;;  %v1336_v14 = vadd.f32 %v3433_v37, %v1335_v12  ;;  %2788 = vmatprep.mubr.msk.f32.mxu1 %vm2818_vm2, %v2817_v0  ;;  %v97_v8 = vld [vmem:[%s4546_s0 + $0x298] sm:$0xff] }
 0x139   :  { %v915_v16 = vpop.f32.mrf.mxu0  ;;  %2534 = vmatmul.mubr.msk.f32.gmra.mxu0 %vm192_vm1, %v91_v10  ;;  %v2643_v17 = vpop.f32.mrf.mxu1 }
 0x13a   :  { %1811 = vst [vmem:[%s4548_s3 + $0xe0] sm:$0xff] %v1642_v13  ;;  %v1727_v18 = vmax.f32 %v1336_v14, 0.0  ;;  %v916_v19 = vadd.f32 %v3433_v37, %v915_v16  ;;  %2536 = vmatprep.mubr.msk.f32.mxu0 %vm2818_vm2, %v2817_v0  ;;  %v182_v13 = vld [vmem:[%s4546_s0 + $0x540] sm:$0xff] }
 0x13b   :  { %v2391_v21 = vpop.f32.mrf.mxu0  ;;  %v1340_v22 = vpop.f32.mrf.mxu1  ;;  %2789 = vmatmul.mubr.msk.f32.gmra.mxu1 %vm192_vm1, %v176_v15 }
 0x13c   :  { %1896 = vst [vmem:[%s4548_s3 + $0x388] sm:$0xff] %v1727_v18  ;;  %v1643_v23 = vmax.f32 %v916_v19, 0.0  ;;  %v1341_v24 = vadd.f32 %v3433_v37, %v1340_v22  ;;  %2791 = vmatprep.mubr.msk.f32.mxu1 %vm2818_vm2, %v2817_v0  ;;  %v98_v18 = vld [vmem:[%s4546_s0 + $0x2a0] sm:$0xff] }
 0x13d   :  { %v920_v26 = vpop.f32.mrf.mxu0  ;;  %2537 = vmatmul.mubr.msk.f32.gmra.mxu0 %vm192_vm1, %v92_v20  ;;  %v2646_v27 = vpop.f32.mrf.mxu1 }
 0x13e   :  { %1812 = vst [vmem:[%s4548_s3 + $0xe8] sm:$0xff] %v1643_v23  ;;  %v1728_v28 = vmax.f32 %v1341_v24, 0.0  ;;  %v921_v29 = vadd.f32 %v3433_v37, %v920_v26  ;;  %2539 = vmatprep.mubr.msk.f32.mxu0 %vm2818_vm2, %v2817_v0 }
 0x13f   :  { %v2394_v31 = vpop.f32.mrf.mxu0  ;;  %v1345_v32 = vpop.f32.mrf.mxu1  ;;  %2792 = vmatmul.mubr.msk.f32.gmra.mxu1 %vm192_vm1, %v177_v25 }
 0x140   :  { %1897 = vst [vmem:[%s4548_s3 + $0x390] sm:$0xff] %v1728_v28  ;;  %v1644_v33 = vmax.f32 %v921_v29, 0.0  ;;  %v1346_v34 = vadd.f32 %v3433_v37, %v1345_v32  ;;  %2794 = vmatprep.mubr.msk.f32.mxu1 %vm2818_vm2, %v2817_v0 }
 0x141   :  { %v925_v36 = vpop.f32.mrf.mxu0  ;;  %2540 = vmatmul.mubr.msk.f32.gmra.mxu0 %vm192_vm1, %v93_v30  ;;  %v2649_v38 = vpop.f32.mrf.mxu1 }
 0x142   :  { %1813 = vst [vmem:[%s4548_s3 + $0xf0] sm:$0xff] %v1644_v33  ;;  %v1729_v39 = vmax.f32 %v1346_v34, 0.0  ;;  %v926_v40 = vadd.f32 %v3433_v37, %v925_v36  ;;  %2542 = vmatprep.mubr.msk.f32.mxu0 %vm2818_vm2, %v2817_v0 }
 0x143   :  { %v2397_v42 = vpop.f32.mrf.mxu0  ;;  %v1350_v43 = vpop.f32.mrf.mxu1  ;;  %2795 = vmatmul.mubr.msk.f32.gmra.mxu1 %vm192_vm1, %v178_v35 }
 0x144   :  { %1898 = vst [vmem:[%s4548_s3 + $0x398] sm:$0xff] %v1729_v39  ;;  %v1645_v44 = vmax.f32 %v926_v40, 0.0  ;;  %v1351_v45 = vadd.f32 %v3433_v37, %v1350_v43  ;;  %2797 = vmatprep.mubr.msk.f32.mxu1 %vm2818_vm2, %v2817_v0  ;;  %v4081_v37 = vld [vmem:[%s4547_s2] ss:$0 sm:$0xff] }
 0x145   :  { %v930_v47 = vpop.f32.mrf.mxu0  ;;  %2543 = vmatmul.mubr.msk.f32.gmra.mxu0 %vm192_vm1, %v94_v41  ;;  %v2652_v48 = vpop.f32.mrf.mxu1 }
 0x146   :  { %1814 = vst [vmem:[%s4548_s3 + $0xf8] sm:$0xff] %v1645_v44  ;;  %v1730_v49 = vmax.f32 %v1351_v45, 0.0  ;;  %v931_v50 = vadd.f32 %v4081_v37, %v930_v47  ;;  %2545 = vmatprep.mubr.msk.f32.mxu0 %vm2818_vm2, %v2817_v0 }
 0x147   :  { %v2400_v52 = vpop.f32.mrf.mxu0  ;;  %v1355_v53 = vpop.f32.mrf.mxu1  ;;  %2798 = vmatmul.mubr.msk.f32.gmra.mxu1 %vm192_vm1, %v179_v46 }
 0x148   :  { %1899 = vst [vmem:[%s4548_s3 + $0x3a0] sm:$0xff] %v1730_v49  ;;  %v1646_v54 = vmax.f32 %v931_v50, 0.0  ;;  %v1356_v55 = vadd.f32 %v4081_v37, %v1355_v53  ;;  %2800 = vmatprep.mubr.msk.f32.mxu1 %vm2818_vm2, %v2817_v0 }
 0x149   :  { %v935_v57 = vpop.f32.mrf.mxu0  ;;  %2546 = vmatmul.mubr.msk.f32.gmra.mxu0 %vm192_vm1, %v95_v51  ;;  %v2655_v58 = vpop.f32.mrf.mxu1 }
 0x14a   :  { %1815 = vst [vmem:[%s4548_s3 + $0x100] sm:$0xff] %v1646_v54  ;;  %v1731_v59 = vmax.f32 %v1356_v55, 0.0  ;;  %v936_v60 = vadd.f32 %v4081_v37, %v935_v57  ;;  %2548 = vmatprep.mubr.msk.f32.mxu0 %vm2818_vm2, %v2817_v0 }
 0x14b   :  { %v2403_v62 = vpop.f32.mrf.mxu0  ;;  %v1360_v63 = vpop.f32.mrf.mxu1  ;;  %2801 = vmatmul.mubr.msk.f32.gmra.mxu1 %vm192_vm1, %v180_v56 }
 0x14c   :  { %1900 = vst [vmem:[%s4548_s3 + $0x3a8] sm:$0xff] %v1731_v59  ;;  %v1647_v1 = vmax.f32 %v936_v60, 0.0  ;;  %v1361_v2 = vadd.f32 %v4081_v37, %v1360_v63  ;;  %2803 = vmatprep.mubr.msk.f32.mxu1 %vm2818_vm2, %v2817_v0 }
 0x14d   :  { %v940_v4 = vpop.f32.mrf.mxu0  ;;  %2549 = vmatmul.mubr.msk.f32.gmra.mxu0 %vm192_vm1, %v96_v61  ;;  %v2658_v5 = vpop.f32.mrf.mxu1 }
 0x14e   :  { %1816 = vst [vmem:[%s4548_s3 + $0x108] sm:$0xff] %v1647_v1  ;;  %v1732_v6 = vmax.f32 %v1361_v2, 0.0  ;;  %v941_v7 = vadd.f32 %v4081_v37, %v940_v4  ;;  %2551 = vmatprep.mubr.msk.f32.mxu0 %vm2818_vm2, %v2817_v0 }
 0x14f   :  { %v2406_v9 = vpop.f32.mrf.mxu0  ;;  %v1365_v10 = vpop.f32.mrf.mxu1  ;;  %2804 = vmatmul.mubr.msk.f32.gmra.mxu1 %vm192_vm1, %v181_v3 }
 0x150   :  { %1901 = vst [vmem:[%s4548_s3 + $0x3b0] sm:$0xff] %v1732_v6  ;;  %v1648_v11 = vmax.f32 %v941_v7, 0.0  ;;  %v1366_v12 = vadd.f32 %v4081_v37, %v1365_v10  ;;  %2806 = vmatprep.mubr.msk.f32.mxu1 %vm2818_vm2, %v2817_v0 }
 0x151   :  { %v945_v14 = vpop.f32.mrf.mxu0  ;;  %2552 = vmatmul.mubr.msk.f32.gmra.mxu0 %vm192_vm1, %v97_v8  ;;  %v2661_v15 = vpop.f32.mrf.mxu1 }
 0x152   :  { %1817 = vst [vmem:[%s4548_s3 + $0x110] sm:$0xff] %v1648_v11  ;;  %v1733_v16 = vmax.f32 %v1366_v12, 0.0  ;;  %v946_v17 = vadd.f32 %v4081_v37, %v945_v14  ;;  %2554 = vmatprep.mubr.msk.f32.mxu0 %vm2818_vm2, %v2817_v0 }
 0x153   :  { %v2409_v19 = vpop.f32.mrf.mxu0  ;;  %v1370_v20 = vpop.f32.mrf.mxu1  ;;  %2807 = vmatmul.mubr.msk.f32.gmra.mxu1 %vm192_vm1, %v182_v13 }
 0x154   :  { %1902 = vst [vmem:[%s4548_s3 + $0x3b8] sm:$0xff] %v1733_v16  ;;  %v1649_v21 = vmax.f32 %v946_v17, 0.0  ;;  %v1371_v22 = vadd.f32 %v4081_v37, %v1370_v20 }
 0x155   :  { %v950_v23 = vpop.f32.mrf.mxu0  ;;  %2555 = vmatmul.mubr.msk.f32.gmra.mxu0 %vm192_vm1, %v98_v18  ;;  %v2664_v24 = vpop.f32.mrf.mxu1 }
 0x156   :  { %1818 = vst [vmem:[%s4548_s3 + $0x118] sm:$0xff] %v1649_v21  ;;  %v1734_v0 = vmax.f32 %v1371_v22, 0.0  ;;  %v951_v25 = vadd.f32 %v4081_v37, %v950_v23 }
 0x157   :  { %v2412_v26 = vpop.f32.mrf.mxu0  ;;  %v1375_v27 = vpop.f32.mrf.mxu1 }
 0x158   :  { %1903 = vst [vmem:[%s4548_s3 + $0x3c0] sm:$0xff] %v1734_v0  ;;  %v1650_v28 = vmax.f32 %v951_v25, 0.0  ;;  %v1376_v29 = vadd.f32 %v4081_v37, %v1375_v27 }
 0x159   :  { %v955_v30 = vpop.f32.mrf.mxu0  ;;  %v2667_v31 = vpop.f32.mrf.mxu1 }
 0x15a   :  { %1819 = vst [vmem:[%s4548_s3 + $0x120] sm:$0xff] %v1650_v28  ;;  %v1735_v32 = vmax.f32 %v1376_v29, 0.0  ;;  %v956_v33 = vadd.f32 %v4081_v37, %v955_v30 }
 0x15b   :  { %v2415_v34 = vpop.f32.mrf.mxu0  ;;  %v1380_v35 = vpop.f32.mrf.mxu1 }
 0x15c   :  { %1904 = vst [vmem:[%s4548_s3 + $0x3c8] sm:$0xff] %v1735_v32  ;;  %v1651_v36 = vmax.f32 %v956_v33, 0.0  ;;  %v1381_v38 = vadd.f32 %v4081_v37, %v1380_v35 }
 0x15d   :  { %v960_v39 = vpop.f32.mrf.mxu0  ;;  %v2670_v40 = vpop.f32.mrf.mxu1 }
 0x15e   :  { %1820 = vst [vmem:[%s4548_s3 + $0x128] sm:$0xff] %v1651_v36  ;;  %v1736_v41 = vmax.f32 %v1381_v38, 0.0  ;;  %v961_v42 = vadd.f32 %v4081_v37, %v960_v39 }
 0x15f   :  { %v2418_v43 = vpop.f32.mrf.mxu0  ;;  %v1385_v44 = vpop.f32.mrf.mxu1 }
 0x160   :  { %1905 = vst [vmem:[%s4548_s3 + $0x3d0] sm:$0xff] %v1736_v41  ;;  %v1652_v45 = vmax.f32 %v961_v42, 0.0  ;;  %v1386_v46 = vadd.f32 %v4081_v37, %v1385_v44 }
 0x161   :  { %v965_v47 = vpop.f32.mrf.mxu0  ;;  %v2673_v48 = vpop.f32.mrf.mxu1 }
 0x162   :  { %1821 = vst [vmem:[%s4548_s3 + $0x130] sm:$0xff] %v1652_v45  ;;  %v1737_v49 = vmax.f32 %v1386_v46, 0.0  ;;  %v966_v50 = vadd.f32 %v4081_v37, %v965_v47 }
 0x163   :  { %v2421_v51 = vpop.f32.mrf.mxu0  ;;  %v1390_v52 = vpop.f32.mrf.mxu1 }
 0x164   :  { %1906 = vst [vmem:[%s4548_s3 + $0x3d8] sm:$0xff] %v1737_v49  ;;  %v1653_v53 = vmax.f32 %v966_v50, 0.0  ;;  %v1391_v54 = vadd.f32 %v4081_v37, %v1390_v52 }
 0x165   :  { %v970_v55 = vpop.f32.mrf.mxu0  ;;  %v2676_v56 = vpop.f32.mrf.mxu1 }
 0x166   :  { %1822 = vst [vmem:[%s4548_s3 + $0x138] sm:$0xff] %v1653_v53  ;;  %v1738_v57 = vmax.f32 %v1391_v54, 0.0  ;;  %v971_v58 = vadd.f32 %v4081_v37, %v970_v55 }
 0x167   :  { %v2424_v59 = vpop.f32.mrf.mxu0  ;;  %v1395_v60 = vpop.f32.mrf.mxu1 }
 0x168   :  { %1907 = vst [vmem:[%s4548_s3 + $0x3e0] sm:$0xff] %v1738_v57  ;;  %v1654_v61 = vmax.f32 %v971_v58, 0.0  ;;  %v1396_v62 = vadd.f32 %v4081_v37, %v1395_v60 }
 0x169   :  { %v975_v63 = vpop.f32.mrf.mxu0  ;;  %v2679_v1 = vpop.f32.mrf.mxu1 }
 0x16a   :  { %1823 = vst [vmem:[%s4548_s3 + $0x140] sm:$0xff] %v1654_v61  ;;  %v1739_v2 = vmax.f32 %v1396_v62, 0.0  ;;  %v976_v3 = vadd.f32 %v4081_v37, %v975_v63 }
 0x16b   :  { %v2427_v4 = vpop.f32.mrf.mxu0  ;;  %v1400_v5 = vpop.f32.mrf.mxu1 }
 0x16c   :  { %1908 = vst [vmem:[%s4548_s3 + $0x3e8] sm:$0xff] %v1739_v2  ;;  %v1655_v6 = vmax.f32 %v976_v3, 0.0  ;;  %v1401_v7 = vadd.f32 %v4081_v37, %v1400_v5 }
 0x16d   :  { %v980_v8 = vpop.f32.mrf.mxu0  ;;  %v2682_v9 = vpop.f32.mrf.mxu1 }
 0x16e   :  { %1824 = vst [vmem:[%s4548_s3 + $0x148] sm:$0xff] %v1655_v6  ;;  %v1740_v10 = vmax.f32 %v1401_v7, 0.0  ;;  %v981_v11 = vadd.f32 %v4081_v37, %v980_v8 }
 0x16f   :  { %v2430_v12 = vpop.f32.mrf.mxu0  ;;  %v1405_v13 = vpop.f32.mrf.mxu1 }
 0x170   :  { %1909 = vst [vmem:[%s4548_s3 + $0x3f0] sm:$0xff] %v1740_v10  ;;  %v1656_v14 = vmax.f32 %v981_v11, 0.0  ;;  %v1406_v15 = vadd.f32 %v4081_v37, %v1405_v13 }
 0x171   :  { %v985_v16 = vpop.f32.mrf.mxu0  ;;  %v2685_v17 = vpop.f32.mrf.mxu1 }
 0x172   :  { %1825 = vst [vmem:[%s4548_s3 + $0x150] sm:$0xff] %v1656_v14  ;;  %v1741_v18 = vmax.f32 %v1406_v15, 0.0  ;;  %v986_v19 = vadd.f32 %v4081_v37, %v985_v16 }
 0x173   :  { %v2433_v20 = vpop.f32.mrf.mxu0  ;;  %v1410_v21 = vpop.f32.mrf.mxu1 }
 0x174   :  { %1910 = vst [vmem:[%s4548_s3 + $0x3f8] sm:$0xff] %v1741_v18  ;;  %v1657_v22 = vmax.f32 %v986_v19, 0.0  ;;  %v1411_v23 = vadd.f32 %v4081_v37, %v1410_v21 }
 0x175   :  { %v990_v24 = vpop.f32.mrf.mxu0  ;;  %v2688_v0 = vpop.f32.mrf.mxu1 }
 0x176   :  { %1826 = vst [vmem:[%s4548_s3 + $0x158] sm:$0xff] %v1657_v22  ;;  %v1742_v25 = vmax.f32 %v1411_v23, 0.0  ;;  %v991_v26 = vadd.f32 %v4081_v37, %v990_v24 }
 0x177   :  { %v2436_v27 = vpop.f32.mrf.mxu0  ;;  %v1415_v28 = vpop.f32.mrf.mxu1 }
 0x178   :  { %1911 = vst [vmem:[%s4548_s3 + $0x400] sm:$0xff] %v1742_v25  ;;  %v1658_v29 = vmax.f32 %v991_v26, 0.0  ;;  %v1416_v30 = vadd.f32 %v4081_v37, %v1415_v28 }
 0x179   :  { %v995_v31 = vpop.f32.mrf.mxu0  ;;  %v2691_v32 = vpop.f32.mrf.mxu1 }
 0x17a   :  { %1827 = vst [vmem:[%s4548_s3 + $0x160] sm:$0xff] %v1658_v29  ;;  %v1743_v33 = vmax.f32 %v1416_v30, 0.0  ;;  %v996_v34 = vadd.f32 %v4081_v37, %v995_v31 }
 0x17b   :  { %v2439_v35 = vpop.f32.mrf.mxu0  ;;  %v1420_v36 = vpop.f32.mrf.mxu1 }
 0x17c   :  { %1912 = vst [vmem:[%s4548_s3 + $0x408] sm:$0xff] %v1743_v33  ;;  %v1659_v38 = vmax.f32 %v996_v34, 0.0  ;;  %v1421_v39 = vadd.f32 %v4081_v37, %v1420_v36 }
 0x17d   :  { %v1000_v40 = vpop.f32.mrf.mxu0  ;;  %v2694_v41 = vpop.f32.mrf.mxu1 }
 0x17e   :  { %1828 = vst [vmem:[%s4548_s3 + $0x168] sm:$0xff] %v1659_v38  ;;  %v1744_v42 = vmax.f32 %v1421_v39, 0.0  ;;  %v1001_v43 = vadd.f32 %v4081_v37, %v1000_v40 }
 0x17f   :  { %v2442_v44 = vpop.f32.mrf.mxu0  ;;  %v1425_v45 = vpop.f32.mrf.mxu1 }
 0x180   :  { %1913 = vst [vmem:[%s4548_s3 + $0x410] sm:$0xff] %v1744_v42  ;;  %v1660_v46 = vmax.f32 %v1001_v43, 0.0  ;;  %v1426_v47 = vadd.f32 %v4081_v37, %v1425_v45 }
 0x181   :  { %v1005_v48 = vpop.f32.mrf.mxu0  ;;  %v2697_v49 = vpop.f32.mrf.mxu1 }
 0x182   :  { %1829 = vst [vmem:[%s4548_s3 + $0x170] sm:$0xff] %v1660_v46  ;;  %v1745_v50 = vmax.f32 %v1426_v47, 0.0  ;;  %v1006_v51 = vadd.f32 %v4081_v37, %v1005_v48 }
 0x183   :  { %v2445_v52 = vpop.f32.mrf.mxu0  ;;  %v1430_v53 = vpop.f32.mrf.mxu1 }
 0x184   :  { %1914 = vst [vmem:[%s4548_s3 + $0x418] sm:$0xff] %v1745_v50  ;;  %v1661_v54 = vmax.f32 %v1006_v51, 0.0  ;;  %v1431_v55 = vadd.f32 %v4081_v37, %v1430_v53 }
 0x185   :  { %v1010_v56 = vpop.f32.mrf.mxu0  ;;  %v2700_v57 = vpop.f32.mrf.mxu1 }
 0x186   :  { %1830 = vst [vmem:[%s4548_s3 + $0x178] sm:$0xff] %v1661_v54  ;;  %v1746_v58 = vmax.f32 %v1431_v55, 0.0  ;;  %v1011_v59 = vadd.f32 %v4081_v37, %v1010_v56 }
 0x187   :  { %v2448_v60 = vpop.f32.mrf.mxu0  ;;  %v1435_v61 = vpop.f32.mrf.mxu1 }
 0x188   :  { %1915 = vst [vmem:[%s4548_s3 + $0x420] sm:$0xff] %v1746_v58  ;;  %v1662_v62 = vmax.f32 %v1011_v59, 0.0  ;;  %v1436_v63 = vadd.f32 %v4081_v37, %v1435_v61 }
 0x189   :  { %v1015_v1 = vpop.f32.mrf.mxu0  ;;  %v2703_v2 = vpop.f32.mrf.mxu1 }
 0x18a   :  { %1831 = vst [vmem:[%s4548_s3 + $0x180] sm:$0xff] %v1662_v62  ;;  %v1747_v3 = vmax.f32 %v1436_v63, 0.0  ;;  %v1016_v4 = vadd.f32 %v4081_v37, %v1015_v1 }
 0x18b   :  { %v2451_v5 = vpop.f32.mrf.mxu0  ;;  %v1440_v6 = vpop.f32.mrf.mxu1 }
 0x18c   :  { %1916 = vst [vmem:[%s4548_s3 + $0x428] sm:$0xff] %v1747_v3  ;;  %v1663_v7 = vmax.f32 %v1016_v4, 0.0  ;;  %v1441_v8 = vadd.f32 %v4081_v37, %v1440_v6 }
 0x18d   :  { %v1020_v9 = vpop.f32.mrf.mxu0  ;;  %v2706_v10 = vpop.f32.mrf.mxu1 }
 0x18e   :  { %1832 = vst [vmem:[%s4548_s3 + $0x188] sm:$0xff] %v1663_v7  ;;  %v1748_v11 = vmax.f32 %v1441_v8, 0.0  ;;  %v1021_v12 = vadd.f32 %v4081_v37, %v1020_v9 }
 0x18f   :  { %v2454_v13 = vpop.f32.mrf.mxu0  ;;  %v1445_v14 = vpop.f32.mrf.mxu1 }
 0x190   :  { %1917 = vst [vmem:[%s4548_s3 + $0x430] sm:$0xff] %v1748_v11  ;;  %v1664_v15 = vmax.f32 %v1021_v12, 0.0  ;;  %v1446_v16 = vadd.f32 %v4081_v37, %v1445_v14 }
 0x191   :  { %v1025_v17 = vpop.f32.mrf.mxu0  ;;  %v2709_v18 = vpop.f32.mrf.mxu1 }
 0x192   :  { %1833 = vst [vmem:[%s4548_s3 + $0x190] sm:$0xff] %v1664_v15  ;;  %v1749_v19 = vmax.f32 %v1446_v16, 0.0  ;;  %v1026_v20 = vadd.f32 %v4081_v37, %v1025_v17 }
 0x193   :  { %v2457_v21 = vpop.f32.mrf.mxu0  ;;  %v1450_v22 = vpop.f32.mrf.mxu1 }
 0x194   :  { %1918 = vst [vmem:[%s4548_s3 + $0x438] sm:$0xff] %v1749_v19  ;;  %v1665_v23 = vmax.f32 %v1026_v20, 0.0  ;;  %v1451_v24 = vadd.f32 %v4081_v37, %v1450_v22 }
 0x195   :  { %v1030_v0 = vpop.f32.mrf.mxu0  ;;  %v2712_v25 = vpop.f32.mrf.mxu1 }
 0x196   :  { %1834 = vst [vmem:[%s4548_s3 + $0x198] sm:$0xff] %v1665_v23  ;;  %v1750_v26 = vmax.f32 %v1451_v24, 0.0  ;;  %v1031_v27 = vadd.f32 %v4081_v37, %v1030_v0 }
 0x197   :  { %v2460_v28 = vpop.f32.mrf.mxu0  ;;  %v1455_v29 = vpop.f32.mrf.mxu1 }
 0x198   :  { %1919 = vst [vmem:[%s4548_s3 + $0x440] sm:$0xff] %v1750_v26  ;;  %v1666_v30 = vmax.f32 %v1031_v27, 0.0  ;;  %v1456_v31 = vadd.f32 %v4081_v37, %v1455_v29 }
 0x199   :  { %v1035_v32 = vpop.f32.mrf.mxu0  ;;  %v2715_v33 = vpop.f32.mrf.mxu1 }
 0x19a   :  { %1835 = vst [vmem:[%s4548_s3 + $0x1a0] sm:$0xff] %v1666_v30  ;;  %v1751_v34 = vmax.f32 %v1456_v31, 0.0  ;;  %v1036_v35 = vadd.f32 %v4081_v37, %v1035_v32 }
 0x19b   :  { %v2463_v36 = vpop.f32.mrf.mxu0  ;;  %v1460_v38 = vpop.f32.mrf.mxu1 }
 0x19c   :  { %1920 = vst [vmem:[%s4548_s3 + $0x448] sm:$0xff] %v1751_v34  ;;  %v1667_v39 = vmax.f32 %v1036_v35, 0.0  ;;  %v1461_v40 = vadd.f32 %v4081_v37, %v1460_v38 }
 0x19d   :  { %v1040_v41 = vpop.f32.mrf.mxu0  ;;  %v2718_v42 = vpop.f32.mrf.mxu1 }
 0x19e   :  { %1836 = vst [vmem:[%s4548_s3 + $0x1a8] sm:$0xff] %v1667_v39  ;;  %v1752_v43 = vmax.f32 %v1461_v40, 0.0  ;;  %v1041_v44 = vadd.f32 %v4081_v37, %v1040_v41 }
 0x19f   :  { %v2466_v45 = vpop.f32.mrf.mxu0  ;;  %v1465_v46 = vpop.f32.mrf.mxu1 }
 0x1a0   :  { %1921 = vst [vmem:[%s4548_s3 + $0x450] sm:$0xff] %v1752_v43  ;;  %v1668_v47 = vmax.f32 %v1041_v44, 0.0  ;;  %v1466_v48 = vadd.f32 %v4081_v37, %v1465_v46 }
 0x1a1   :  { %v1045_v49 = vpop.f32.mrf.mxu0  ;;  %v2721_v50 = vpop.f32.mrf.mxu1 }
 0x1a2   :  { %1837 = vst [vmem:[%s4548_s3 + $0x1b0] sm:$0xff] %v1668_v47  ;;  %v1753_v51 = vmax.f32 %v1466_v48, 0.0  ;;  %v1046_v52 = vadd.f32 %v4081_v37, %v1045_v49 }
 0x1a3   :  { %v2469_v53 = vpop.f32.mrf.mxu0  ;;  %v1470_v54 = vpop.f32.mrf.mxu1 }
 0x1a4   :  { %1922 = vst [vmem:[%s4548_s3 + $0x458] sm:$0xff] %v1753_v51  ;;  %v1669_v55 = vmax.f32 %v1046_v52, 0.0  ;;  %v1471_v56 = vadd.f32 %v4081_v37, %v1470_v54 }
 0x1a5   :  { %v1050_v57 = vpop.f32.mrf.mxu0  ;;  %v2724_v58 = vpop.f32.mrf.mxu1 }
 0x1a6   :  { %1838 = vst [vmem:[%s4548_s3 + $0x1b8] sm:$0xff] %v1669_v55  ;;  %v1754_v59 = vmax.f32 %v1471_v56, 0.0  ;;  %v1051_v60 = vadd.f32 %v4081_v37, %v1050_v57 }
 0x1a7   :  { %v2472_v61 = vpop.f32.mrf.mxu0  ;;  %v1475_v62 = vpop.f32.mrf.mxu1 }
 0x1a8   :  { %1923 = vst [vmem:[%s4548_s3 + $0x460] sm:$0xff] %v1754_v59  ;;  %v1670_v63 = vmax.f32 %v1051_v60, 0.0  ;;  %v1476_v1 = vadd.f32 %v4081_v37, %v1475_v62 }
 0x1a9   :  { %v1055_v2 = vpop.f32.mrf.mxu0  ;;  %v2727_v3 = vpop.f32.mrf.mxu1 }
 0x1aa   :  { %1839 = vst [vmem:[%s4548_s3 + $0x1c0] sm:$0xff] %v1670_v63  ;;  %v1755_v4 = vmax.f32 %v1476_v1, 0.0  ;;  %v1056_v5 = vadd.f32 %v4081_v37, %v1055_v2 }
 0x1ab   :  { %v2475_v6 = vpop.f32.mrf.mxu0  ;;  %v1480_v7 = vpop.f32.mrf.mxu1 }
 0x1ac   :  { %1924 = vst [vmem:[%s4548_s3 + $0x468] sm:$0xff] %v1755_v4  ;;  %v1671_v8 = vmax.f32 %v1056_v5, 0.0  ;;  %v1481_v9 = vadd.f32 %v4081_v37, %v1480_v7 }
 0x1ad   :  { %v1060_v10 = vpop.f32.mrf.mxu0  ;;  %v2730_v11 = vpop.f32.mrf.mxu1 }
 0x1ae   :  { %1840 = vst [vmem:[%s4548_s3 + $0x1c8] sm:$0xff] %v1671_v8  ;;  %v1756_v12 = vmax.f32 %v1481_v9, 0.0  ;;  %v1061_v13 = vadd.f32 %v4081_v37, %v1060_v10 }
 0x1af   :  { %v2478_v14 = vpop.f32.mrf.mxu0  ;;  %v1485_v15 = vpop.f32.mrf.mxu1 }
 0x1b0   :  { %1925 = vst [vmem:[%s4548_s3 + $0x470] sm:$0xff] %v1756_v12  ;;  %v1672_v16 = vmax.f32 %v1061_v13, 0.0  ;;  %v1486_v17 = vadd.f32 %v4081_v37, %v1485_v15 }
 0x1b1   :  { %v1065_v18 = vpop.f32.mrf.mxu0  ;;  %v2733_v19 = vpop.f32.mrf.mxu1 }
 0x1b2   :  { %1841 = vst [vmem:[%s4548_s3 + $0x1d0] sm:$0xff] %v1672_v16  ;;  %v1757_v20 = vmax.f32 %v1486_v17, 0.0  ;;  %v1066_v21 = vadd.f32 %v4081_v37, %v1065_v18 }
 0x1b3   :  { %v2481_v22 = vpop.f32.mrf.mxu0  ;;  %v1490_v23 = vpop.f32.mrf.mxu1 }
 0x1b4   :  { %1926 = vst [vmem:[%s4548_s3 + $0x478] sm:$0xff] %v1757_v20  ;;  %v1673_v24 = vmax.f32 %v1066_v21, 0.0  ;;  %v1491_v0 = vadd.f32 %v4081_v37, %v1490_v23 }
 0x1b5   :  { %v1070_v25 = vpop.f32.mrf.mxu0  ;;  %v2736_v26 = vpop.f32.mrf.mxu1 }
 0x1b6   :  { %1842 = vst [vmem:[%s4548_s3 + $0x1d8] sm:$0xff] %v1673_v24  ;;  %v1758_v27 = vmax.f32 %v1491_v0, 0.0  ;;  %v1071_v28 = vadd.f32 %v4081_v37, %v1070_v25 }
 0x1b7   :  { %v2484_v29 = vpop.f32.mrf.mxu0  ;;  %v1495_v30 = vpop.f32.mrf.mxu1 }
 0x1b8   :  { %1927 = vst [vmem:[%s4548_s3 + $0x480] sm:$0xff] %v1758_v27  ;;  %v1674_v31 = vmax.f32 %v1071_v28, 0.0  ;;  %v1496_v32 = vadd.f32 %v4081_v37, %v1495_v30 }
 0x1b9   :  { %v1075_v33 = vpop.f32.mrf.mxu0  ;;  %v2739_v34 = vpop.f32.mrf.mxu1 }
 0x1ba   :  { %1843 = vst [vmem:[%s4548_s3 + $0x1e0] sm:$0xff] %v1674_v31  ;;  %v1759_v35 = vmax.f32 %v1496_v32, 0.0  ;;  %v1076_v36 = vadd.f32 %v4081_v37, %v1075_v33 }
 0x1bb   :  { %v2487_v38 = vpop.f32.mrf.mxu0  ;;  %v1500_v39 = vpop.f32.mrf.mxu1 }
 0x1bc   :  { %1928 = vst [vmem:[%s4548_s3 + $0x488] sm:$0xff] %v1759_v35  ;;  %v1675_v40 = vmax.f32 %v1076_v36, 0.0  ;;  %v1501_v41 = vadd.f32 %v4081_v37, %v1500_v39 }
 0x1bd   :  { %v1080_v42 = vpop.f32.mrf.mxu0  ;;  %v2742_v43 = vpop.f32.mrf.mxu1 }
 0x1be   :  { %1844 = vst [vmem:[%s4548_s3 + $0x1e8] sm:$0xff] %v1675_v40  ;;  %v1760_v44 = vmax.f32 %v1501_v41, 0.0  ;;  %v1081_v45 = vadd.f32 %v4081_v37, %v1080_v42 }
 0x1bf   :  { %v2490_v46 = vpop.f32.mrf.mxu0  ;;  %v1505_v47 = vpop.f32.mrf.mxu1 }
 0x1c0   :  { %1929 = vst [vmem:[%s4548_s3 + $0x490] sm:$0xff] %v1760_v44  ;;  %v1676_v48 = vmax.f32 %v1081_v45, 0.0  ;;  %v1506_v49 = vadd.f32 %v4081_v37, %v1505_v47 }
 0x1c1   :  { %v1085_v50 = vpop.f32.mrf.mxu0  ;;  %v2745_v51 = vpop.f32.mrf.mxu1 }
 0x1c2   :  { %1845 = vst [vmem:[%s4548_s3 + $0x1f0] sm:$0xff] %v1676_v48  ;;  %v1761_v52 = vmax.f32 %v1506_v49, 0.0  ;;  %v1086_v53 = vadd.f32 %v4081_v37, %v1085_v50 }
 0x1c3   :  { %v2493_v54 = vpop.f32.mrf.mxu0  ;;  %v1510_v55 = vpop.f32.mrf.mxu1 }
 0x1c4   :  { %1930 = vst [vmem:[%s4548_s3 + $0x498] sm:$0xff] %v1761_v52  ;;  %v1677_v56 = vmax.f32 %v1086_v53, 0.0  ;;  %v1511_v57 = vadd.f32 %v4081_v37, %v1510_v55 }
 0x1c5   :  { %v1090_v58 = vpop.f32.mrf.mxu0  ;;  %v2748_v59 = vpop.f32.mrf.mxu1 }
 0x1c6   :  { %1846 = vst [vmem:[%s4548_s3 + $0x1f8] sm:$0xff] %v1677_v56  ;;  %v1762_v60 = vmax.f32 %v1511_v57, 0.0  ;;  %v1091_v61 = vadd.f32 %v4081_v37, %v1090_v58 }
 0x1c7   :  { %v2496_v62 = vpop.f32.mrf.mxu0  ;;  %v1515_v63 = vpop.f32.mrf.mxu1 }
 0x1c8   :  { %1931 = vst [vmem:[%s4548_s3 + $0x4a0] sm:$0xff] %v1762_v60  ;;  %v1678_v1 = vmax.f32 %v1091_v61, 0.0  ;;  %v1516_v2 = vadd.f32 %v4081_v37, %v1515_v63 }
 0x1c9   :  { %v1095_v3 = vpop.f32.mrf.mxu0  ;;  %v2751_v4 = vpop.f32.mrf.mxu1 }
 0x1ca   :  { %1847 = vst [vmem:[%s4548_s3 + $0x200] sm:$0xff] %v1678_v1  ;;  %v1763_v5 = vmax.f32 %v1516_v2, 0.0  ;;  %v1096_v6 = vadd.f32 %v4081_v37, %v1095_v3 }
 0x1cb   :  { %v2499_v7 = vpop.f32.mrf.mxu0  ;;  %v1520_v8 = vpop.f32.mrf.mxu1 }
 0x1cc   :  { %1932 = vst [vmem:[%s4548_s3 + $0x4a8] sm:$0xff] %v1763_v5  ;;  %v1679_v9 = vmax.f32 %v1096_v6, 0.0  ;;  %v1521_v10 = vadd.f32 %v4081_v37, %v1520_v8 }
 0x1cd   :  { %v1100_v11 = vpop.f32.mrf.mxu0  ;;  %v2754_v12 = vpop.f32.mrf.mxu1 }
 0x1ce   :  { %1848 = vst [vmem:[%s4548_s3 + $0x208] sm:$0xff] %v1679_v9  ;;  %v1764_v13 = vmax.f32 %v1521_v10, 0.0  ;;  %v1101_v14 = vadd.f32 %v4081_v37, %v1100_v11 }
 0x1cf   :  { %v2502_v15 = vpop.f32.mrf.mxu0  ;;  %v1525_v16 = vpop.f32.mrf.mxu1 }
 0x1d0   :  { %1933 = vst [vmem:[%s4548_s3 + $0x4b0] sm:$0xff] %v1764_v13  ;;  %v1680_v17 = vmax.f32 %v1101_v14, 0.0  ;;  %v1526_v18 = vadd.f32 %v4081_v37, %v1525_v16 }
 0x1d1   :  { %v1105_v19 = vpop.f32.mrf.mxu0  ;;  %v2757_v20 = vpop.f32.mrf.mxu1 }
 0x1d2   :  { %1849 = vst [vmem:[%s4548_s3 + $0x210] sm:$0xff] %v1680_v17  ;;  %v1765_v21 = vmax.f32 %v1526_v18, 0.0  ;;  %v1106_v22 = vadd.f32 %v4081_v37, %v1105_v19 }
 0x1d3   :  { %v2505_v23 = vpop.f32.mrf.mxu0  ;;  %v1530_v24 = vpop.f32.mrf.mxu1 }
 0x1d4   :  { %1934 = vst [vmem:[%s4548_s3 + $0x4b8] sm:$0xff] %v1765_v21  ;;  %v1681_v0 = vmax.f32 %v1106_v22, 0.0  ;;  %v1531_v25 = vadd.f32 %v4081_v37, %v1530_v24 }
 0x1d5   :  { %v1110_v26 = vpop.f32.mrf.mxu0  ;;  %v2760_v27 = vpop.f32.mrf.mxu1 }
 0x1d6   :  { %1850 = vst [vmem:[%s4548_s3 + $0x218] sm:$0xff] %v1681_v0  ;;  %v1766_v28 = vmax.f32 %v1531_v25, 0.0  ;;  %v1111_v29 = vadd.f32 %v4081_v37, %v1110_v26 }
 0x1d7   :  { %v2508_v30 = vpop.f32.mrf.mxu0  ;;  %v1535_v31 = vpop.f32.mrf.mxu1 }
 0x1d8   :  { %1935 = vst [vmem:[%s4548_s3 + $0x4c0] sm:$0xff] %v1766_v28  ;;  %v1682_v32 = vmax.f32 %v1111_v29, 0.0  ;;  %v1536_v33 = vadd.f32 %v4081_v37, %v1535_v31 }
 0x1d9   :  { %v1115_v34 = vpop.f32.mrf.mxu0  ;;  %v2763_v35 = vpop.f32.mrf.mxu1 }
 0x1da   :  { %1851 = vst [vmem:[%s4548_s3 + $0x220] sm:$0xff] %v1682_v32  ;;  %v1767_v36 = vmax.f32 %v1536_v33, 0.0  ;;  %v1116_v38 = vadd.f32 %v4081_v37, %v1115_v34 }
 0x1db   :  { %v2511_v39 = vpop.f32.mrf.mxu0  ;;  %v1540_v40 = vpop.f32.mrf.mxu1 }
 0x1dc   :  { %1936 = vst [vmem:[%s4548_s3 + $0x4c8] sm:$0xff] %v1767_v36  ;;  %v1683_v41 = vmax.f32 %v1116_v38, 0.0  ;;  %v1541_v42 = vadd.f32 %v4081_v37, %v1540_v40 }
 0x1dd   :  { %v1120_v43 = vpop.f32.mrf.mxu0  ;;  %v2766_v44 = vpop.f32.mrf.mxu1 }
 0x1de   :  { %1852 = vst [vmem:[%s4548_s3 + $0x228] sm:$0xff] %v1683_v41  ;;  %v1768_v45 = vmax.f32 %v1541_v42, 0.0  ;;  %v1121_v46 = vadd.f32 %v4081_v37, %v1120_v43 }
 0x1df   :  { %v2514_v47 = vpop.f32.mrf.mxu0  ;;  %v1545_v48 = vpop.f32.mrf.mxu1 }
 0x1e0   :  { %1937 = vst [vmem:[%s4548_s3 + $0x4d0] sm:$0xff] %v1768_v45  ;;  %v1684_v49 = vmax.f32 %v1121_v46, 0.0  ;;  %v1546_v50 = vadd.f32 %v4081_v37, %v1545_v48 }
 0x1e1   :  { %v1125_v51 = vpop.f32.mrf.mxu0  ;;  %v2769_v52 = vpop.f32.mrf.mxu1 }
 0x1e2   :  { %1853 = vst [vmem:[%s4548_s3 + $0x230] sm:$0xff] %v1684_v49  ;;  %v1769_v53 = vmax.f32 %v1546_v50, 0.0  ;;  %v1126_v54 = vadd.f32 %v4081_v37, %v1125_v51 }
 0x1e3   :  { %v2517_v55 = vpop.f32.mrf.mxu0  ;;  %v1550_v56 = vpop.f32.mrf.mxu1 }
 0x1e4   :  { %1938 = vst [vmem:[%s4548_s3 + $0x4d8] sm:$0xff] %v1769_v53  ;;  %v1685_v57 = vmax.f32 %v1126_v54, 0.0  ;;  %v1551_v58 = vadd.f32 %v4081_v37, %v1550_v56 }
 0x1e5   :  { %v1130_v59 = vpop.f32.mrf.mxu0  ;;  %v2772_v60 = vpop.f32.mrf.mxu1 }
 0x1e6   :  { %1854 = vst [vmem:[%s4548_s3 + $0x238] sm:$0xff] %v1685_v57  ;;  %v1770_v61 = vmax.f32 %v1551_v58, 0.0  ;;  %v1131_v62 = vadd.f32 %v4081_v37, %v1130_v59 }
 0x1e7   :  { %v2520_v63 = vpop.f32.mrf.mxu0  ;;  %v1555_v1 = vpop.f32.mrf.mxu1 }
 0x1e8   :  { %1939 = vst [vmem:[%s4548_s3 + $0x4e0] sm:$0xff] %v1770_v61  ;;  %v1686_v2 = vmax.f32 %v1131_v62, 0.0  ;;  %v1556_v3 = vadd.f32 %v4081_v37, %v1555_v1 }
 0x1e9   :  { %v1135_v4 = vpop.f32.mrf.mxu0  ;;  %v2775_v5 = vpop.f32.mrf.mxu1 }
 0x1ea   :  { %1855 = vst [vmem:[%s4548_s3 + $0x240] sm:$0xff] %v1686_v2  ;;  %v1771_v6 = vmax.f32 %v1556_v3, 0.0  ;;  %v1136_v7 = vadd.f32 %v4081_v37, %v1135_v4 }
 0x1eb   :  { %v2523_v8 = vpop.f32.mrf.mxu0  ;;  %v1560_v9 = vpop.f32.mrf.mxu1 }
 0x1ec   :  { %1940 = vst [vmem:[%s4548_s3 + $0x4e8] sm:$0xff] %v1771_v6  ;;  %v1687_v10 = vmax.f32 %v1136_v7, 0.0  ;;  %v1561_v11 = vadd.f32 %v4081_v37, %v1560_v9  ;;  %v2816_v8 = vld [vmem:[%s4547_s2] ss:$0 sm:$0xff] }
 0x1ed   :  { %v1140_v12 = vpop.f32.mrf.mxu0  ;;  %v2778_v13 = vpop.f32.mrf.mxu1 }
 0x1ee   :  { %1856 = vst [vmem:[%s4548_s3 + $0x248] sm:$0xff] %v1687_v10  ;;  %v1772_v14 = vmax.f32 %v1561_v11, 0.0  ;;  %v1141_v15 = vadd.f32 %v4081_v37, %v1140_v12 }
 0x1ef   :  { %v2526_v16 = vpop.f32.mrf.mxu0  ;;  %v1565_v17 = vpop.f32.mrf.mxu1 }
 0x1f0   :  { %1941 = vst [vmem:[%s4548_s3 + $0x4f0] sm:$0xff] %v1772_v14  ;;  %v1688_v18 = vmax.f32 %v1141_v15, 0.0  ;;  %v1566_v19 = vadd.f32 %v4081_v37, %v1565_v17 }
 0x1f1   :  { %v1145_v20 = vpop.f32.mrf.mxu0  ;;  %v2781_v21 = vpop.f32.mrf.mxu1 }
 0x1f2   :  { %1857 = vst [vmem:[%s4548_s3 + $0x250] sm:$0xff] %v1688_v18  ;;  %v1773_v22 = vmax.f32 %v1566_v19, 0.0  ;;  %v1146_v23 = vadd.f32 %v4081_v37, %v1145_v20 }
 0x1f3   :  { %v2529_v24 = vpop.f32.mrf.mxu0  ;;  %v1570_v0 = vpop.f32.mrf.mxu1 }
 0x1f4   :  { %1942 = vst [vmem:[%s4548_s3 + $0x4f8] sm:$0xff] %v1773_v22  ;;  %v1689_v25 = vmax.f32 %v1146_v23, 0.0  ;;  %v1571_v26 = vadd.f32 %v4081_v37, %v1570_v0 }
 0x1f5   :  { %v1150_v27 = vpop.f32.mrf.mxu0  ;;  %v2784_v28 = vpop.f32.mrf.mxu1 }
 0x1f6   :  { %1858 = vst [vmem:[%s4548_s3 + $0x258] sm:$0xff] %v1689_v25  ;;  %v1774_v29 = vmax.f32 %v1571_v26, 0.0  ;;  %v1151_v30 = vadd.f32 %v4081_v37, %v1150_v27 }
 0x1f7   :  { %v2532_v31 = vpop.f32.mrf.mxu0  ;;  %v1575_v32 = vpop.f32.mrf.mxu1 }
 0x1f8   :  { %1943 = vst [vmem:[%s4548_s3 + $0x500] sm:$0xff] %v1774_v29  ;;  %v1690_v33 = vmax.f32 %v1151_v30, 0.0  ;;  %v1576_v34 = vadd.f32 %v4081_v37, %v1575_v32 }
 0x1f9   :  { %v1155_v35 = vpop.f32.mrf.mxu0  ;;  %v2787_v36 = vpop.f32.mrf.mxu1 }
 0x1fa   :  { %1859 = vst [vmem:[%s4548_s3 + $0x260] sm:$0xff] %v1690_v33  ;;  %v1775_v38 = vmax.f32 %v1576_v34, 0.0  ;;  %v1156_v39 = vadd.f32 %v4081_v37, %v1155_v35 }
 0x1fb   :  { %v2535_v40 = vpop.f32.mrf.mxu0  ;;  %v1580_v41 = vpop.f32.mrf.mxu1 }
 0x1fc   :  { %1944 = vst [vmem:[%s4548_s3 + $0x508] sm:$0xff] %v1775_v38  ;;  %v1691_v42 = vmax.f32 %v1156_v39, 0.0  ;;  %v1581_v43 = vadd.f32 %v4081_v37, %v1580_v41 }
 0x1fd   :  { %v1160_v44 = vpop.f32.mrf.mxu0  ;;  %v2790_v45 = vpop.f32.mrf.mxu1 }
 0x1fe   :  { %1860 = vst [vmem:[%s4548_s3 + $0x268] sm:$0xff] %v1691_v42  ;;  %v1776_v46 = vmax.f32 %v1581_v43, 0.0  ;;  %v1161_v47 = vadd.f32 %v4081_v37, %v1160_v44 }
 0x1ff   :  { %v2538_v48 = vpop.f32.mrf.mxu0  ;;  %v1585_v49 = vpop.f32.mrf.mxu1 }
 0x200   :  { %1945 = vst [vmem:[%s4548_s3 + $0x510] sm:$0xff] %v1776_v46  ;;  %v1692_v50 = vmax.f32 %v1161_v47, 0.0  ;;  %v1586_v51 = vadd.f32 %v4081_v37, %v1585_v49 }
 0x201   :  { %v1165_v52 = vpop.f32.mrf.mxu0  ;;  %v2793_v53 = vpop.f32.mrf.mxu1 }
 0x202   :  { %1861 = vst [vmem:[%s4548_s3 + $0x270] sm:$0xff] %v1692_v50  ;;  %v1777_v54 = vmax.f32 %v1586_v51, 0.0  ;;  %v1166_v55 = vadd.f32 %v4081_v37, %v1165_v52 }
 0x203   :  { %v2541_v56 = vpop.f32.mrf.mxu0  ;;  %v1590_v57 = vpop.f32.mrf.mxu1 }
 0x204   :  { %1946 = vst [vmem:[%s4548_s3 + $0x518] sm:$0xff] %v1777_v54  ;;  %v1693_v58 = vmax.f32 %v1166_v55, 0.0  ;;  %v1591_v59 = vadd.f32 %v4081_v37, %v1590_v57 }
 0x205   :  { %v1170_v60 = vpop.f32.mrf.mxu0  ;;  %v2796_v61 = vpop.f32.mrf.mxu1 }
 0x206   :  { %1862 = vst [vmem:[%s4548_s3 + $0x278] sm:$0xff] %v1693_v58  ;;  %v1778_v62 = vmax.f32 %v1591_v59, 0.0  ;;  %v1171_v63 = vadd.f32 %v4081_v37, %v1170_v60 }
 0x207   :  { %v2544_v1 = vpop.f32.mrf.mxu0  ;;  %v1595_v2 = vpop.f32.mrf.mxu1 }
 0x208   :  { %1947 = vst [vmem:[%s4548_s3 + $0x520] sm:$0xff] %v1778_v62  ;;  %v1694_v3 = vmax.f32 %v1171_v63, 0.0  ;;  %v1596_v4 = vadd.f32 %v4081_v37, %v1595_v2 }
 0x209   :  { %v1175_v5 = vpop.f32.mrf.mxu0  ;;  %v2799_v6 = vpop.f32.mrf.mxu1 }
 0x20a   :  { %1863 = vst [vmem:[%s4548_s3 + $0x280] sm:$0xff] %v1694_v3  ;;  %v1779_v7 = vmax.f32 %v1596_v4, 0.0  ;;  %v1176_v9 = vadd.f32 %v2816_v8, %v1175_v5 }
 0x20b   :  { %v2547_v10 = vpop.f32.mrf.mxu0  ;;  %v1600_v11 = vpop.f32.mrf.mxu1 }
 0x20c   :  { %1948 = vst [vmem:[%s4548_s3 + $0x528] sm:$0xff] %v1779_v7  ;;  %v1695_v12 = vmax.f32 %v1176_v9, 0.0  ;;  %v1601_v37 = vadd.f32 %v2816_v8, %v1600_v11 }
 0x20d   :  { %v1180_v13 = vpop.f32.mrf.mxu0  ;;  %v2802_v14 = vpop.f32.mrf.mxu1 }
 0x20e   :  { %1864 = vst [vmem:[%s4548_s3 + $0x288] sm:$0xff] %v1695_v12  ;;  %v1780_v15 = vmax.f32 %v1601_v37, 0.0  ;;  %v1181_v16 = vadd.f32 %v2816_v8, %v1180_v13 }
 0x20f   :  { %v2550_v17 = vpop.f32.mrf.mxu0  ;;  %v1605_v18 = vpop.f32.mrf.mxu1 }
 0x210   :  { %1949 = vst [vmem:[%s4548_s3 + $0x530] sm:$0xff] %v1780_v15  ;;  %v1696_v19 = vmax.f32 %v1181_v16, 0.0  ;;  %v1606_v20 = vadd.f32 %v2816_v8, %v1605_v18 }
 0x211   :  { %v1185_v21 = vpop.f32.mrf.mxu0  ;;  %v2805_v22 = vpop.f32.mrf.mxu1 }
 0x212   :  { %1865 = vst [vmem:[%s4548_s3 + $0x290] sm:$0xff] %v1696_v19  ;;  %v1781_v23 = vmax.f32 %v1606_v20, 0.0  ;;  %v1186_v24 = vadd.f32 %v2816_v8, %v1185_v21 }
 0x213   :  { %v2553_v0 = vpop.f32.mrf.mxu0  ;;  %v1610_v25 = vpop.f32.mrf.mxu1 }
 0x214   :  { %1950 = vst [vmem:[%s4548_s3 + $0x538] sm:$0xff] %v1781_v23  ;;  %v1697_v26 = vmax.f32 %v1186_v24, 0.0  ;;  %v1611_v27 = vadd.f32 %v2816_v8, %v1610_v25 }
 0x215   :  { %v1190_v28 = vpop.f32.mrf.mxu0  ;;  %v2808_v29 = vpop.f32.mrf.mxu1 }
 0x216   :  { %1866 = vst [vmem:[%s4548_s3 + $0x298] sm:$0xff] %v1697_v26  ;;  %v1782_v30 = vmax.f32 %v1611_v27, 0.0  ;;  %v1191_v31 = vadd.f32 %v2816_v8, %v1190_v28 }
 0x217   :  { %v2556_v32 = vpop.f32.mrf.mxu0 }
 0x218   :  { %1951 = vst [vmem:[%s4548_s3 + $0x540] sm:$0xff] %v1782_v30  ;;  %v1698_v33 = vmax.f32 %v1191_v31, 0.0 }
 0x21a   :  { %1867 = vst [vmem:[%s4548_s3 + $0x2a0] sm:$0xff] %v1698_v33 }

// kernel: net_forward.4
= control target key start
LH: loop header
LB: loop body
LE: loop exit
PB: predicated region body
PF: predicated region fallthrough
CT: control target
= control target key end

     0   :  { %vm605_vm0 = vcmask 1045504   ;;  %vm172_vm1 = vcmask 441344   ;;  %s3626_s1 = inlined_call_operand.vmem [shape: f32[54,128], index: 1, kind: input, shape index: {}]   ;;  %s3627_s0 = inlined_call_operand.vmem [shape: f32[1152,54], index: 0, kind: input, shape index: {}]   ;;  %s3628_s2 = inlined_call_operand.vmem [shape: f32[1,128], index: 2, kind: input, shape index: {}]   ;;  %s3629_s3 = inlined_call_operand.vmem [shape: f32[288,128], index: 3, kind: output, shape index: {}]  }
   0x1   :  { %v164_v0 = vld [vmem:[%s3626_s1 + $0x30] sm:$0x3f]  ;;  %v163_v1 = vld [vmem:[%s3626_s1 + $0x28] sm:$0xff]  ;;  %v162_v2 = vld [vmem:[%s3626_s1 + $0x20] sm:$0xff] }
   0x2   :  { %1983 = vmatprep.subr.msk.mxu0 %vm605_vm0, %v164_v0  ;;  %2213 = vmatprep.subr.msk.mxu1 %vm605_vm0, %v164_v0  ;;  %v161_v3 = vld [vmem:[%s3626_s1 + $0x18] sm:$0xff]  ;;  %v160_v4 = vld [vmem:[%s3626_s1 + $0x10] sm:$0xff]  ;;  %v159_v5 = vld [vmem:[%s3626_s1 + $0x8] sm:$0xff] }
   0x3   :  { %1984 = vmatpush3.msk.msra.mxu0 %vm605_vm0, %v164_v0  ;;  %2220 = vmatpush3.msk.msra.mxu1 %vm605_vm0, %v164_v0  ;;  %v158_v6 = vld [vmem:[%s3626_s1] sm:$0xff]  ;;  %v15_v9 = vld [vmem:[%s3627_s0 + $0x8] sm:$0xff]  ;;  %v16_v11 = vld [vmem:[%s3627_s0 + $0x10] sm:$0xff] }
   0x4   :  { %1985 = vmatprep.subr.mxu0 %v163_v1  ;;  %2214 = vmatprep.subr.mxu1 %v163_v1  ;;  %v14_v7 = vld [vmem:[%s3627_s0] sm:$0xff]  ;;  %v87_v10 = vld [vmem:[%s3627_s0 + $0x248] sm:$0xff]  ;;  %v88_v12 = vld [vmem:[%s3627_s0 + $0x250] sm:$0xff] }
   0x5   :  { %1986 = vmatpush3.msra.mxu0 %v163_v1  ;;  %2221 = vmatpush3.msra.mxu1 %v163_v1  ;;  %v86_v8 = vld [vmem:[%s3627_s0 + $0x240] sm:$0xff]  ;;  %v17_v13 = vld [vmem:[%s3627_s0 + $0x18] sm:$0xff]  ;;  %v19_v17 = vld [vmem:[%s3627_s0 + $0x28] sm:$0xff] }
   0x6   :  { %1987 = vmatprep.subr.mxu0 %v162_v2  ;;  %2215 = vmatprep.subr.mxu1 %v162_v2  ;;  %v89_v14 = vld [vmem:[%s3627_s0 + $0x258] sm:$0xff]  ;;  %v18_v15 = vld [vmem:[%s3627_s0 + $0x20] sm:$0xff]  ;;  %v91_v18 = vld [vmem:[%s3627_s0 + $0x268] sm:$0xff] }
   0x7   :  { %1988 = vmatpush3.msra.mxu0 %v162_v2  ;;  %2222 = vmatpush3.msra.mxu1 %v162_v2  ;;  %v90_v16 = vld [vmem:[%s3627_s0 + $0x260] sm:$0xff]  ;;  %v20_v19 = vld [vmem:[%s3627_s0 + $0x30] sm:$0xff]  ;;  %v21_v21 = vld [vmem:[%s3627_s0 + $0x38] sm:$0xff] }
   0x8   :  { %1989 = vmatprep.subr.mxu0 %v161_v3  ;;  %2216 = vmatprep.subr.mxu1 %v161_v3  ;;  %v92_v20 = vld [vmem:[%s3627_s0 + $0x270] sm:$0xff]  ;;  %v93_v22 = vld [vmem:[%s3627_s0 + $0x278] sm:$0xff]  ;;  %v22_v23 = vld [vmem:[%s3627_s0 + $0x40] sm:$0xff] }
   0x9   :  { %1990 = vmatpush3.msra.mxu0 %v161_v3  ;;  %2223 = vmatpush3.msra.mxu1 %v161_v3  ;;  %v94_v24 = vld [vmem:[%s3627_s0 + $0x280] sm:$0xff]  ;;  %v23_v25 = vld [vmem:[%s3627_s0 + $0x48] sm:$0xff]  ;;  %v24_v27 = vld [vmem:[%s3627_s0 + $0x50] sm:$0xff] }
   0xa   :  { %1991 = vmatprep.subr.mxu0 %v160_v4  ;;  %2217 = vmatprep.subr.mxu1 %v160_v4  ;;  %v95_v26 = vld [vmem:[%s3627_s0 + $0x288] sm:$0xff]  ;;  %v96_v28 = vld [vmem:[%s3627_s0 + $0x290] sm:$0xff]  ;;  %v25_v29 = vld [vmem:[%s3627_s0 + $0x58] sm:$0xff] }
   0xb   :  { %1992 = vmatpush3.msra.mxu0 %v160_v4  ;;  %2224 = vmatpush3.msra.mxu1 %v160_v4  ;;  %v97_v30 = vld [vmem:[%s3627_s0 + $0x298] sm:$0xff]  ;;  %v26_v31 = vld [vmem:[%s3627_s0 + $0x60] sm:$0xff]  ;;  %v27_v33 = vld [vmem:[%s3627_s0 + $0x68] sm:$0xff] }
   0xc   :  { %1993 = vmatprep.subr.mxu0 %v159_v5  ;;  %2218 = vmatprep.subr.mxu1 %v159_v5  ;;  %v98_v32 = vld [vmem:[%s3627_s0 + $0x2a0] sm:$0xff]  ;;  %v99_v34 = vld [vmem:[%s3627_s0 + $0x2a8] sm:$0xff]  ;;  %v28_v35 = vld [vmem:[%s3627_s0 + $0x70] sm:$0xff] }
   0xd   :  { %1994 = vmatpush3.msra.mxu0 %v159_v5  ;;  %2225 = vmatpush3.msra.mxu1 %v159_v5  ;;  %v100_v36 = vld [vmem:[%s3627_s0 + $0x2b0] sm:$0xff]  ;;  %v29_v37 = vld [vmem:[%s3627_s0 + $0x78] sm:$0xff]  ;;  %v30_v39 = vld [vmem:[%s3627_s0 + $0x80] sm:$0xff] }
   0xe   :  { %1995 = vmatprep.subr.mxu0 %v158_v6  ;;  %2219 = vmatprep.subr.mxu1 %v158_v6  ;;  %v101_v38 = vld [vmem:[%s3627_s0 + $0x2b8] sm:$0xff]  ;;  %v102_v40 = vld [vmem:[%s3627_s0 + $0x2c0] sm:$0xff]  ;;  %v31_v41 = vld [vmem:[%s3627_s0 + $0x88] sm:$0xff] }
   0xf   :  { %1996 = vmatpush3.msra.mxu0 %v158_v6  ;;  %2226 = vmatpush3.msra.mxu1 %v158_v6  ;;  %v103_v42 = vld [vmem:[%s3627_s0 + $0x2c8] sm:$0xff]  ;;  %v32_v43 = vld [vmem:[%s3627_s0 + $0x90] sm:$0xff]  ;;  %v33_v45 = vld [vmem:[%s3627_s0 + $0x98] sm:$0xff] }
  0x10   :  { %1997 = vmatprep.mubr.msk.f32.mxu0 %vm172_vm1, %v14_v7  ;;  %2105 = vmatprep.mubr.msk.f32.mxu1 %vm172_vm1, %v86_v8  ;;  %v104_v44 = vld [vmem:[%s3627_s0 + $0x2d0] sm:$0xff]  ;;  %v105_v46 = vld [vmem:[%s3627_s0 + $0x2d8] sm:$0xff]  ;;  %v34_v47 = vld [vmem:[%s3627_s0 + $0xa0] sm:$0xff] }
  0x11   :  { %1998 = vmatmul.mubr.msk.f32.vlgmr.msra.gmra.mxu0 %vm172_vm1, %v15_v9  ;;  %2106 = vmatmul.mubr.msk.f32.vlgmr.msra.gmra.mxu1 %vm172_vm1, %v87_v10  ;;  %v106_v48 = vld [vmem:[%s3627_s0 + $0x2e0] sm:$0xff]  ;;  %v35_v49 = vld [vmem:[%s3627_s0 + $0xa8] sm:$0xff]  ;;  %v36_v51 = vld [vmem:[%s3627_s0 + $0xb0] sm:$0xff] }
  0x12   :  { %2000 = vmatprep.mubr.msk.f32.mxu0 %vm172_vm1, %v16_v11  ;;  %2108 = vmatprep.mubr.msk.f32.mxu1 %vm172_vm1, %v88_v12  ;;  %v107_v50 = vld [vmem:[%s3627_s0 + $0x2e8] sm:$0xff]  ;;  %v108_v52 = vld [vmem:[%s3627_s0 + $0x2f0] sm:$0xff]  ;;  %v37_v53 = vld [vmem:[%s3627_s0 + $0xb8] sm:$0xff] }
  0x13   :  { %v109_v54 = vld [vmem:[%s3627_s0 + $0x2f8] sm:$0xff]  ;;  %v38_v55 = vld [vmem:[%s3627_s0 + $0xc0] sm:$0xff]  ;;  %v39_v57 = vld [vmem:[%s3627_s0 + $0xc8] sm:$0xff] }
  0x14   :  { %v110_v56 = vld [vmem:[%s3627_s0 + $0x300] sm:$0xff]  ;;  %v111_v58 = vld [vmem:[%s3627_s0 + $0x308] sm:$0xff]  ;;  %v40_v59 = vld [vmem:[%s3627_s0 + $0xd0] sm:$0xff] }
  0x15   :  { %2001 = vmatmul.mubr.msk.f32.gmra.mxu0 %vm172_vm1, %v17_v13  ;;  %2109 = vmatmul.mubr.msk.f32.gmra.mxu1 %vm172_vm1, %v89_v14  ;;  %v112_v60 = vld [vmem:[%s3627_s0 + $0x310] sm:$0xff]  ;;  %v41_v61 = vld [vmem:[%s3627_s0 + $0xd8] sm:$0xff]  ;;  %v42_v63 = vld [vmem:[%s3627_s0 + $0xe0] sm:$0xff] }
  0x16   :  { %2003 = vmatprep.mubr.msk.f32.mxu0 %vm172_vm1, %v18_v15  ;;  %2111 = vmatprep.mubr.msk.f32.mxu1 %vm172_vm1, %v90_v16  ;;  %v113_v62 = vld [vmem:[%s3627_s0 + $0x318] sm:$0xff]  ;;  %v114_v0 = vld [vmem:[%s3627_s0 + $0x320] sm:$0xff]  ;;  %v43_v1 = vld [vmem:[%s3627_s0 + $0xe8] sm:$0xff] }
  0x17   :  { %v115_v2 = vld [vmem:[%s3627_s0 + $0x328] sm:$0xff]  ;;  %v44_v3 = vld [vmem:[%s3627_s0 + $0xf0] sm:$0xff]  ;;  %v45_v5 = vld [vmem:[%s3627_s0 + $0xf8] sm:$0xff] }
  0x18   :  { %v116_v4 = vld [vmem:[%s3627_s0 + $0x330] sm:$0xff]  ;;  %v117_v6 = vld [vmem:[%s3627_s0 + $0x338] sm:$0xff]  ;;  %v46_v7 = vld [vmem:[%s3627_s0 + $0x100] sm:$0xff] }
  0x19   :  { %2004 = vmatmul.mubr.msk.f32.gmra.mxu0 %vm172_vm1, %v19_v17  ;;  %2112 = vmatmul.mubr.msk.f32.gmra.mxu1 %vm172_vm1, %v91_v18  ;;  %v118_v8 = vld [vmem:[%s3627_s0 + $0x340] sm:$0xff]  ;;  %v47_v9 = vld [vmem:[%s3627_s0 + $0x108] sm:$0xff]  ;;  %v48_v11 = vld [vmem:[%s3627_s0 + $0x110] sm:$0xff] }
  0x1a   :  { %2006 = vmatprep.mubr.msk.f32.mxu0 %vm172_vm1, %v20_v19  ;;  %2114 = vmatprep.mubr.msk.f32.mxu1 %vm172_vm1, %v92_v20  ;;  %v119_v10 = vld [vmem:[%s3627_s0 + $0x348] sm:$0xff]  ;;  %v120_v12 = vld [vmem:[%s3627_s0 + $0x350] sm:$0xff]  ;;  %v49_v13 = vld [vmem:[%s3627_s0 + $0x118] sm:$0xff] }
  0x1b   :  { %v121_v14 = vld [vmem:[%s3627_s0 + $0x358] sm:$0xff]  ;;  %v50_v15 = vld [vmem:[%s3627_s0 + $0x120] sm:$0xff]  ;;  %v51_v17 = vld [vmem:[%s3627_s0 + $0x128] sm:$0xff] }
  0x1c   :  { %v122_v16 = vld [vmem:[%s3627_s0 + $0x360] sm:$0xff]  ;;  %v123_v18 = vld [vmem:[%s3627_s0 + $0x368] sm:$0xff]  ;;  %v52_v19 = vld [vmem:[%s3627_s0 + $0x130] sm:$0xff] }
  0x1d   :  { %2007 = vmatmul.mubr.msk.f32.gmra.mxu0 %vm172_vm1, %v21_v21  ;;  %2115 = vmatmul.mubr.msk.f32.gmra.mxu1 %vm172_vm1, %v93_v22  ;;  %v124_v20 = vld [vmem:[%s3627_s0 + $0x370] sm:$0xff]  ;;  %v53_v21 = vld [vmem:[%s3627_s0 + $0x138] sm:$0xff] }
  0x1e   :  { %2009 = vmatprep.mubr.msk.f32.mxu0 %vm172_vm1, %v22_v23  ;;  %2117 = vmatprep.mubr.msk.f32.mxu1 %vm172_vm1, %v94_v24  ;;  %v125_v22 = vld [vmem:[%s3627_s0 + $0x378] sm:$0xff]  ;;  %v54_v23 = vld [vmem:[%s3627_s0 + $0x140] sm:$0xff] }
  0x1f   :  { %v126_v24 = vld [vmem:[%s3627_s0 + $0x380] sm:$0xff] }
  0x21   :  { %2010 = vmatmul.mubr.msk.f32.gmra.mxu0 %vm172_vm1, %v23_v25  ;;  %2118 = vmatmul.mubr.msk.f32.gmra.mxu1 %vm172_vm1, %v95_v26  ;;  %v55_v25 = vld [vmem:[%s3627_s0 + $0x148] sm:$0xff] }
  0x22   :  { %2012 = vmatprep.mubr.msk.f32.mxu0 %vm172_vm1, %v24_v27  ;;  %2120 = vmatprep.mubr.msk.f32.mxu1 %vm172_vm1, %v96_v28  ;;  %v127_v26 = vld [vmem:[%s3627_s0 + $0x388] sm:$0xff]  ;;  %v56_v27 = vld [vmem:[%s3627_s0 + $0x150] sm:$0xff] }
  0x23   :  { %v128_v28 = vld [vmem:[%s3627_s0 + $0x390] sm:$0xff] }
  0x25   :  { %2013 = vmatmul.mubr.msk.f32.gmra.mxu0 %vm172_vm1, %v25_v29  ;;  %2121 = vmatmul.mubr.msk.f32.gmra.mxu1 %vm172_vm1, %v97_v30  ;;  %v57_v29 = vld [vmem:[%s3627_s0 + $0x158] sm:$0xff] }
  0x26   :  { %2015 = vmatprep.mubr.msk.f32.mxu0 %vm172_vm1, %v26_v31  ;;  %2123 = vmatprep.mubr.msk.f32.mxu1 %vm172_vm1, %v98_v32  ;;  %v129_v30 = vld [vmem:[%s3627_s0 + $0x398] sm:$0xff]  ;;  %v58_v31 = vld [vmem:[%s3627_s0 + $0x160] sm:$0xff] }
  0x27   :  { %v130_v32 = vld [vmem:[%s3627_s0 + $0x3a0] sm:$0xff] }
  0x29   :  { %2016 = vmatmul.mubr.msk.f32.gmra.mxu0 %vm172_vm1, %v27_v33  ;;  %2124 = vmatmul.mubr.msk.f32.gmra.mxu1 %vm172_vm1, %v99_v34  ;;  %v59_v33 = vld [vmem:[%s3627_s0 + $0x168] sm:$0xff] }
  0x2a   :  { %2018 = vmatprep.mubr.msk.f32.mxu0 %vm172_vm1, %v28_v35  ;;  %2126 = vmatprep.mubr.msk.f32.mxu1 %vm172_vm1, %v100_v36  ;;  %v131_v34 = vld [vmem:[%s3627_s0 + $0x3a8] sm:$0xff]  ;;  %v60_v35 = vld [vmem:[%s3627_s0 + $0x170] sm:$0xff] }
  0x2b   :  { %v132_v36 = vld [vmem:[%s3627_s0 + $0x3b0] sm:$0xff] }
  0x2d   :  { %2019 = vmatmul.mubr.msk.f32.gmra.mxu0 %vm172_vm1, %v29_v37  ;;  %2127 = vmatmul.mubr.msk.f32.gmra.mxu1 %vm172_vm1, %v101_v38  ;;  %v61_v37 = vld [vmem:[%s3627_s0 + $0x178] sm:$0xff] }
  0x2e   :  { %2021 = vmatprep.mubr.msk.f32.mxu0 %vm172_vm1, %v30_v39  ;;  %2129 = vmatprep.mubr.msk.f32.mxu1 %vm172_vm1, %v102_v40  ;;  %v133_v38 = vld [vmem:[%s3627_s0 + $0x3b8] sm:$0xff]  ;;  %v62_v39 = vld [vmem:[%s3627_s0 + $0x180] sm:$0xff] }
  0x2f   :  { %v134_v40 = vld [vmem:[%s3627_s0 + $0x3c0] sm:$0xff] }
  0x31   :  { %2022 = vmatmul.mubr.msk.f32.gmra.mxu0 %vm172_vm1, %v31_v41  ;;  %2130 = vmatmul.mubr.msk.f32.gmra.mxu1 %vm172_vm1, %v103_v42  ;;  %v63_v41 = vld [vmem:[%s3627_s0 + $0x188] sm:$0xff] }
  0x32   :  { %2024 = vmatprep.mubr.msk.f32.mxu0 %vm172_vm1, %v32_v43  ;;  %2132 = vmatprep.mubr.msk.f32.mxu1 %vm172_vm1, %v104_v44  ;;  %v135_v42 = vld [vmem:[%s3627_s0 + $0x3c8] sm:$0xff]  ;;  %v64_v43 = vld [vmem:[%s3627_s0 + $0x190] sm:$0xff] }
  0x33   :  { %v136_v44 = vld [vmem:[%s3627_s0 + $0x3d0] sm:$0xff] }
  0x35   :  { %2025 = vmatmul.mubr.msk.f32.gmra.mxu0 %vm172_vm1, %v33_v45  ;;  %2133 = vmatmul.mubr.msk.f32.gmra.mxu1 %vm172_vm1, %v105_v46  ;;  %v65_v45 = vld [vmem:[%s3627_s0 + $0x198] sm:$0xff] }
  0x36   :  { %2027 = vmatprep.mubr.msk.f32.mxu0 %vm172_vm1, %v34_v47  ;;  %2135 = vmatprep.mubr.msk.f32.mxu1 %vm172_vm1, %v106_v48  ;;  %v137_v46 = vld [vmem:[%s3627_s0 + $0x3d8] sm:$0xff]  ;;  %v66_v47 = vld [vmem:[%s3627_s0 + $0x1a0] sm:$0xff] }
  0x37   :  { %v138_v48 = vld [vmem:[%s3627_s0 + $0x3e0] sm:$0xff] }
  0x39   :  { %2028 = vmatmul.mubr.msk.f32.gmra.mxu0 %vm172_vm1, %v35_v49  ;;  %2136 = vmatmul.mubr.msk.f32.gmra.mxu1 %vm172_vm1, %v107_v50  ;;  %v67_v49 = vld [vmem:[%s3627_s0 + $0x1a8] sm:$0xff] }
  0x3a   :  { %2030 = vmatprep.mubr.msk.f32.mxu0 %vm172_vm1, %v36_v51  ;;  %2138 = vmatprep.mubr.msk.f32.mxu1 %vm172_vm1, %v108_v52  ;;  %v139_v50 = vld [vmem:[%s3627_s0 + $0x3e8] sm:$0xff]  ;;  %v68_v51 = vld [vmem:[%s3627_s0 + $0x1b0] sm:$0xff] }
  0x3b   :  { %v140_v52 = vld [vmem:[%s3627_s0 + $0x3f0] sm:$0xff] }
  0x3d   :  { %2031 = vmatmul.mubr.msk.f32.gmra.mxu0 %vm172_vm1, %v37_v53  ;;  %2139 = vmatmul.mubr.msk.f32.gmra.mxu1 %vm172_vm1, %v109_v54  ;;  %v69_v53 = vld [vmem:[%s3627_s0 + $0x1b8] sm:$0xff] }
  0x3e   :  { %2033 = vmatprep.mubr.msk.f32.mxu0 %vm172_vm1, %v38_v55  ;;  %2141 = vmatprep.mubr.msk.f32.mxu1 %vm172_vm1, %v110_v56  ;;  %v141_v54 = vld [vmem:[%s3627_s0 + $0x3f8] sm:$0xff]  ;;  %v70_v55 = vld [vmem:[%s3627_s0 + $0x1c0] sm:$0xff] }
  0x3f   :  { %v142_v56 = vld [vmem:[%s3627_s0 + $0x400] sm:$0xff] }
  0x41   :  { %2034 = vmatmul.mubr.msk.f32.gmra.mxu0 %vm172_vm1, %v39_v57  ;;  %2142 = vmatmul.mubr.msk.f32.gmra.mxu1 %vm172_vm1, %v111_v58  ;;  %v71_v57 = vld [vmem:[%s3627_s0 + $0x1c8] sm:$0xff] }
  0x42   :  { %2036 = vmatprep.mubr.msk.f32.mxu0 %vm172_vm1, %v40_v59  ;;  %2144 = vmatprep.mubr.msk.f32.mxu1 %vm172_vm1, %v112_v60  ;;  %v143_v58 = vld [vmem:[%s3627_s0 + $0x408] sm:$0xff]  ;;  %v72_v59 = vld [vmem:[%s3627_s0 + $0x1d0] sm:$0xff] }
  0x43   :  { %v144_v60 = vld [vmem:[%s3627_s0 + $0x410] sm:$0xff] }
  0x45   :  { %2037 = vmatmul.mubr.msk.f32.gmra.mxu0 %vm172_vm1, %v41_v61  ;;  %2145 = vmatmul.mubr.msk.f32.gmra.mxu1 %vm172_vm1, %v113_v62  ;;  %v73_v61 = vld [vmem:[%s3627_s0 + $0x1d8] sm:$0xff] }
  0x46   :  { %2039 = vmatprep.mubr.msk.f32.mxu0 %vm172_vm1, %v42_v63  ;;  %2147 = vmatprep.mubr.msk.f32.mxu1 %vm172_vm1, %v114_v0  ;;  %v145_v62 = vld [vmem:[%s3627_s0 + $0x418] sm:$0xff]  ;;  %v74_v63 = vld [vmem:[%s3627_s0 + $0x1e0] sm:$0xff] }
  0x47   :  { %v146_v0 = vld [vmem:[%s3627_s0 + $0x420] sm:$0xff] }
  0x49   :  { %2040 = vmatmul.mubr.msk.f32.gmra.mxu0 %vm172_vm1, %v43_v1  ;;  %2148 = vmatmul.mubr.msk.f32.gmra.mxu1 %vm172_vm1, %v115_v2  ;;  %v75_v1 = vld [vmem:[%s3627_s0 + $0x1e8] sm:$0xff] }
  0x4a   :  { %2042 = vmatprep.mubr.msk.f32.mxu0 %vm172_vm1, %v44_v3  ;;  %2150 = vmatprep.mubr.msk.f32.mxu1 %vm172_vm1, %v116_v4  ;;  %v147_v2 = vld [vmem:[%s3627_s0 + $0x428] sm:$0xff]  ;;  %v76_v3 = vld [vmem:[%s3627_s0 + $0x1f0] sm:$0xff] }
  0x4b   :  { %v148_v4 = vld [vmem:[%s3627_s0 + $0x430] sm:$0xff] }
  0x4d   :  { %2043 = vmatmul.mubr.msk.f32.gmra.mxu0 %vm172_vm1, %v45_v5  ;;  %2151 = vmatmul.mubr.msk.f32.gmra.mxu1 %vm172_vm1, %v117_v6  ;;  %v77_v5 = vld [vmem:[%s3627_s0 + $0x1f8] sm:$0xff] }
  0x4e   :  { %2045 = vmatprep.mubr.msk.f32.mxu0 %vm172_vm1, %v46_v7  ;;  %2153 = vmatprep.mubr.msk.f32.mxu1 %vm172_vm1, %v118_v8  ;;  %v149_v6 = vld [vmem:[%s3627_s0 + $0x438] sm:$0xff]  ;;  %v78_v7 = vld [vmem:[%s3627_s0 + $0x200] sm:$0xff] }
  0x4f   :  { %v150_v8 = vld [vmem:[%s3627_s0 + $0x440] sm:$0xff] }
  0x51   :  { %2046 = vmatmul.mubr.msk.f32.gmra.mxu0 %vm172_vm1, %v47_v9  ;;  %2154 = vmatmul.mubr.msk.f32.gmra.mxu1 %vm172_vm1, %v119_v10  ;;  %v79_v9 = vld [vmem:[%s3627_s0 + $0x208] sm:$0xff] }
  0x52   :  { %2048 = vmatprep.mubr.msk.f32.mxu0 %vm172_vm1, %v48_v11  ;;  %2156 = vmatprep.mubr.msk.f32.mxu1 %vm172_vm1, %v120_v12  ;;  %v151_v10 = vld [vmem:[%s3627_s0 + $0x448] sm:$0xff]  ;;  %v80_v11 = vld [vmem:[%s3627_s0 + $0x210] sm:$0xff] }
  0x53   :  { %v152_v12 = vld [vmem:[%s3627_s0 + $0x450] sm:$0xff] }
  0x55   :  { %2049 = vmatmul.mubr.msk.f32.gmra.mxu0 %vm172_vm1, %v49_v13  ;;  %2157 = vmatmul.mubr.msk.f32.gmra.mxu1 %vm172_vm1, %v121_v14  ;;  %v81_v13 = vld [vmem:[%s3627_s0 + $0x218] sm:$0xff] }
  0x56   :  { %2051 = vmatprep.mubr.msk.f32.mxu0 %vm172_vm1, %v50_v15  ;;  %2159 = vmatprep.mubr.msk.f32.mxu1 %vm172_vm1, %v122_v16  ;;  %v153_v14 = vld [vmem:[%s3627_s0 + $0x458] sm:$0xff]  ;;  %v82_v15 = vld [vmem:[%s3627_s0 + $0x220] sm:$0xff] }
  0x57   :  { %v154_v16 = vld [vmem:[%s3627_s0 + $0x460] sm:$0xff] }
  0x59   :  { %2052 = vmatmul.mubr.msk.f32.gmra.mxu0 %vm172_vm1, %v51_v17  ;;  %2160 = vmatmul.mubr.msk.f32.gmra.mxu1 %vm172_vm1, %v123_v18  ;;  %v83_v17 = vld [vmem:[%s3627_s0 + $0x228] sm:$0xff] }
  0x5a   :  { %2054 = vmatprep.mubr.msk.f32.mxu0 %vm172_vm1, %v52_v19  ;;  %2162 = vmatprep.mubr.msk.f32.mxu1 %vm172_vm1, %v124_v20  ;;  %v155_v18 = vld [vmem:[%s3627_s0 + $0x468] sm:$0xff]  ;;  %v84_v19 = vld [vmem:[%s3627_s0 + $0x230] sm:$0xff] }
  0x5b   :  { %v156_v20 = vld [vmem:[%s3627_s0 + $0x470] sm:$0xff] }
  0x5d   :  { %2055 = vmatmul.mubr.msk.f32.gmra.mxu0 %vm172_vm1, %v53_v21  ;;  %2163 = vmatmul.mubr.msk.f32.gmra.mxu1 %vm172_vm1, %v125_v22  ;;  %v85_v21 = vld [vmem:[%s3627_s0 + $0x238] sm:$0xff] }
  0x5e   :  { %2057 = vmatprep.mubr.msk.f32.mxu0 %vm172_vm1, %v54_v23  ;;  %2165 = vmatprep.mubr.msk.f32.mxu1 %vm172_vm1, %v126_v24  ;;  %v157_v22 = vld [vmem:[%s3627_s0 + $0x478] sm:$0xff] }
  0x61   :  { %2058 = vmatmul.mubr.msk.f32.gmra.mxu0 %vm172_vm1, %v55_v25  ;;  %2166 = vmatmul.mubr.msk.f32.gmra.mxu1 %vm172_vm1, %v127_v26 }
  0x62   :  { %2060 = vmatprep.mubr.msk.f32.mxu0 %vm172_vm1, %v56_v27  ;;  %2168 = vmatprep.mubr.msk.f32.mxu1 %vm172_vm1, %v128_v28 }
  0x65   :  { %2061 = vmatmul.mubr.msk.f32.gmra.mxu0 %vm172_vm1, %v57_v29  ;;  %2169 = vmatmul.mubr.msk.f32.gmra.mxu1 %vm172_vm1, %v129_v30 }
  0x66   :  { %2063 = vmatprep.mubr.msk.f32.mxu0 %vm172_vm1, %v58_v31  ;;  %2171 = vmatprep.mubr.msk.f32.mxu1 %vm172_vm1, %v130_v32 }
  0x69   :  { %2064 = vmatmul.mubr.msk.f32.gmra.mxu0 %vm172_vm1, %v59_v33  ;;  %2172 = vmatmul.mubr.msk.f32.gmra.mxu1 %vm172_vm1, %v131_v34 }
  0x6a   :  { %2066 = vmatprep.mubr.msk.f32.mxu0 %vm172_vm1, %v60_v35  ;;  %2174 = vmatprep.mubr.msk.f32.mxu1 %vm172_vm1, %v132_v36 }
  0x6d   :  { %2067 = vmatmul.mubr.msk.f32.gmra.mxu0 %vm172_vm1, %v61_v37  ;;  %2175 = vmatmul.mubr.msk.f32.gmra.mxu1 %vm172_vm1, %v133_v38 }
  0x6e   :  { %2069 = vmatprep.mubr.msk.f32.mxu0 %vm172_vm1, %v62_v39  ;;  %2177 = vmatprep.mubr.msk.f32.mxu1 %vm172_vm1, %v134_v40 }
  0x71   :  { %2070 = vmatmul.mubr.msk.f32.gmra.mxu0 %vm172_vm1, %v63_v41  ;;  %2178 = vmatmul.mubr.msk.f32.gmra.mxu1 %vm172_vm1, %v135_v42 }
  0x72   :  { %2072 = vmatprep.mubr.msk.f32.mxu0 %vm172_vm1, %v64_v43  ;;  %2180 = vmatprep.mubr.msk.f32.mxu1 %vm172_vm1, %v136_v44 }
  0x75   :  { %2073 = vmatmul.mubr.msk.f32.gmra.mxu0 %vm172_vm1, %v65_v45  ;;  %2181 = vmatmul.mubr.msk.f32.gmra.mxu1 %vm172_vm1, %v137_v46 }
  0x76   :  { %2075 = vmatprep.mubr.msk.f32.mxu0 %vm172_vm1, %v66_v47  ;;  %2183 = vmatprep.mubr.msk.f32.mxu1 %vm172_vm1, %v138_v48 }
  0x79   :  { %2076 = vmatmul.mubr.msk.f32.gmra.mxu0 %vm172_vm1, %v67_v49  ;;  %2184 = vmatmul.mubr.msk.f32.gmra.mxu1 %vm172_vm1, %v139_v50 }
  0x7a   :  { %2078 = vmatprep.mubr.msk.f32.mxu0 %vm172_vm1, %v68_v51  ;;  %2186 = vmatprep.mubr.msk.f32.mxu1 %vm172_vm1, %v140_v52 }
  0x7d   :  { %2079 = vmatmul.mubr.msk.f32.gmra.mxu0 %vm172_vm1, %v69_v53  ;;  %2187 = vmatmul.mubr.msk.f32.gmra.mxu1 %vm172_vm1, %v141_v54 }
  0x7e   :  { %2081 = vmatprep.mubr.msk.f32.mxu0 %vm172_vm1, %v70_v55  ;;  %2189 = vmatprep.mubr.msk.f32.mxu1 %vm172_vm1, %v142_v56 }
  0x81   :  { %2082 = vmatmul.mubr.msk.f32.gmra.mxu0 %vm172_vm1, %v71_v57  ;;  %2190 = vmatmul.mubr.msk.f32.gmra.mxu1 %vm172_vm1, %v143_v58 }
  0x82   :  { %2084 = vmatprep.mubr.msk.f32.mxu0 %vm172_vm1, %v72_v59  ;;  %2192 = vmatprep.mubr.msk.f32.mxu1 %vm172_vm1, %v144_v60 }
  0x85   :  { %2085 = vmatmul.mubr.msk.f32.gmra.mxu0 %vm172_vm1, %v73_v61  ;;  %2193 = vmatmul.mubr.msk.f32.gmra.mxu1 %vm172_vm1, %v145_v62 }
  0x86   :  { %2087 = vmatprep.mubr.msk.f32.mxu0 %vm172_vm1, %v74_v63  ;;  %2195 = vmatprep.mubr.msk.f32.mxu1 %vm172_vm1, %v146_v0 }
  0x89   :  { %2088 = vmatmul.mubr.msk.f32.gmra.mxu0 %vm172_vm1, %v75_v1  ;;  %2196 = vmatmul.mubr.msk.f32.gmra.mxu1 %vm172_vm1, %v147_v2 }
  0x8a   :  { %2090 = vmatprep.mubr.msk.f32.mxu0 %vm172_vm1, %v76_v3  ;;  %2198 = vmatprep.mubr.msk.f32.mxu1 %vm172_vm1, %v148_v4  ;;  %v2912_v3 = vld [vmem:[%s3628_s2] ss:$0 sm:$0xff] }
  0x8d   :  { %2091 = vmatmul.mubr.msk.f32.gmra.mxu0 %vm172_vm1, %v77_v5  ;;  %2199 = vmatmul.mubr.msk.f32.gmra.mxu1 %vm172_vm1, %v149_v6 }
  0x8e   :  { %2093 = vmatprep.mubr.msk.f32.mxu0 %vm172_vm1, %v78_v7  ;;  %2201 = vmatprep.mubr.msk.f32.mxu1 %vm172_vm1, %v150_v8 }
  0x91   :  { %2094 = vmatmul.mubr.msk.f32.gmra.mxu0 %vm172_vm1, %v79_v9  ;;  %2202 = vmatmul.mubr.msk.f32.gmra.mxu1 %vm172_vm1, %v151_v10 }
  0x92   :  { %2096 = vmatprep.mubr.msk.f32.mxu0 %vm172_vm1, %v80_v11  ;;  %2204 = vmatprep.mubr.msk.f32.mxu1 %vm172_vm1, %v152_v12 }
  0x95   :  { %2097 = vmatmul.mubr.msk.f32.gmra.mxu0 %vm172_vm1, %v81_v13  ;;  %2205 = vmatmul.mubr.msk.f32.gmra.mxu1 %vm172_vm1, %v153_v14 }
  0x96   :  { %2099 = vmatprep.mubr.msk.f32.mxu0 %vm172_vm1, %v82_v15  ;;  %2207 = vmatprep.mubr.msk.f32.mxu1 %vm172_vm1, %v154_v16 }
  0x99   :  { %2100 = vmatmul.mubr.msk.f32.gmra.mxu0 %vm172_vm1, %v83_v17  ;;  %2208 = vmatmul.mubr.msk.f32.gmra.mxu1 %vm172_vm1, %v155_v18 }
  0x9a   :  { %2102 = vmatprep.mubr.msk.f32.mxu0 %vm172_vm1, %v84_v19  ;;  %2210 = vmatprep.mubr.msk.f32.mxu1 %vm172_vm1, %v156_v20 }
  0x9d   :  { %2103 = vmatmul.mubr.msk.f32.gmra.mxu0 %vm172_vm1, %v85_v21  ;;  %2211 = vmatmul.mubr.msk.f32.gmra.mxu1 %vm172_vm1, %v157_v22 }
  0xd1   :  { %v1999_v23 = vpop.f32.mrf.mxu0  ;;  %v2107_v24 = vpop.f32.mrf.mxu1 }
  0xd2   :  { %v2919_v6 = vadd.f32 %v1999_v23, %v2912_v3  ;;  %v2926_v9 = vadd.f32 %v2107_v24, %v2912_v3 }
  0xd3   :  { %v675_v25 = vpop.f32.mrf.mxu0  ;;  %v1035_v26 = vpop.f32.mrf.mxu1 }
  0xd4   :  { %v2929_v10 = vadd.f32 %v2912_v3, %v675_v25  ;;  %v2932_v11 = vadd.f32 %v2912_v3, %v1035_v26 }
  0xd5   :  { %v2002_v27 = vpop.f32.mrf.mxu0  ;;  %v2110_v28 = vpop.f32.mrf.mxu1 }
  0xd6   :  { %v2935_v12 = vadd.f32 %v2002_v27, %v2912_v3  ;;  %v2942_v15 = vadd.f32 %v2110_v28, %v2912_v3 }
  0xd7   :  { %v685_v29 = vpop.f32.mrf.mxu0  ;;  %v1045_v30 = vpop.f32.mrf.mxu1 }
  0xd8   :  { %v2945_v16 = vadd.f32 %v2912_v3, %v685_v29  ;;  %v2949_v18 = vadd.f32 %v2912_v3, %v1045_v30 }
  0xd9   :  { %v2005_v31 = vpop.f32.mrf.mxu0  ;;  %v2113_v32 = vpop.f32.mrf.mxu1 }
  0xda   :  { %v2956_v21 = vadd.f32 %v2005_v31, %v2912_v3  ;;  %v2959_v22 = vadd.f32 %v2113_v32, %v2912_v3 }
  0xdb   :  { %v695_v33 = vpop.f32.mrf.mxu0  ;;  %v1055_v34 = vpop.f32.mrf.mxu1 }
  0xdc   :  { %v2962_v23 = vadd.f32 %v2912_v3, %v695_v33  ;;  %v2965_v24 = vadd.f32 %v2912_v3, %v1055_v34 }
  0xdd   :  { %v2845_v35 = vpop.f32.mrf.mxu0  ;;  %v2847_v36 = vpop.f32.mrf.mxu1 }
  0xde   :  { %3644 = vst [vmem:[#allocation2_spill] sm:$0xff] %v2962_v23  ;;  %3645 = vst [vmem:[#allocation3_spill] sm:$0xff] %v2965_v24  ;;  %v2979_v33 = vadd.f32 %v2845_v35, %v2912_v3  ;;  %v2983_v34 = vadd.f32 %v2847_v36, %v2912_v3 }
  0xdf   :  { %v2849_v37 = vpop.f32.mrf.mxu0  ;;  %v2851_v38 = vpop.f32.mrf.mxu1 }
  0xe0   :  { %v2988_v28 = vadd.f32 %v2912_v3, %v2849_v37  ;;  %v2992_v26 = vadd.f32 %v2912_v3, %v2851_v38 }
  0xe1   :  { %v2853_v39 = vpop.f32.mrf.mxu0  ;;  %v2855_v40 = vpop.f32.mrf.mxu1 }
  0xe2   :  { %v2996_v32 = vadd.f32 %v2853_v39, %v2912_v3  ;;  %v3008_v38 = vadd.f32 %v2855_v40, %v2912_v3 }
  0xe3   :  { %v2857_v41 = vpop.f32.mrf.mxu0  ;;  %v2859_v42 = vpop.f32.mrf.mxu1 }
  0xe4   :  { %3646 = vst [vmem:[#allocation4_spill] sm:$0xff] %v2996_v32  ;;  %v3012_v39 = vadd.f32 %v2912_v3, %v2857_v41  ;;  %v3016_v17 = vadd.f32 %v2912_v3, %v2859_v42 }
  0xe5   :  { %v2861_v43 = vpop.f32.mrf.mxu0  ;;  %v2863_v44 = vpop.f32.mrf.mxu1 }
  0xe6   :  { %v3020_v36 = vadd.f32 %v2861_v43, %v2912_v3  ;;  %v3030_v41 = vadd.f32 %v2863_v44, %v2912_v3 }
  0xe7   :  { %v2865_v45 = vpop.f32.mrf.mxu0  ;;  %v2867_v46 = vpop.f32.mrf.mxu1 }
  0xe8   :  { %v3034_v42 = vadd.f32 %v2912_v3, %v2865_v45 }
  0xe9   :  { %v2869_v47 = vpop.f32.mrf.mxu0  ;;  %v2871_v48 = vpop.f32.mrf.mxu1 }
  0xea   :  { %v3049_v44 = vadd.f32 %v2869_v47, %v2912_v3  ;;  %v3053_v45 = vadd.f32 %v2871_v48, %v2912_v3 }
  0xeb   :  { %v2873_v49 = vpop.f32.mrf.mxu0  ;;  %v2875_v50 = vpop.f32.mrf.mxu1 }
  0xec   :  { %v3057_v43 = vadd.f32 %v2912_v3, %v2873_v49 }
  0xed   :  { %v2877_v51 = vpop.f32.mrf.mxu0  ;;  %v2879_v52 = vpop.f32.mrf.mxu1 }
  0xee   :  { %v3079_v23 = vadd.f32 %v2879_v52, %v2912_v3 }
  0xef   :  { %v2881_v53 = vpop.f32.mrf.mxu0  ;;  %v2883_v54 = vpop.f32.mrf.mxu1 }
  0xf0   :  { %v3084_v47 = vadd.f32 %v2912_v3, %v2881_v53  ;;  %v3088_v24 = vadd.f32 %v2912_v3, %v2883_v54 }
  0xf1   :  { %v2885_v55 = vpop.f32.mrf.mxu0  ;;  %v2887_v56 = vpop.f32.mrf.mxu1 }
  0xf2   :  { %v3092_v49 = vadd.f32 %v2885_v55, %v2912_v3  ;;  %v3104_v54 = vadd.f32 %v2887_v56, %v2912_v3 }
  0xf3   :  { %v2889_v57 = vpop.f32.mrf.mxu0  ;;  %v2891_v58 = vpop.f32.mrf.mxu1 }
  0xf4   :  { %3651 = vst [vmem:[#allocation9_spill] sm:$0xff] %v3092_v49  ;;  %v3108_v55 = vadd.f32 %v2912_v3, %v2889_v57 }
  0xf5   :  { %v2893_v59 = vpop.f32.mrf.mxu0  ;;  %v2895_v60 = vpop.f32.mrf.mxu1 }
  0xf6   :  { %v3116_v52 = vadd.f32 %v2893_v59, %v2912_v3  ;;  %v3126_v57 = vadd.f32 %v2895_v60, %v2912_v3 }
  0xf7   :  { %v2897_v61 = vpop.f32.mrf.mxu0  ;;  %v2899_v62 = vpop.f32.mrf.mxu1 }
  0xf9   :  { %v2901_v63 = vpop.f32.mrf.mxu0  ;;  %v2903_v0 = vpop.f32.mrf.mxu1 }
  0xfa   :  { %v3145_v60 = vadd.f32 %v2901_v63, %v2912_v3 }
  0xfb   :  { %v2905_v1 = vpop.f32.mrf.mxu0  ;;  %v2907_v2 = vpop.f32.mrf.mxu1 }
  0xfc   :  { %3658 = vst [vmem:[#allocation16_spill] sm:$0xff] %v3145_v60  ;;  %v3153_v59 = vadd.f32 %v2912_v3, %v2905_v1 }
  0xfd   :  { %v2914_v4 = vpop.f32.mrf.mxu0  ;;  %v2916_v5 = vpop.f32.mrf.mxu1 }
  0xfe   :  { %3660 = vst [vmem:[#allocation18_spill] sm:$0xff] %v3153_v59 }
  0xff   :  { %v2921_v7 = vpop.f32.mrf.mxu0  ;;  %v2923_v8 = vpop.f32.mrf.mxu1 }
 0x100   :  { %v3180_v63 = vadd.f32 %v2912_v3, %v2921_v7 }
 0x101   :  { %v2937_v13 = vpop.f32.mrf.mxu0  ;;  %v2939_v14 = vpop.f32.mrf.mxu1 }
 0x102   :  { %3665 = vst [vmem:[#allocation23_spill] sm:$0xff] %v3180_v63  ;;  %v3188_v1 = vadd.f32 %v2937_v13, %v2912_v3 }
 0x103   :  { %v2951_v19 = vpop.f32.mrf.mxu0  ;;  %v2953_v20 = vpop.f32.mrf.mxu1 }
 0x104   :  { %3667 = vst [vmem:[#allocation25_spill] sm:$0xff] %v3188_v1  ;;  %v3204_v13 = vadd.f32 %v2912_v3, %v2951_v19 }
 0x105   :  { %v2971_v29 = vpop.f32.mrf.mxu0  ;;  %v2973_v30 = vpop.f32.mrf.mxu1 }
 0x107   :  { %v2998_v35 = vpop.f32.mrf.mxu0  ;;  %v3000_v31 = vpop.f32.mrf.mxu1 }
 0x109   :  { %v3022_v27 = vpop.f32.mrf.mxu0  ;;  %v3024_v25 = vpop.f32.mrf.mxu1 }
 0x10a   :  { %3647 = vst [vmem:[#allocation5_spill] sm:$0xff] %v3024_v25  ;;  %v3041_v25 = vadd.f32 %v2912_v3, %v2867_v46  ;;  %v3061_v46 = vadd.f32 %v2912_v3, %v2875_v50  ;;  %v3075_v50 = vadd.f32 %v2877_v51, %v2912_v3 }
 0x10b   :  { %v3043_v37 = vpop.f32.mrf.mxu0  ;;  %v3045_v40 = vpop.f32.mrf.mxu1 }
 0x10c   :  { %3648 = vst [vmem:[#allocation6_spill] sm:$0xff] %v3043_v37  ;;  %3649 = vst [vmem:[#allocation7_spill] sm:$0xff] %v3045_v40 }
 0x10d   :  { %v3067_v37 = vpop.f32.mrf.mxu0  ;;  %v3069_v48 = vpop.f32.mrf.mxu1 }
 0x10e   :  { %3650 = vst [vmem:[#allocation8_spill] sm:$0xff] %v3069_v48 }
 0x10f   :  { %v3094_v51 = vpop.f32.mrf.mxu0  ;;  %v3096_v32 = vpop.f32.mrf.mxu1 }
 0x110   :  { %3652 = vst [vmem:[#allocation10_spill] sm:$0xff] %v3094_v51  ;;  %3653 = vst [vmem:[#allocation11_spill] sm:$0xff] %v3096_v32  ;;  %v3112_v51 = vadd.f32 %v2912_v3, %v2891_v58  ;;  %v3130_v58 = vadd.f32 %v2912_v3, %v2897_v61  ;;  %v3149_v61 = vadd.f32 %v2903_v0, %v2912_v3 }
 0x111   :  { %v3118_v40 = vpop.f32.mrf.mxu0  ;;  %v3120_v48 = vpop.f32.mrf.mxu1  ;;  %v3184_v32 = vadd.f32 %v2912_v3, %v2923_v8  ;;  %v3200_v8 = vadd.f32 %v2939_v14, %v2912_v3 }
 0x112   :  { %3654 = vst [vmem:[#allocation12_spill] sm:$0xff] %v3118_v40  ;;  %3655 = vst [vmem:[#allocation13_spill] sm:$0xff] %v3120_v48  ;;  %v3137_v48 = vadd.f32 %v2912_v3, %v2899_v62  ;;  %v3157_v62 = vadd.f32 %v2912_v3, %v2907_v2  ;;  %v3171_v2 = vadd.f32 %v2914_v4, %v2912_v3 }
 0x113   :  { %v3139_v53 = vpop.f32.mrf.mxu0  ;;  %v3141_v56 = vpop.f32.mrf.mxu1  ;;  %3659 = vst [vmem:[#allocation17_spill] sm:$0xff] %v3149_v61  ;;  %v3175_v40 = vadd.f32 %v2916_v5, %v2912_v3  ;;  %3666 = vst [vmem:[#allocation24_spill] sm:$0xff] %v3184_v32  ;;  %v3212_v5 = vadd.f32 %v2971_v29, %v2912_v3  ;;  %v3223_v29 = vadd.f32 %v2973_v30, %v2912_v3  ;;  %v3672_v30 = vmax.f32 %v2919_v6, 0.0 }
 0x114   :  { %3656 = vst [vmem:[#allocation14_spill] sm:$0xff] %v3139_v53  ;;  %3657 = vst [vmem:[#allocation15_spill] sm:$0xff] %v3141_v56  ;;  %v3674_v6 = vmax.f32 %v2929_v10, 0.0 }
 0x115   :  { %3661 = vst [vmem:[#allocation19_spill] sm:$0xff] %v3157_v62  ;;  %v3163_v53 = vpop.f32.mrf.mxu0  ;;  %v3165_v0 = vpop.f32.mrf.mxu1  ;;  %3664 = vst [vmem:[#allocation22_spill] sm:$0xff] %v3175_v40 }
 0x116   :  { %3662 = vst [vmem:[#allocation20_spill] sm:$0xff] %v3163_v53  ;;  %3663 = vst [vmem:[#allocation21_spill] sm:$0xff] %v3165_v0 }
 0x117   :  { %v3190_v4 = vpop.f32.mrf.mxu0  ;;  %v3192_v49 = vpop.f32.mrf.mxu1  ;;  %3671 = vst [vmem:[#allocation29_spill] sm:$0xff] %v3212_v5 }
 0x118   :  { %3668 = vst [vmem:[#allocation26_spill] sm:$0xff] %v3190_v4  ;;  %3669 = vst [vmem:[#allocation27_spill] sm:$0xff] %v3192_v49  ;;  %v3208_v4 = vadd.f32 %v2912_v3, %v2953_v20 }
 0x119   :  { %v2053_v56 = vpop.f32.mrf.mxu0  ;;  %v2161_v0 = vpop.f32.mrf.mxu1 }
 0x11a   :  { %3670 = vst [vmem:[#allocation28_spill] sm:$0xff] %v3208_v4  ;;  %v861_v14 = vadd.f32 %v2053_v56, %v2912_v3  ;;  %v1221_v53 = vadd.f32 %v2161_v0, %v2912_v3  ;;  %v3238_v0 = vadd.f32 %v2912_v3, %v2998_v35 }
 0x11b   :  { %v855_v59 = vpop.f32.mrf.mxu0  ;;  %v1215_v61 = vpop.f32.mrf.mxu1 }
 0x11c   :  { %v1431_v60 = vmax.f32 %v861_v14, 0.0  ;;  %v1503_v7 = vmax.f32 %v1221_v53, 0.0  ;;  %v856_v49 = vadd.f32 %v2912_v3, %v855_v59  ;;  %v1216_v56 = vadd.f32 %v2912_v3, %v1215_v61 }
 0x11d   :  { %v2056_v1 = vpop.f32.mrf.mxu0  ;;  %v2164_v32 = vpop.f32.mrf.mxu1  ;;  %v3673_v14 = vmax.f32 %v2926_v9, 0.0  ;;  %v1493_v61 = vmax.f32 %v3223_v29, 0.0  ;;  %v3675_v9 = vmax.f32 %v2932_v11, 0.0 }
 0x11e   :  { %v1539_v63 = vmax.f32 %v3672_v30, %v1431_v60  ;;  %v1430_v40 = vmax.f32 %v856_v49, 0.0  ;;  %v1502_v59 = vmax.f32 %v1216_v56, 0.0  ;;  %v871_v62 = vadd.f32 %v2056_v1, %v2912_v3 }
 0x11f   :  { %v1575_v53 = vmax.f32 %v3673_v14, %v1503_v7  ;;  %v1231_v20 = vadd.f32 %v2164_v32, %v2912_v3  ;;  %v865_v19 = vpop.f32.mrf.mxu0  ;;  %v1225_v5 = vpop.f32.mrf.mxu1  ;;  %v3249_v56 = vadd.f32 %v2912_v3, %v3000_v31  ;;  %v3676_v31 = vmax.f32 %v2935_v12, 0.0 }
 0x120   :  { %v1538_v60 = vmax.f32 %v3674_v6, %v1430_v40  ;;  %v1574_v49 = vmax.f32 %v3675_v9, %v1502_v59  ;;  %v866_v7 = vadd.f32 %v2912_v3, %v865_v19  ;;  %v1433_v35 = vmax.f32 %v871_v62, 0.0 }
 0x121   :  { %v1611_v4 = vmax.f32 %v1539_v63, %v1575_v53  ;;  %v1505_v30 = vmax.f32 %v1231_v20, 0.0  ;;  %v1226_v1 = vadd.f32 %v2912_v3, %v1225_v5  ;;  %v2059_v32 = vpop.f32.mrf.mxu0  ;;  %v2167_v14 = vpop.f32.mrf.mxu1  ;;  %v1420_v19 = vmax.f32 %v3238_v0, 0.0 }
 0x122   :  { %v1610_v10 = vmax.f32 %v1538_v60, %v1574_v49  ;;  %v1432_v40 = vmax.f32 %v866_v7, 0.0  ;;  %v881_v11 = vadd.f32 %v2059_v32, %v2912_v3  ;;  %v1241_v63 = vadd.f32 %v2167_v14, %v2912_v3 }
 0x123   :  { %1647 = vst [vmem:[%s3629_s3 + $0x8] sm:$0xff] %v1611_v4  ;;  %v1541_v62 = vmax.f32 %v3676_v31, %v1433_v35  ;;  %v3677_v20 = vmax.f32 %v2942_v15, 0.0  ;;  %v1504_v53 = vmax.f32 %v1226_v1, 0.0  ;;  %v875_v59 = vpop.f32.mrf.mxu0  ;;  %v1235_v6 = vpop.f32.mrf.mxu1  ;;  %v3678_v4 = vmax.f32 %v2945_v16, 0.0 }
 0x124   :  { %1646 = vst [vmem:[%s3629_s3] sm:$0xff] %v1610_v10  ;;  %v1435_v9 = vmax.f32 %v881_v11, 0.0  ;;  %v1507_v49 = vmax.f32 %v1241_v63, 0.0  ;;  %v876_v7 = vadd.f32 %v2912_v3, %v875_v59  ;;  %v1492_v12 = vmax.f32 %v3249_v56, 0.0 }
 0x125   :  { %v1577_v5 = vmax.f32 %v3677_v20, %v1505_v30  ;;  %v1540_v60 = vmax.f32 %v3678_v4, %v1432_v40  ;;  %v3679_v15 = vmax.f32 %v2949_v18, 0.0  ;;  %v1236_v1 = vadd.f32 %v2912_v3, %v1235_v6  ;;  %v2062_v32 = vpop.f32.mrf.mxu0  ;;  %v2170_v14 = vpop.f32.mrf.mxu1 }
 0x126   :  { %v3680_v31 = vmax.f32 %v2956_v21, 0.0  ;;  %v3681_v16 = vmax.f32 %v2959_v22, 0.0  ;;  %v1434_v11 = vmax.f32 %v876_v7, 0.0  ;;  %v891_v63 = vadd.f32 %v2062_v32, %v2912_v3  ;;  %v3682_v22 = vld [vmem:[#allocation2_spill] sm:$0xff] }
 0x127   :  { %v1613_v35 = vmax.f32 %v1541_v62, %v1577_v5  ;;  %v1576_v30 = vmax.f32 %v3679_v15, %v1504_v53  ;;  %v3279_v20 = vadd.f32 %v3022_v27, %v2912_v3  ;;  %v1506_v62 = vmax.f32 %v1236_v1, 0.0  ;;  %v885_v21 = vpop.f32.mrf.mxu0  ;;  %v1245_v53 = vpop.f32.mrf.mxu1  ;;  %v3684_v27 = vld [vmem:[#allocation5_spill] sm:$0xff] }
 0x128   :  { %v1543_v10 = vmax.f32 %v3680_v31, %v1435_v9  ;;  %v1579_v40 = vmax.f32 %v3681_v16, %v1507_v49  ;;  %v1251_v5 = vadd.f32 %v2170_v14, %v2912_v3  ;;  %v3683_v6 = vmax.f32 %v3682_v22, 0.0 }
 0x129   :  { %1649 = vst [vmem:[%s3629_s3 + $0x18] sm:$0xff] %v1613_v35  ;;  %v1612_v18 = vmax.f32 %v1540_v60, %v1576_v30  ;;  %v1437_v9 = vmax.f32 %v891_v63, 0.0  ;;  %v886_v49 = vadd.f32 %v2912_v3, %v885_v21  ;;  %v3290_v7 = vadd.f32 %v3684_v27, %v2912_v3  ;;  %v3685_v60 = vld [vmem:[#allocation3_spill] sm:$0xff]  ;;  %v2065_v32 = vpop.f32.mrf.mxu0  ;;  %v2173_v14 = vpop.f32.mrf.mxu1 }
 0x12a   :  { %v1615_v59 = vmax.f32 %v1543_v10, %v1579_v40  ;;  %v1542_v4 = vmax.f32 %v3683_v6, %v1434_v11  ;;  %v3686_v35 = vmax.f32 %v3685_v60, 0.0  ;;  %v1509_v30 = vmax.f32 %v1251_v5, 0.0 }
 0x12b   :  { %1648 = vst [vmem:[%s3629_s3 + $0x10] sm:$0xff] %v1612_v18  ;;  %v1246_v1 = vadd.f32 %v2912_v3, %v1245_v53  ;;  %v3687_v31 = vmax.f32 %v2979_v33, 0.0  ;;  %v1436_v16 = vmax.f32 %v886_v49, 0.0  ;;  %v901_v40 = vadd.f32 %v2065_v32, %v2912_v3  ;;  %v895_v53 = vpop.f32.mrf.mxu0  ;;  %v1255_v22 = vpop.f32.mrf.mxu1 }
 0x12c   :  { %v1578_v15 = vmax.f32 %v3686_v35, %v1506_v62  ;;  %1651 = vst [vmem:[%s3629_s3 + $0x28] sm:$0xff] %v1615_v59  ;;  %v1261_v11 = vadd.f32 %v2173_v14, %v2912_v3  ;;  %v1423_v63 = vmax.f32 %v3279_v20, 0.0  ;;  %v3688_v62 = vmax.f32 %v2983_v34, 0.0 }
 0x12d   :  { %v1545_v10 = vmax.f32 %v3687_v31, %v1437_v9  ;;  %v1508_v21 = vmax.f32 %v1246_v1, 0.0  ;;  %v3689_v6 = vmax.f32 %v2988_v28, 0.0  ;;  %v1439_v27 = vmax.f32 %v901_v40, 0.0  ;;  %v3691_v28 = vld [vmem:[#allocation4_spill] sm:$0xff] }
 0x12e   :  { %v1614_v18 = vmax.f32 %v1542_v4, %v1578_v15  ;;  %v1581_v5 = vmax.f32 %v3688_v62, %v1509_v30  ;;  %v1511_v33 = vmax.f32 %v1261_v11, 0.0  ;;  %v896_v9 = vadd.f32 %v2912_v3, %v895_v53  ;;  %v2068_v15 = vpop.f32.mrf.mxu0  ;;  %v2176_v30 = vpop.f32.mrf.mxu1  ;;  %v3694_v11 = vld [vmem:[#allocation6_spill] sm:$0xff] }
 0x12f   :  { %v1544_v59 = vmax.f32 %v3689_v6, %v1436_v16  ;;  %v1495_v49 = vmax.f32 %v3290_v7, 0.0  ;;  %v3690_v34 = vmax.f32 %v2992_v26, 0.0  ;;  %v1256_v35 = vadd.f32 %v2912_v3, %v1255_v22 }
 0x130   :  { %1650 = vst [vmem:[%s3629_s3 + $0x20] sm:$0xff] %v1614_v18  ;;  %v1617_v4 = vmax.f32 %v1545_v10, %v1581_v5  ;;  %v3692_v1 = vmax.f32 %v3691_v28, 0.0  ;;  %v3693_v14 = vmax.f32 %v3008_v38, 0.0  ;;  %v1438_v16 = vmax.f32 %v896_v9, 0.0  ;;  %v905_v5 = vpop.f32.mrf.mxu0 }
 0x131   :  { %v1580_v60 = vmax.f32 %v3690_v34, %v1508_v21  ;;  %v911_v40 = vadd.f32 %v2068_v15, %v2912_v3  ;;  %v3325_v18 = vadd.f32 %v2912_v3, %v3694_v11  ;;  %v1510_v10 = vmax.f32 %v1256_v35, 0.0  ;;  %v1265_v21 = vpop.f32.mrf.mxu1 }
 0x132   :  { %v1547_v32 = vmax.f32 %v3692_v1, %v1439_v27  ;;  %v1583_v31 = vmax.f32 %v3693_v14, %v1511_v33  ;;  %1653 = vst [vmem:[%s3629_s3 + $0x38] sm:$0xff] %v1617_v4  ;;  %v1271_v62 = vadd.f32 %v2176_v30, %v2912_v3  ;;  %v3695_v38 = vmax.f32 %v3012_v39, 0.0  ;;  %v3696_v33 = vld [vmem:[#allocation7_spill] sm:$0xff]  ;;  %v2071_v35 = vpop.f32.mrf.mxu0 }
 0x133   :  { %v1616_v26 = vmax.f32 %v1544_v59, %v1580_v60  ;;  %v1441_v6 = vmax.f32 %v911_v40, 0.0  ;;  %v906_v27 = vadd.f32 %v2912_v3, %v905_v5  ;;  %v3336_v9 = vadd.f32 %v2912_v3, %v3696_v33  ;;  %v2179_v39 = vpop.f32.mrf.mxu1 }
 0x134   :  { %v1619_v53 = vmax.f32 %v1547_v32, %v1583_v31  ;;  %v1546_v22 = vmax.f32 %v3695_v38, %v1438_v16  ;;  %v3697_v59 = vmax.f32 %v3016_v17, 0.0  ;;  %v1513_v34 = vmax.f32 %v1271_v62, 0.0  ;;  %v915_v11 = vpop.f32.mrf.mxu0 }
 0x135   :  { %1652 = vst [vmem:[%s3629_s3 + $0x30] sm:$0xff] %v1616_v26  ;;  %v1266_v60 = vadd.f32 %v2912_v3, %v1265_v21  ;;  %v3698_v15 = vmax.f32 %v3020_v36, 0.0  ;;  %v1440_v28 = vmax.f32 %v906_v27, 0.0  ;;  %v921_v1 = vadd.f32 %v2071_v35, %v2912_v3  ;;  %v1275_v26 = vpop.f32.mrf.mxu1 }
 0x136   :  { %v1582_v4 = vmax.f32 %v3697_v59, %v1510_v10  ;;  %1655 = vst [vmem:[%s3629_s3 + $0x48] sm:$0xff] %v1619_v53  ;;  %v1281_v32 = vadd.f32 %v2179_v39, %v2912_v3  ;;  %v1422_v17 = vmax.f32 %v3325_v18, 0.0  ;;  %v3699_v31 = vmax.f32 %v3030_v41, 0.0  ;;  %v2074_v27 = vpop.f32.mrf.mxu0 }
 0x137   :  { %v1549_v30 = vmax.f32 %v3698_v15, %v1441_v6  ;;  %v1512_v40 = vmax.f32 %v1266_v60, 0.0  ;;  %v3700_v10 = vmax.f32 %v3034_v42, 0.0  ;;  %v1443_v5 = vmax.f32 %v921_v1, 0.0  ;;  %v2182_v33 = vpop.f32.mrf.mxu1 }
 0x138   :  { %v1618_v14 = vmax.f32 %v1546_v22, %v1582_v4  ;;  %v1585_v16 = vmax.f32 %v3699_v31, %v1513_v34  ;;  %v1515_v36 = vmax.f32 %v1281_v32, 0.0  ;;  %v916_v21 = vadd.f32 %v2912_v3, %v915_v11 }
 0x139   :  { %v1548_v62 = vmax.f32 %v3700_v10, %v1440_v28  ;;  %v1494_v53 = vmax.f32 %v3336_v9, 0.0  ;;  %v3701_v41 = vmax.f32 %v3041_v25, 0.0  ;;  %v1276_v6 = vadd.f32 %v2912_v3, %v1275_v26  ;;  %v1285_v28 = vpop.f32.mrf.mxu1 }
 0x13a   :  { %1654 = vst [vmem:[%s3629_s3 + $0x40] sm:$0xff] %v1618_v14  ;;  %v1621_v38 = vmax.f32 %v1549_v30, %v1585_v16  ;;  %v3702_v42 = vmax.f32 %v3049_v44, 0.0  ;;  %v3703_v4 = vmax.f32 %v3053_v45, 0.0  ;;  %v1442_v60 = vmax.f32 %v916_v21, 0.0  ;;  %v925_v44 = vpop.f32.mrf.mxu0 }
 0x13b   :  { %v1584_v22 = vmax.f32 %v3701_v41, %v1512_v40  ;;  %v931_v35 = vadd.f32 %v2074_v27, %v2912_v3  ;;  %v3371_v39 = vadd.f32 %v3067_v37, %v2912_v3  ;;  %v1514_v15 = vmax.f32 %v1276_v6, 0.0  ;;  %v3705_v37 = vld [vmem:[#allocation8_spill] sm:$0xff] }
 0x13c   :  { %v1551_v59 = vmax.f32 %v3702_v42, %v1443_v5  ;;  %v1587_v34 = vmax.f32 %v3703_v4, %v1515_v36  ;;  %1657 = vst [vmem:[%s3629_s3 + $0x58] sm:$0xff] %v1621_v38  ;;  %v1291_v30 = vadd.f32 %v2182_v33, %v2912_v3  ;;  %v3704_v45 = vmax.f32 %v3057_v43, 0.0  ;;  %v2185_v43 = vpop.f32.mrf.mxu1 }
 0x13d   :  { %v1620_v25 = vmax.f32 %v1548_v62, %v1584_v22  ;;  %v1445_v14 = vmax.f32 %v931_v35, 0.0  ;;  %v926_v31 = vadd.f32 %v2912_v3, %v925_v44  ;;  %v3382_v16 = vadd.f32 %v3705_v37, %v2912_v3  ;;  %v2077_v62 = vpop.f32.mrf.mxu0 }
 0x13e   :  { %v1623_v1 = vmax.f32 %v1551_v59, %v1587_v34  ;;  %v1550_v32 = vmax.f32 %v3704_v45, %v1442_v60  ;;  %v3706_v40 = vmax.f32 %v3061_v46, 0.0  ;;  %v1517_v26 = vmax.f32 %v1291_v30, 0.0  ;;  %v1295_v59 = vpop.f32.mrf.mxu1 }
 0x13f   :  { %1656 = vst [vmem:[%s3629_s3 + $0x50] sm:$0xff] %v1620_v25  ;;  %v1286_v10 = vadd.f32 %v2912_v3, %v1285_v28  ;;  %v3707_v5 = vmax.f32 %v3075_v50, 0.0  ;;  %v1444_v21 = vmax.f32 %v926_v31, 0.0  ;;  %v941_v38 = vadd.f32 %v2077_v62, %v2912_v3  ;;  %v935_v42 = vpop.f32.mrf.mxu0 }
 0x140   :  { %v1586_v11 = vmax.f32 %v3706_v40, %v1514_v15  ;;  %1659 = vst [vmem:[%s3629_s3 + $0x68] sm:$0xff] %v1623_v1  ;;  %v1301_v41 = vadd.f32 %v2185_v43, %v2912_v3  ;;  %v1425_v46 = vmax.f32 %v3371_v39, 0.0  ;;  %v3708_v6 = vmax.f32 %v3079_v23, 0.0  ;;  %v2188_v1 = vpop.f32.mrf.mxu1 }
 0x141   :  { %v1553_v36 = vmax.f32 %v3707_v5, %v1445_v14  ;;  %v1516_v33 = vmax.f32 %v1286_v10, 0.0  ;;  %v3709_v4 = vmax.f32 %v3084_v47, 0.0  ;;  %v1447_v60 = vmax.f32 %v941_v38, 0.0  ;;  %v2080_v28 = vpop.f32.mrf.mxu0  ;;  %v3711_v47 = vld [vmem:[#allocation9_spill] sm:$0xff] }
 0x142   :  { %v1622_v22 = vmax.f32 %v1550_v32, %v1586_v11  ;;  %v1589_v27 = vmax.f32 %v3708_v6, %v1517_v26  ;;  %v1519_v50 = vmax.f32 %v1301_v41, 0.0  ;;  %v936_v35 = vadd.f32 %v2912_v3, %v935_v42  ;;  %v3714_v11 = vld [vmem:[#allocation10_spill] sm:$0xff]  ;;  %v1305_v5 = vpop.f32.mrf.mxu1 }
 0x143   :  { %v1552_v34 = vmax.f32 %v3709_v4, %v1444_v21  ;;  %v1497_v25 = vmax.f32 %v3382_v16, 0.0  ;;  %v3710_v23 = vmax.f32 %v3088_v24, 0.0  ;;  %v1296_v44 = vadd.f32 %v2912_v3, %v1295_v59  ;;  %v945_v43 = vpop.f32.mrf.mxu0 }
 0x144   :  { %1658 = vst [vmem:[%s3629_s3 + $0x60] sm:$0xff] %v1622_v22  ;;  %v1625_v15 = vmax.f32 %v1553_v36, %v1589_v27  ;;  %v3712_v45 = vmax.f32 %v3711_v47, 0.0  ;;  %v3713_v14 = vmax.f32 %v3104_v54, 0.0  ;;  %v1446_v37 = vmax.f32 %v936_v35, 0.0  ;;  %v3716_v22 = vld [vmem:[#allocation11_spill] sm:$0xff] }
 0x145   :  { %v1588_v30 = vmax.f32 %v3710_v23, %v1516_v33  ;;  %v951_v40 = vadd.f32 %v2080_v28, %v2912_v3  ;;  %v3417_v26 = vadd.f32 %v2912_v3, %v3714_v11  ;;  %v1518_v10 = vmax.f32 %v1296_v44, 0.0  ;;  %v2083_v4 = vpop.f32.mrf.mxu0 }
 0x146   :  { %v1555_v32 = vmax.f32 %v3712_v45, %v1447_v60  ;;  %v1591_v31 = vmax.f32 %v3713_v14, %v1519_v50  ;;  %1661 = vst [vmem:[%s3629_s3 + $0x78] sm:$0xff] %v1625_v15  ;;  %v1311_v62 = vadd.f32 %v2188_v1, %v2912_v3  ;;  %v3715_v54 = vmax.f32 %v3108_v55, 0.0  ;;  %v2191_v55 = vpop.f32.mrf.mxu1 }
 0x147   :  { %v1624_v24 = vmax.f32 %v1552_v34, %v1588_v30  ;;  %v1449_v38 = vmax.f32 %v951_v40, 0.0  ;;  %v946_v41 = vadd.f32 %v2912_v3, %v945_v43  ;;  %v3428_v6 = vadd.f32 %v2912_v3, %v3716_v22  ;;  %v955_v1 = vpop.f32.mrf.mxu0  ;;  %v3726_v22 = vld [vmem:[#allocation12_spill] sm:$0xff] }
 0x148   :  { %v1627_v36 = vmax.f32 %v1555_v32, %v1591_v31  ;;  %v1554_v21 = vmax.f32 %v3715_v54, %v1446_v37  ;;  %v3717_v27 = vmax.f32 %v3112_v51, 0.0  ;;  %v1521_v42 = vmax.f32 %v1311_v62, 0.0  ;;  %v1315_v47 = vpop.f32.mrf.mxu1 }
 0x149   :  { %1660 = vst [vmem:[%s3629_s3 + $0x70] sm:$0xff] %v1624_v24  ;;  %v1306_v59 = vadd.f32 %v2912_v3, %v1305_v5  ;;  %v3718_v34 = vmax.f32 %v3116_v52, 0.0  ;;  %v1448_v50 = vmax.f32 %v946_v41, 0.0  ;;  %v961_v35 = vadd.f32 %v2083_v4, %v2912_v3 }
 0x14a   :  { %v1590_v33 = vmax.f32 %v3717_v27, %v1518_v10  ;;  %1663 = vst [vmem:[%s3629_s3 + $0x88] sm:$0xff] %v1627_v36  ;;  %v1321_v15 = vadd.f32 %v2191_v55, %v2912_v3  ;;  %v1424_v51 = vmax.f32 %v3417_v26, 0.0  ;;  %v3719_v30 = vmax.f32 %v3126_v57, 0.0  ;;  %v2086_v10 = vpop.f32.mrf.mxu0  ;;  %v2194_v62 = vpop.f32.mrf.mxu1  ;;  %v3724_v36 = vld [vmem:[#allocation17_spill] sm:$0xff] }
 0x14b   :  { %v1557_v60 = vmax.f32 %v3718_v34, %v1449_v38  ;;  %v1520_v28 = vmax.f32 %v1306_v59, 0.0  ;;  %v3720_v45 = vmax.f32 %v3130_v58, 0.0  ;;  %v1451_v14 = vmax.f32 %v961_v35, 0.0  ;;  %v3722_v58 = vld [vmem:[#allocation16_spill] sm:$0xff]  ;;  %v3727_v34 = vld [vmem:[#allocation18_spill] sm:$0xff] }
 0x14c   :  { %v1626_v23 = vmax.f32 %v1554_v21, %v1590_v33  ;;  %v1593_v44 = vmax.f32 %v3719_v30, %v1521_v42  ;;  %v1523_v52 = vmax.f32 %v1321_v15, 0.0  ;;  %v956_v31 = vadd.f32 %v2912_v3, %v955_v1  ;;  %v965_v59 = vpop.f32.mrf.mxu0  ;;  %v1325_v4 = vpop.f32.mrf.mxu1 }
 0x14d   :  { %v1556_v32 = vmax.f32 %v3720_v45, %v1448_v50  ;;  %v1496_v37 = vmax.f32 %v3428_v6, 0.0  ;;  %v3721_v57 = vmax.f32 %v3137_v48, 0.0  ;;  %v1316_v24 = vadd.f32 %v2912_v3, %v1315_v47 }
 0x14e   :  { %1662 = vst [vmem:[%s3629_s3 + $0x80] sm:$0xff] %v1626_v23  ;;  %v1629_v40 = vmax.f32 %v1557_v60, %v1593_v44  ;;  %v3723_v43 = vmax.f32 %v3722_v58, 0.0  ;;  %v3725_v54 = vmax.f32 %v3724_v36, 0.0  ;;  %v1450_v38 = vmax.f32 %v956_v31, 0.0  ;;  %v3729_v23 = vld [vmem:[#allocation13_spill] sm:$0xff]  ;;  %v3730_v44 = vld [vmem:[#allocation19_spill] sm:$0xff] }
 0x14f   :  { %v1592_v11 = vmax.f32 %v3721_v57, %v1520_v28  ;;  %v971_v41 = vadd.f32 %v2086_v10, %v2912_v3  ;;  %v3463_v27 = vadd.f32 %v3726_v22, %v2912_v3  ;;  %v1522_v33 = vmax.f32 %v1316_v24, 0.0 }
 0x150   :  { %v1559_v5 = vmax.f32 %v3723_v43, %v1451_v14  ;;  %v1595_v21 = vmax.f32 %v3725_v54, %v1523_v52  ;;  %1665 = vst [vmem:[%s3629_s3 + $0x98] sm:$0xff] %v1629_v40  ;;  %v1331_v42 = vadd.f32 %v2194_v62, %v2912_v3  ;;  %v3728_v60 = vmax.f32 %v3727_v34, 0.0  ;;  %v2197_v14 = vpop.f32.mrf.mxu1  ;;  %v3733_v62 = vld [vmem:[#allocation22_spill] sm:$0xff] }
 0x151   :  { %v1628_v48 = vmax.f32 %v1556_v32, %v1592_v11  ;;  %v1453_v35 = vmax.f32 %v971_v41, 0.0  ;;  %v966_v15 = vadd.f32 %v2912_v3, %v965_v59  ;;  %v3474_v30 = vadd.f32 %v3729_v23, %v2912_v3  ;;  %v2089_v32 = vpop.f32.mrf.mxu0  ;;  %v3737_v59 = vld [vmem:[#allocation24_spill] sm:$0xff] }
 0x152   :  { %v1631_v55 = vmax.f32 %v1559_v5, %v1595_v21  ;;  %v1558_v50 = vmax.f32 %v3728_v60, %v1450_v38  ;;  %v3731_v28 = vmax.f32 %v3730_v44, 0.0  ;;  %v1525_v47 = vmax.f32 %v1331_v42, 0.0  ;;  %v1335_v54 = vpop.f32.mrf.mxu1  ;;  %v3735_v21 = vld [vmem:[#allocation23_spill] sm:$0xff] }
 0x153   :  { %1664 = vst [vmem:[%s3629_s3 + $0x90] sm:$0xff] %v1628_v48  ;;  %v1326_v45 = vadd.f32 %v2912_v3, %v1325_v4  ;;  %v3732_v52 = vmax.f32 %v3171_v2, 0.0  ;;  %v1452_v40 = vmax.f32 %v966_v15, 0.0  ;;  %v981_v57 = vadd.f32 %v2089_v32, %v2912_v3  ;;  %v975_v36 = vpop.f32.mrf.mxu0 }
 0x154   :  { %v1594_v1 = vmax.f32 %v3731_v28, %v1522_v33  ;;  %1667 = vst [vmem:[%s3629_s3 + $0xa8] sm:$0xff] %v1631_v55  ;;  %v1341_v11 = vadd.f32 %v2197_v14, %v2912_v3  ;;  %v1427_v24 = vmax.f32 %v3463_v27, 0.0  ;;  %v3734_v58 = vmax.f32 %v3733_v62, 0.0 }
 0x155   :  { %v1561_v31 = vmax.f32 %v3732_v52, %v1453_v35  ;;  %v1524_v5 = vmax.f32 %v1326_v45, 0.0  ;;  %v3736_v38 = vmax.f32 %v3735_v21, 0.0  ;;  %v1455_v22 = vmax.f32 %v981_v57, 0.0  ;;  %v2092_v60 = vpop.f32.mrf.mxu0  ;;  %v3739_v35 = vld [vmem:[#allocation25_spill] sm:$0xff]  ;;  %v3742_v45 = vld [vmem:[#allocation14_spill] sm:$0xff] }
 0x156   :  { %v1630_v10 = vmax.f32 %v1558_v50, %v1594_v1  ;;  %v1597_v43 = vmax.f32 %v3734_v58, %v1525_v47  ;;  %v1527_v2 = vmax.f32 %v1341_v11, 0.0  ;;  %v976_v48 = vadd.f32 %v2912_v3, %v975_v36  ;;  %v2200_v50 = vpop.f32.mrf.mxu1  ;;  %v3745_v36 = vld [vmem:[#allocation28_spill] sm:$0xff] }
 0x157   :  { %v1560_v41 = vmax.f32 %v3736_v38, %v1452_v40  ;;  %v1499_v33 = vmax.f32 %v3474_v30, 0.0  ;;  %v3738_v4 = vmax.f32 %v3737_v59, 0.0  ;;  %v1336_v34 = vadd.f32 %v2912_v3, %v1335_v54  ;;  %v985_v40 = vpop.f32.mrf.mxu0 }
 0x158   :  { %1666 = vst [vmem:[%s3629_s3 + $0xa0] sm:$0xff] %v1630_v10  ;;  %v1633_v42 = vmax.f32 %v1561_v31, %v1597_v43  ;;  %v3740_v15 = vmax.f32 %v3739_v35, 0.0  ;;  %v3741_v44 = vmax.f32 %v3200_v8, 0.0  ;;  %v1454_v1 = vmax.f32 %v976_v48, 0.0  ;;  %v1345_v57 = vpop.f32.mrf.mxu1  ;;  %v3744_v43 = vld [vmem:[#allocation15_spill] sm:$0xff] }
 0x159   :  { %v1596_v55 = vmax.f32 %v3738_v4, %v1524_v5  ;;  %v991_v47 = vadd.f32 %v2092_v60, %v2912_v3  ;;  %v3509_v32 = vadd.f32 %v2912_v3, %v3742_v45  ;;  %v1526_v52 = vmax.f32 %v1336_v34, 0.0 }
 0x15a   :  { %v1563_v23 = vmax.f32 %v3740_v15, %v1455_v22  ;;  %v1599_v28 = vmax.f32 %v3741_v44, %v1527_v2  ;;  %1669 = vst [vmem:[%s3629_s3 + $0xb8] sm:$0xff] %v1633_v42  ;;  %v1351_v31 = vadd.f32 %v2200_v50, %v2912_v3  ;;  %v3743_v8 = vmax.f32 %v3204_v13, 0.0  ;;  %v2095_v22 = vpop.f32.mrf.mxu0  ;;  %v2203_v13 = vpop.f32.mrf.mxu1  ;;  %v3747_v2 = vld [vmem:[#allocation29_spill] sm:$0xff] }
 0x15b   :  { %v1632_v14 = vmax.f32 %v1560_v41, %v1596_v55  ;;  %v1457_v62 = vmax.f32 %v991_v47, 0.0  ;;  %v986_v58 = vadd.f32 %v2912_v3, %v985_v40  ;;  %v3520_v5 = vadd.f32 %v2912_v3, %v3744_v43  ;;  %v3750_v43 = vld [vmem:[#allocation21_spill] sm:$0xff] }
 0x15c   :  { %v1635_v11 = vmax.f32 %v1563_v23, %v1599_v28  ;;  %v1562_v10 = vmax.f32 %v3743_v8, %v1454_v1  ;;  %v3746_v54 = vmax.f32 %v3745_v36, 0.0  ;;  %v1529_v38 = vmax.f32 %v1351_v31, 0.0  ;;  %v995_v15 = vpop.f32.mrf.mxu0  ;;  %v1355_v23 = vpop.f32.mrf.mxu1 }
 0x15d   :  { %1668 = vst [vmem:[%s3629_s3 + $0xb0] sm:$0xff] %v1632_v14  ;;  %v1346_v41 = vadd.f32 %v2912_v3, %v1345_v57  ;;  %v3748_v48 = vmax.f32 %v3747_v2, 0.0  ;;  %v1456_v59 = vmax.f32 %v986_v58, 0.0  ;;  %v1001_v4 = vadd.f32 %v2095_v22, %v2912_v3 }
 0x15e   :  { %v1598_v21 = vmax.f32 %v3746_v54, %v1526_v52  ;;  %1671 = vst [vmem:[%s3629_s3 + $0xc8] sm:$0xff] %v1635_v11  ;;  %v1361_v55 = vadd.f32 %v2203_v13, %v2912_v3  ;;  %v1426_v34 = vmax.f32 %v3509_v32, 0.0  ;;  %v1601_v50 = vmax.f32 %v1493_v61, %v1529_v38  ;;  %v2098_v52 = vpop.f32.mrf.mxu0  ;;  %v2206_v31 = vpop.f32.mrf.mxu1  ;;  %v3749_v11 = vld [vmem:[#allocation20_spill] sm:$0xff] }
 0x15f   :  { %v1565_v42 = vmax.f32 %v3748_v48, %v1457_v62  ;;  %v1528_v35 = vmax.f32 %v1346_v41, 0.0  ;;  %v1564_v44 = vmax.f32 %v1420_v19, %v1456_v59  ;;  %v1459_v28 = vmax.f32 %v1001_v4, 0.0 }
 0x160   :  { %v1634_v60 = vmax.f32 %v1562_v10, %v1598_v21  ;;  %v1531_v1 = vmax.f32 %v1361_v55, 0.0  ;;  %v996_v47 = vadd.f32 %v2912_v3, %v995_v15  ;;  %v1498_v45 = vmax.f32 %v3520_v5, 0.0  ;;  %v1005_v20 = vpop.f32.mrf.mxu0 }
 0x161   :  { %v1637_v14 = vmax.f32 %v1565_v42, %v1601_v50  ;;  %v1600_v29 = vmax.f32 %v1492_v12, %v1528_v35  ;;  %v1356_v61 = vadd.f32 %v2912_v3, %v1355_v23  ;;  %v1567_v0 = vmax.f32 %v1423_v63, %v1459_v28  ;;  %v1365_v63 = vpop.f32.mrf.mxu1  ;;  %v3751_v50 = vld [vmem:[#allocation26_spill] sm:$0xff] }
 0x162   :  { %1670 = vst [vmem:[%s3629_s3 + $0xc0] sm:$0xff] %v1634_v60  ;;  %v1603_v19 = vmax.f32 %v1495_v49, %v1531_v1  ;;  %v1458_v40 = vmax.f32 %v996_v47, 0.0  ;;  %v1011_v57 = vadd.f32 %v2098_v52, %v2912_v3  ;;  %v3555_v8 = vadd.f32 %v3749_v11, %v2912_v3  ;;  %v2101_v41 = vpop.f32.mrf.mxu0  ;;  %v3752_v47 = vld [vmem:[#allocation27_spill] sm:$0xff]  ;;  %v2227_v52 = vld [vmem:[%s3628_s2] ss:$0 sm:$0xff] }
 0x163   :  { %1673 = vst [vmem:[%s3629_s3 + $0xd8] sm:$0xff] %v1637_v14  ;;  %v1636_v56 = vmax.f32 %v1564_v44, %v1600_v29  ;;  %v1530_v12 = vmax.f32 %v1356_v61, 0.0  ;;  %v1371_v10 = vadd.f32 %v2206_v31, %v2912_v3  ;;  %v1006_v58 = vadd.f32 %v2912_v3, %v1005_v20  ;;  %v2209_v22 = vpop.f32.mrf.mxu1 }
 0x164   :  { %v1639_v62 = vmax.f32 %v1567_v0, %v1603_v19  ;;  %v1566_v7 = vmax.f32 %v1422_v17, %v1458_v40  ;;  %v1461_v49 = vmax.f32 %v1011_v57, 0.0  ;;  %v1211_v36 = vadd.f32 %v3750_v43, %v2912_v3  ;;  %v1015_v59 = vpop.f32.mrf.mxu0 }
 0x165   :  { %1672 = vst [vmem:[%s3629_s3 + $0xd0] sm:$0xff] %v1636_v56  ;;  %v1602_v54 = vmax.f32 %v1494_v53, %v1530_v12  ;;  %v1533_v21 = vmax.f32 %v1371_v10, 0.0  ;;  %v1366_v38 = vadd.f32 %v2912_v3, %v1365_v63  ;;  %v1460_v17 = vmax.f32 %v1006_v58, 0.0  ;;  %v1375_v4 = vpop.f32.mrf.mxu1 }
 0x166   :  { %1675 = vst [vmem:[%s3629_s3 + $0xe8] sm:$0xff] %v1639_v62  ;;  %v1569_v18 = vmax.f32 %v1425_v46, %v1461_v49  ;;  %v1021_v13 = vadd.f32 %v2101_v41, %v2912_v3  ;;  %v1381_v2 = vadd.f32 %v2209_v22, %v2912_v3  ;;  %v1429_v9 = vmax.f32 %v3555_v8, 0.0  ;;  %v2104_v23 = vpop.f32.mrf.mxu0 }
 0x167   :  { %v1638_v53 = vmax.f32 %v1566_v7, %v1602_v54  ;;  %v1605_v48 = vmax.f32 %v1497_v25, %v1533_v21  ;;  %v1532_v42 = vmax.f32 %v1366_v38, 0.0  ;;  %v1568_v55 = vmax.f32 %v1424_v51, %v1460_v17  ;;  %v2212_v26 = vpop.f32.mrf.mxu1 }
 0x168   :  { %v1463_v60 = vmax.f32 %v1021_v13, 0.0  ;;  %v1535_v39 = vmax.f32 %v1381_v2, 0.0  ;;  %v1016_v46 = vadd.f32 %v2912_v3, %v1015_v59  ;;  %v846_v35 = vadd.f32 %v2912_v3, %v3751_v50  ;;  %v1025_v61 = vpop.f32.mrf.mxu0 }
 0x169   :  { %1674 = vst [vmem:[%s3629_s3 + $0xe0] sm:$0xff] %v1638_v53  ;;  %v1641_v15 = vmax.f32 %v1569_v18, %v1605_v48  ;;  %v1604_v16 = vmax.f32 %v1496_v37, %v1532_v42  ;;  %v1376_v25 = vadd.f32 %v2912_v3, %v1375_v4  ;;  %v1031_v1 = vadd.f32 %v2104_v23, %v2912_v3  ;;  %v1385_v27 = vpop.f32.mrf.mxu1 }
 0x16a   :  { %v1571_v51 = vmax.f32 %v1427_v24, %v1463_v60  ;;  %v1607_v44 = vmax.f32 %v1499_v33, %v1535_v39  ;;  %v1462_v28 = vmax.f32 %v1016_v46, 0.0  ;;  %v1206_v14 = vadd.f32 %v2912_v3, %v3752_v47 }
 0x16b   :  { %1677 = vst [vmem:[%s3629_s3 + $0xf8] sm:$0xff] %v1641_v15  ;;  %v1640_v6 = vmax.f32 %v1568_v55, %v1604_v16  ;;  %v1534_v37 = vmax.f32 %v1376_v25, 0.0  ;;  %v1391_v29 = vadd.f32 %v2212_v26, %v2912_v3  ;;  %v1465_v33 = vmax.f32 %v1031_v1, 0.0 }
 0x16c   :  { %v1643_v24 = vmax.f32 %v1571_v51, %v1607_v44  ;;  %v1570_v30 = vmax.f32 %v1426_v34, %v1462_v28  ;;  %v1026_v31 = vadd.f32 %v2227_v52, %v1025_v61  ;;  %v1501_v0 = vmax.f32 %v1211_v36, 0.0 }
 0x16d   :  { %1676 = vst [vmem:[%s3629_s3 + $0xf0] sm:$0xff] %v1640_v6  ;;  %v1606_v3 = vmax.f32 %v1498_v45, %v1534_v37  ;;  %v1537_v19 = vmax.f32 %v1391_v29, 0.0  ;;  %v1386_v40 = vadd.f32 %v2227_v52, %v1385_v27  ;;  %v1428_v57 = vmax.f32 %v846_v35, 0.0 }
 0x16e   :  { %1679 = vst [vmem:[%s3629_s3 + $0x108] sm:$0xff] %v1643_v24  ;;  %v1573_v32 = vmax.f32 %v1429_v9, %v1465_v33  ;;  %v1464_v34 = vmax.f32 %v1026_v31, 0.0  ;;  %v1500_v11 = vmax.f32 %v1206_v14, 0.0 }
 0x16f   :  { %v1642_v8 = vmax.f32 %v1570_v30, %v1606_v3  ;;  %v1609_v56 = vmax.f32 %v1501_v0, %v1537_v19  ;;  %v1536_v12 = vmax.f32 %v1386_v40, 0.0 }
 0x170   :  { %v1572_v10 = vmax.f32 %v1428_v57, %v1464_v34 }
 0x171   :  { %1678 = vst [vmem:[%s3629_s3 + $0x100] sm:$0xff] %v1642_v8  ;;  %v1645_v5 = vmax.f32 %v1573_v32, %v1609_v56  ;;  %v1608_v45 = vmax.f32 %v1500_v11, %v1536_v12 }
 0x173   :  { %1681 = vst [vmem:[%s3629_s3 + $0x118] sm:$0xff] %v1645_v5  ;;  %v1644_v20 = vmax.f32 %v1572_v10, %v1608_v45 }
 0x175   :  { %1680 = vst [vmem:[%s3629_s3 + $0x110] sm:$0xff] %v1644_v20 }

// kernel: net_forward.5
= control target key start
LH: loop header
LB: loop body
LE: loop exit
PB: predicated region body
PF: predicated region fallthrough
CT: control target
= control target key end

     0   :  { %vm148_vm0 = vcmask 1045504   ;;  %v3135_v1 = vmov 0.0   ;;  %vm3136_vm1 = vmmov 0   ;;  %s3913_s0 = inlined_call_operand.vmem [shape: f32[200,54], index: 0, kind: input, shape index: {}]   ;;  %s3914_s1 = inlined_call_operand.vmem [shape: f32[54,128], index: 1, kind: input, shape index: {}]   ;;  %s3915_s2 = inlined_call_operand.vmem [shape: f32[1,128], index: 2, kind: input, shape index: {}]   ;;  %s3916_s3 = inlined_call_operand.vmem [shape: f32[400,128], index: 3, kind: input, shape index: {}]   ;;  %s3917_s4 = inlined_call_operand.vmem [shape: f32[1,128], index: 4, kind: input, shape index: {}]   ;;  %s3918_s5 = inlined_call_operand.vmem [shape: f32[128,128], index: 5, kind: input, shape index: {}]   ;;  %s3919_s6 = inlined_call_operand.vmem [shape: f32[1,128], index: 6, kind: input, shape index: {}]   ;;  %s3920_s7 = inlined_call_operand.vmem [shape: f32[128,128], index: 7, kind: input, shape index: {}]   ;;  %s3921_s8 = inlined_call_operand.vmem [shape: f32[1,128], index: 8, kind: input, shape index: {}]   ;;  %s3922_s9 = inlined_call_operand.hbm [shape: f32[2,128], index: 9, kind: output, shape index: {}]  }
   0x1   :  { %v64_v0 = vld [vmem:[%s3914_s1 + $0x30] sm:$0x3f]  ;;  %2776 = vmatprep.subr.mxu0 %v3135_v1  ;;  %v63_v2 = vld [vmem:[%s3914_s1 + $0x28] sm:$0xff]  ;;  %2865 = vmatprep.subr.mxu1 %v3135_v1  ;;  %v62_v3 = vld [vmem:[%s3914_s1 + $0x20] sm:$0xff] }
   0x2   :  { %2777 = vmatpush3.msk.msra.mxu0 %vm148_vm0, %v64_v0  ;;  %2790 = vmatprep.mubr.msk.f32.mxu0 %vm3136_vm1, %v3135_v1  ;;  %v61_v4 = vld [vmem:[%s3914_s1 + $0x18] sm:$0xff]  ;;  %v60_v5 = vld [vmem:[%s3914_s1 + $0x10] sm:$0xff]  ;;  %v59_v6 = vld [vmem:[%s3914_s1 + $0x8] sm:$0xff] }
   0x3   :  { %2778 = vmatprep.subr.mxu0 %v3135_v1  ;;  %2869 = vmatprep.mubr.msk.f32.mxu1 %vm3136_vm1, %v3135_v1  ;;  %v58_v7 = vld [vmem:[%s3914_s1] sm:$0xff] }
   0x4   :  { %2779 = vmatpush3.msra.mxu0 %v63_v2 }
   0x5   :  { %2780 = vmatprep.subr.mxu0 %v3135_v1 }
   0x6   :  { %2781 = vmatpush3.msra.mxu0 %v62_v3 }
   0x7   :  { %2782 = vmatprep.subr.mxu0 %v3135_v1 }
   0x8   :  { %2783 = vmatpush3.msra.mxu0 %v61_v4 }
   0x9   :  { %2784 = vmatprep.subr.mxu0 %v3135_v1 }
   0xa   :  { %2785 = vmatpush3.msra.mxu0 %v60_v5 }
   0xb   :  { %2786 = vmatprep.subr.mxu0 %v3135_v1 }
   0xc   :  { %14 = vsyncpa [#allocation3], 0  ;;  %2787 = vmatpush3.msra.mxu0 %v59_v6  ;;  %v33_v8 = vld [vmem:[%s3913_s0] sm:$0xff]  ;;  %vm72_vm2 = vcmask 441344   ;;  %v34_v9 = vld [vmem:[%s3913_s0 + $0x8] sm:$0xff]  ;;  %vm442_vm3 = vcmask 1043456  }
   0xd   :  { %2788 = vmatprep.subr.mxu0 %v3135_v1  ;;  %v35_v10 = vld [vmem:[%s3913_s0 + $0x10] sm:$0xff]  ;;  %v36_v11 = vld [vmem:[%s3913_s0 + $0x18] sm:$0xff]  ;;  %v37_v12 = vld [vmem:[%s3913_s0 + $0x20] sm:$0xff]  ;;  %vm476_vm4 = vcmask 130048   ;;  %s3137_s1 = smov [#allocation2]  }
   0xe   :  { %2789 = vmatpush3.msra.mxu0 %v58_v7  ;;  %v38_v13 = vld [vmem:[%s3913_s0 + $0x28] sm:$0xff]  ;;  %v39_v14 = vld [vmem:[%s3913_s0 + $0x30] sm:$0xff]  ;;  %v40_v15 = vld [vmem:[%s3913_s0 + $0x38] sm:$0xff]  ;;  %s2572_s27 = sshll.u32 %s3137_s1, 4  ;;  %s2573_s27 = int_to_ptr.vmem [resolvable:$true] %s2572_s27 }
   0xf   :  { %2791 = vmatmul.mubr.msk.f32.vlgmr.msra.gmra.mxu0 %vm72_vm2, %v33_v8  ;;  %3040 = vmatprep.subr.mxu0 %v3135_v1  ;;  %v41_v16 = vld [vmem:[%s3913_s0 + $0x40] sm:$0xff]  ;;  %v42_v17 = vld [vmem:[%s3913_s0 + $0x48] sm:$0xff]  ;;  %v43_v18 = vld [vmem:[%s3913_s0 + $0x50] sm:$0xff]  ;;  %p3118_p1 = scmp.lt.s32.totalorder %s2573_s27, %s2573_s27 }
  0x10   :  { %2793 = vmatprep.mubr.msk.f32.mxu0 %vm3136_vm1, %v3135_v1  ;;  %v44_v19 = vld [vmem:[%s3913_s0 + $0x58] sm:$0xff]  ;;  %v45_v20 = vld [vmem:[%s3913_s0 + $0x60] sm:$0xff]  ;;  %v46_v21 = vld [vmem:[%s3913_s0 + $0x68] sm:$0xff] }
  0x11   :  { %v47_v22 = vld [vmem:[%s3913_s0 + $0x70] sm:$0xff]  ;;  %v48_v23 = vld [vmem:[%s3913_s0 + $0x78] sm:$0xff]  ;;  %v49_v24 = vld [vmem:[%s3913_s0 + $0x80] sm:$0xff] }
  0x12   :  { %v50_v25 = vld [vmem:[%s3913_s0 + $0x88] sm:$0xff]  ;;  %v51_v26 = vld [vmem:[%s3913_s0 + $0x90] sm:$0xff]  ;;  %v52_v27 = vld [vmem:[%s3913_s0 + $0x98] sm:$0xff] }
  0x13   :  { %2794 = vmatmul.mubr.msk.f32.gmra.mxu0 %vm72_vm2, %v34_v9  ;;  %v53_v28 = vld [vmem:[%s3913_s0 + $0xa0] sm:$0xff]  ;;  %v54_v29 = vld [vmem:[%s3913_s0 + $0xa8] sm:$0xff]  ;;  %v55_v30 = vld [vmem:[%s3913_s0 + $0xb0] sm:$0xff] }
  0x14   :  { %2796 = vmatprep.mubr.msk.f32.mxu0 %vm3136_vm1, %v3135_v1  ;;  %v56_v31 = vld [vmem:[%s3913_s0 + $0xb8] sm:$0xff]  ;;  %v57_v32 = vld [vmem:[%s3913_s0 + $0xc0] sm:$0xff]  ;;  %v472_v34 = vld [vmem:[%s3916_s3 + $0x10] sm:$0xff] }
  0x15   :  { %v473_v33 = vld [vmem:[%s3916_s3 + $0x18] sm:$0xff]  ;;  %v3386_v49 = vld [vmem:[%s3915_s2] ss:$0 sm:$0xff] }
  0x16   :  { %2866 = vmatpush3.msra.mxu1 %v473_v33 }
  0x17   :  { %2797 = vmatmul.mubr.msk.f32.gmra.mxu0 %vm72_vm2, %v35_v10  ;;  %2867 = vmatprep.subr.mxu1 %v3135_v1 }
  0x18   :  { %2799 = vmatprep.mubr.msk.f32.mxu0 %vm3136_vm1, %v3135_v1  ;;  %2868 = vmatpush3.msra.mxu1 %v472_v34 }
  0x19   :  { %2872 = vmatprep.subr.mxu1 %v3135_v1 }
  0x1b   :  { %2800 = vmatmul.mubr.msk.f32.gmra.mxu0 %vm72_vm2, %v36_v11 }
  0x1c   :  { %2802 = vmatprep.mubr.msk.f32.mxu0 %vm3136_vm1, %v3135_v1 }
  0x1f   :  { %2803 = vmatmul.mubr.msk.f32.gmra.mxu0 %vm72_vm2, %v37_v12 }
  0x20   :  { %2805 = vmatprep.mubr.msk.f32.mxu0 %vm3136_vm1, %v3135_v1 }
  0x23   :  { %2806 = vmatmul.mubr.msk.f32.gmra.mxu0 %vm72_vm2, %v38_v13 }
  0x24   :  { %2808 = vmatprep.mubr.msk.f32.mxu0 %vm3136_vm1, %v3135_v1 }
  0x27   :  { %2809 = vmatmul.mubr.msk.f32.gmra.mxu0 %vm72_vm2, %v39_v14 }
  0x28   :  { %2811 = vmatprep.mubr.msk.f32.mxu0 %vm3136_vm1, %v3135_v1 }
  0x2b   :  { %2812 = vmatmul.mubr.msk.f32.gmra.mxu0 %vm72_vm2, %v40_v15 }
  0x2c   :  { %2814 = vmatprep.mubr.msk.f32.mxu0 %vm3136_vm1, %v3135_v1 }
  0x2f   :  { %2815 = vmatmul.mubr.msk.f32.gmra.mxu0 %vm72_vm2, %v41_v16 }
  0x30   :  { %2817 = vmatprep.mubr.msk.f32.mxu0 %vm3136_vm1, %v3135_v1 }
  0x33   :  { %2818 = vmatmul.mubr.msk.f32.gmra.mxu0 %vm72_vm2, %v42_v17 }
  0x34   :  { %2820 = vmatprep.mubr.msk.f32.mxu0 %vm3136_vm1, %v3135_v1 }
  0x37   :  { %2821 = vmatmul.mubr.msk.f32.gmra.mxu0 %vm72_vm2, %v43_v18 }
  0x38   :  { %2823 = vmatprep.mubr.msk.f32.mxu0 %vm3136_vm1, %v3135_v1 }
  0x3b   :  { %2824 = vmatmul.mubr.msk.f32.gmra.mxu0 %vm72_vm2, %v44_v19 }
  0x3c   :  { %2826 = vmatprep.mubr.msk.f32.mxu0 %vm3136_vm1, %v3135_v1 }
  0x3f   :  { %2827 = vmatmul.mubr.msk.f32.gmra.mxu0 %vm72_vm2, %v45_v20 }
  0x40   :  { %2829 = vmatprep.mubr.msk.f32.mxu0 %vm3136_vm1, %v3135_v1 }
  0x43   :  { %2830 = vmatmul.mubr.msk.f32.gmra.mxu0 %vm72_vm2, %v46_v21 }
  0x44   :  { %2832 = vmatprep.mubr.msk.f32.mxu0 %vm3136_vm1, %v3135_v1 }
  0x47   :  { %2833 = vmatmul.mubr.msk.f32.gmra.mxu0 %vm72_vm2, %v47_v22 }
  0x48   :  { %2835 = vmatprep.mubr.msk.f32.mxu0 %vm3136_vm1, %v3135_v1 }
  0x4b   :  { %2836 = vmatmul.mubr.msk.f32.gmra.mxu0 %vm72_vm2, %v48_v23 }
  0x4c   :  { %2838 = vmatprep.mubr.msk.f32.mxu0 %vm3136_vm1, %v3135_v1 }
  0x4f   :  { %2839 = vmatmul.mubr.msk.f32.gmra.mxu0 %vm72_vm2, %v49_v24 }
  0x50   :  { %2841 = vmatprep.mubr.msk.f32.mxu0 %vm3136_vm1, %v3135_v1 }
  0x53   :  { %2842 = vmatmul.mubr.msk.f32.gmra.mxu0 %vm72_vm2, %v50_v25 }
  0x54   :  { %2844 = vmatprep.mubr.msk.f32.mxu0 %vm3136_vm1, %v3135_v1 }
  0x57   :  { %2845 = vmatmul.mubr.msk.f32.gmra.mxu0 %vm72_vm2, %v51_v26 }
  0x58   :  { %2847 = vmatprep.mubr.msk.f32.mxu0 %vm3136_vm1, %v3135_v1 }
  0x5b   :  { %2848 = vmatmul.mubr.msk.f32.gmra.mxu0 %vm72_vm2, %v52_v27 }
  0x5c   :  { %2850 = vmatprep.mubr.msk.f32.mxu0 %vm3136_vm1, %v3135_v1 }
  0x5f   :  { %2851 = vmatmul.mubr.msk.f32.gmra.mxu0 %vm72_vm2, %v53_v28 }
  0x60   :  { %2853 = vmatprep.mubr.msk.f32.mxu0 %vm3136_vm1, %v3135_v1 }
  0x63   :  { %2854 = vmatmul.mubr.msk.f32.gmra.mxu0 %vm72_vm2, %v54_v29 }
  0x64   :  { %2856 = vmatprep.mubr.msk.f32.mxu0 %vm3136_vm1, %v3135_v1 }
  0x67   :  { %2857 = vmatmul.mubr.msk.f32.gmra.mxu0 %vm72_vm2, %v55_v30 }
  0x68   :  { %2859 = vmatprep.mubr.msk.f32.mxu0 %vm3136_vm1, %v3135_v1 }
  0x6b   :  { %2860 = vmatmul.mubr.msk.f32.gmra.mxu0 %vm72_vm2, %v56_v31 }
  0x6c   :  { %2862 = vmatprep.mubr.msk.f32.mxu0 %vm3136_vm1, %v3135_v1 }
  0x6f   :  { %2863 = vmatmul.mubr.msk.f32.gmra.mxu0 %vm72_vm2, %v57_v32 }
  0x70   :  { %3072 = vmatprep.mubr.msk.f32.mxu0 %vm3136_vm1, %v3135_v1 }
  0xcf   :  { %v3381_v35 = vpop.f32.mrf.mxu0 }
  0xd1   :  { %v2792_v36 = vpop.f32.mrf.mxu0 }
  0xd3   :  { %v223_v37 = vpop.f32.mrf.mxu0 }
  0xd4   :  { %v224_v56 = vadd.f32 %v3386_v49, %v223_v37 }
  0xd5   :  { %v2795_v38 = vpop.f32.mrf.mxu0 }
  0xd6   :  { %v343_v63 = vmax.f32 %v224_v56, 0.0 }
  0xd7   :  { %v228_v39 = vpop.f32.mrf.mxu0 }
  0xd8   :  { %v229_v0 = vadd.f32 %v3386_v49, %v228_v39 }
  0xd9   :  { %v2798_v40 = vpop.f32.mrf.mxu0 }
  0xda   :  { %v344_v9 = vmax.f32 %v229_v0, 0.0 }
  0xdb   :  { %v233_v41 = vpop.f32.mrf.mxu0 }
  0xdc   :  { %v234_v10 = vadd.f32 %v3386_v49, %v233_v41 }
  0xdd   :  { %v2801_v42 = vpop.f32.mrf.mxu0 }
  0xde   :  { %v345_v18 = vmax.f32 %v234_v10, 0.0 }
  0xdf   :  { %v238_v43 = vpop.f32.mrf.mxu0 }
  0xe0   :  { %v239_v19 = vadd.f32 %v3386_v49, %v238_v43 }
  0xe1   :  { %v2804_v44 = vpop.f32.mrf.mxu0 }
  0xe2   :  { %v346_v28 = vmax.f32 %v239_v19, 0.0 }
  0xe3   :  { %v243_v45 = vpop.f32.mrf.mxu0 }
  0xe4   :  { %v244_v29 = vadd.f32 %v3386_v49, %v243_v45 }
  0xe5   :  { %v2807_v46 = vpop.f32.mrf.mxu0 }
  0xe6   :  { %v347_v38 = vmax.f32 %v244_v29, 0.0 }
  0xe7   :  { %v248_v47 = vpop.f32.mrf.mxu0 }
  0xe8   :  { %v249_v25 = vadd.f32 %v3386_v49, %v248_v47 }
  0xe9   :  { %v2810_v48 = vpop.f32.mrf.mxu0 }
  0xea   :  { %v348_v36 = vmax.f32 %v249_v25, 0.0 }
  0xeb   :  { %v253_v50 = vpop.f32.mrf.mxu0 }
  0xec   :  { %v254_v51 = vadd.f32 %v3386_v49, %v253_v50 }
  0xed   :  { %v2813_v52 = vpop.f32.mrf.mxu0 }
  0xee   :  { %v349_v54 = vmax.f32 %v254_v51, 0.0 }
  0xef   :  { %v258_v53 = vpop.f32.mrf.mxu0 }
  0xf0   :  { %v259_v55 = vadd.f32 %v3386_v49, %v258_v53  ;;  %v3391_v60 = vrot.slane %v349_v54, 2 }
  0xf1   :  { %v2816_v57 = vpop.f32.mrf.mxu0 }
  0xf2   :  { %v350_v58 = vmax.f32 %v259_v55, 0.0 }
  0xf3   :  { %v263_v59 = vpop.f32.mrf.mxu0 }
  0xf4   :  { %v377_v61 = vrot.slane %v350_v58, 2  ;;  %v264_v62 = vadd.f32 %v3386_v49, %v263_v59 }
  0xf5   :  { %v2819_v2 = vpop.f32.mrf.mxu0 }
  0xf6   :  { %v378_v3 = vsel %vm148_vm0, %v3391_v60, %v377_v61  ;;  %v351_v4 = vmax.f32 %v264_v62, 0.0 }
  0xf7   :  { %v3397_v5 = vmax.f32 %v343_v63, %v378_v3  ;;  %v268_v6 = vpop.f32.mrf.mxu0 }
  0xf8   :  { %v379_v7 = vrot.slane %v351_v4, 2  ;;  %v269_v8 = vadd.f32 %v3386_v49, %v268_v6 }
  0xf9   :  { %v2822_v11 = vpop.f32.mrf.mxu0 }
  0xfa   :  { %v380_v12 = vsel %vm148_vm0, %v377_v61, %v379_v7  ;;  %v352_v13 = vmax.f32 %v269_v8, 0.0  ;;  %v219_v8 = vadd.f32 %v3386_v49, %v3381_v35  ;;  %v374_v11 = vrot.slane %v348_v36, 2 }
  0xfb   :  { %v3402_v14 = vmax.f32 %v344_v9, %v380_v12  ;;  %v273_v15 = vpop.f32.mrf.mxu0 }
  0xfc   :  { %v381_v16 = vrot.slane %v352_v13, 2  ;;  %v274_v17 = vadd.f32 %v3386_v49, %v273_v15 }
  0xfd   :  { %v2825_v20 = vpop.f32.mrf.mxu0 }
  0xfe   :  { %v382_v21 = vsel %vm148_vm0, %v379_v7, %v381_v16  ;;  %v353_v22 = vmax.f32 %v274_v17, 0.0  ;;  %v376_v17 = vsel %vm148_vm0, %v374_v11, %v3391_v60  ;;  %v342_v20 = vmax.f32 %v219_v8, 0.0 }
  0xff   :  { %v3407_v23 = vmax.f32 %v345_v18, %v382_v21  ;;  %v278_v24 = vpop.f32.mrf.mxu0 }
 0x100   :  { %v383_v26 = vrot.slane %v353_v22, 2  ;;  %v279_v27 = vadd.f32 %v3386_v49, %v278_v24 }
 0x101   :  { %v2828_v30 = vpop.f32.mrf.mxu0 }
 0x102   :  { %v384_v31 = vsel %vm148_vm0, %v381_v16, %v383_v26  ;;  %v354_v32 = vmax.f32 %v279_v27, 0.0 }
 0x103   :  { %v3413_v33 = vmax.f32 %v346_v28, %v384_v31  ;;  %v283_v34 = vpop.f32.mrf.mxu0 }
 0x104   :  { %v385_v37 = vrot.slane %v354_v32, 2  ;;  %v284_v2 = vadd.f32 %v3386_v49, %v283_v34 }
 0x105   :  { %v2831_v39 = vpop.f32.mrf.mxu0 }
 0x106   :  { %v386_v40 = vsel %vm148_vm0, %v383_v26, %v385_v37  ;;  %v3416_v41 = vmax.f32 %v348_v36, %v385_v37  ;;  %v355_v12 = vmax.f32 %v284_v2, 0.0  ;;  %v394_v26 = vmax.f32 %v342_v20, %v376_v17  ;;  %v774_v20 = vld [vmem:[%s3916_s3 + $0x48] sm:$0xff] }
 0x107   :  { %v3418_v42 = vmax.f32 %v347_v38, %v386_v40  ;;  %v288_v43 = vpop.f32.mrf.mxu0 }
 0x108   :  { %v289_v36 = vadd.f32 %v3386_v49, %v288_v43 }
 0x109   :  { %v2834_v44 = vpop.f32.mrf.mxu0 }
 0x10b   :  { %v293_v45 = vpop.f32.mrf.mxu0 }
 0x10c   :  { %v294_v28 = vadd.f32 %v3386_v49, %v293_v45  ;;  %v471_v45 = vld [vmem:[%s3916_s3 + $0x8] sm:$0xff] }
 0x10d   :  { %v2837_v46 = vpop.f32.mrf.mxu0 }
 0x10e   :  { %v357_v46 = vmax.f32 %v294_v28, 0.0  ;;  %v1002_v28 = vld [vmem:[%s3916_s3 + $0x78] sm:$0xff] }
 0x10f   :  { %v298_v47 = vpop.f32.mrf.mxu0 }
 0x110   :  { %v299_v37 = vadd.f32 %v3386_v49, %v298_v47  ;;  %v470_v47 = vld [vmem:[%s3916_s3] sm:$0xff] }
 0x111   :  { %v2840_v48 = vpop.f32.mrf.mxu0 }
 0x113   :  { %v3420_v50 = vpop.f32.mrf.mxu0 }
 0x115   :  { %v2843_v51 = vpop.f32.mrf.mxu0 }
 0x117   :  { %v308_v52 = vpop.f32.mrf.mxu0 }
 0x118   :  { %v3423_v53 = vadd.f32 %v3386_v49, %v308_v52 }
 0x119   :  { %v2846_v54 = vpop.f32.mrf.mxu0 }
 0x11a   :  { %v360_v56 = vmax.f32 %v3423_v53, 0.0  ;;  %v356_v54 = vmax.f32 %v289_v36, 0.0  ;;  %v697_v53 = vld [vmem:[%s3916_s3 + $0x30] sm:$0xff]  ;;  %v1154_v36 = vld [vmem:[%s3916_s3 + $0x98] sm:$0xff] }
 0x11b   :  { %v313_v55 = vpop.f32.mrf.mxu0 }
 0x11c   :  { %v314_v57 = vadd.f32 %v3386_v49, %v313_v55  ;;  %v408_v62 = vrot.slane %v360_v56, 2  ;;  %v358_v55 = vmax.f32 %v299_v37, 0.0  ;;  %v1153_v37 = vld [vmem:[%s3916_s3 + $0x90] sm:$0xff] }
 0x11d   :  { %v2849_v58 = vpop.f32.mrf.mxu0 }
 0x11e   :  { %v361_v59 = vmax.f32 %v314_v57, 0.0  ;;  %v304_v57 = vadd.f32 %v3386_v49, %v3420_v50  ;;  %v621_v50 = vld [vmem:[%s3916_s3 + $0x20] sm:$0xff] }
 0x11f   :  { %v318_v61 = vpop.f32.mrf.mxu0 }
 0x120   :  { %v409_v63 = vrot.slane %v361_v59, 2  ;;  %v319_v0 = vadd.f32 %v3386_v49, %v318_v61 }
 0x121   :  { %v2852_v3 = vpop.f32.mrf.mxu0 }
 0x122   :  { %v410_v4 = vsel %vm148_vm0, %v408_v62, %v409_v63  ;;  %v362_v6 = vmax.f32 %v319_v0, 0.0  ;;  %v359_v3 = vmax.f32 %v304_v57, 0.0 }
 0x123   :  { %v323_v7 = vpop.f32.mrf.mxu0  ;;  %v428_v13 = vmax.f32 %v354_v32, %v410_v4 }
 0x124   :  { %v411_v9 = vrot.slane %v362_v6, 2  ;;  %v324_v10 = vadd.f32 %v3386_v49, %v323_v7 }
 0x125   :  { %v2855_v15 = vpop.f32.mrf.mxu0  ;;  %v443_v22 = vrot.slane %v428_v13, 4 }
 0x126   :  { %v412_v16 = vsel %vm148_vm0, %v409_v63, %v411_v9  ;;  %v363_v21 = vmax.f32 %v324_v10, 0.0  ;;  %v622_v63 = vld [vmem:[%s3916_s3 + $0x28] sm:$0xff]  ;;  %v698_v10 = vld [vmem:[%s3916_s3 + $0x38] sm:$0xff] }
 0x127   :  { %v3438_v18 = vmax.f32 %v355_v12, %v412_v16  ;;  %v328_v19 = vpop.f32.mrf.mxu0 }
 0x128   :  { %v329_v35 = vadd.f32 %v3386_v49, %v328_v19  ;;  %v413_v31 = vrot.slane %v363_v21, 2 }
 0x129   :  { %v444_v24 = vrot.slane %v3438_v18, 4  ;;  %v2858_v25 = vpop.f32.mrf.mxu0 }
 0x12a   :  { %v364_v27 = vmax.f32 %v329_v35, 0.0  ;;  %v414_v51 = vsel %vm148_vm0, %v411_v9, %v413_v31  ;;  %v926_v25 = vld [vmem:[%s3916_s3 + $0x68] sm:$0xff] }
 0x12b   :  { %v445_v60 = vsel %vm442_vm3, %v443_v22, %v444_v24  ;;  %v333_v29 = vpop.f32.mrf.mxu0  ;;  %v3473_v0 = vmax.f32 %v356_v54, %v414_v51  ;;  %v773_v22 = vld [vmem:[%s3916_s3 + $0x40] sm:$0xff]  ;;  %v1534_v54 = vld [vmem:[%s3916_s3 + $0xe8] sm:$0xff] }
 0x12c   :  { %v3446_v30 = vmax.f32 %v394_v26, %v445_v60  ;;  %v415_v32 = vrot.slane %v364_v27, 2  ;;  %v334_v34 = vadd.f32 %v3386_v49, %v333_v29  ;;  %v925_v26 = vld [vmem:[%s3916_s3 + $0x60] sm:$0xff]  ;;  %v1001_v60 = vld [vmem:[%s3916_s3 + $0x70] sm:$0xff] }
 0x12d   :  { %v2861_v38 = vpop.f32.mrf.mxu0  ;;  %v446_v11 = vrot.slane %v3473_v0, 4  ;;  %v1381_v51 = vld [vmem:[%s3916_s3 + $0xc0] sm:$0xff]  ;;  %v1762_v0 = vld [vmem:[%s3916_s3 + $0x118] sm:$0xff] }
 0x12e   :  { %v416_v39 = vsel %vm148_vm0, %v413_v31, %v415_v32  ;;  %v365_v40 = vmax.f32 %v334_v34, 0.0  ;;  %v475_v44 = vrot.slane %v3446_v30, 2  ;;  %v623_v9 = vrot.slane %v3446_v30, 4  ;;  %v1230_v38 = vld [vmem:[%s3916_s3 + $0xa8] sm:$0xff] }
 0x12f   :  { %v338_v48 = vpop.f32.mrf.mxu0  ;;  %v3464_v58 = vmax.f32 %v357_v46, %v416_v39  ;;  %v699_v19 = vrot.slane %v3446_v30, 6  ;;  %v1229_v39 = vld [vmem:[%s3916_s3 + $0xa0] sm:$0xff] }
 0x130   :  { %v417_v52 = vrot.slane %v365_v40, 2  ;;  %v339_v43 = vadd.f32 %v3386_v49, %v338_v48  ;;  %2870 = vmatmul.mubr.msk.f32.vlgmr.msra.gmra.mxu1 %vm476_vm4, %v475_v44  ;;  %v1306_v44 = vld [vmem:[%s3916_s3 + $0xb8] sm:$0xff]  ;;  %v1382_v48 = vld [vmem:[%s3916_s3 + $0xc8] sm:$0xff] }
 0x131   :  { %2873 = vmatpush3.msra.mxu1 %v471_v45  ;;  %2876 = vmatprep.mubr.msk.f32.mxu1 %vm3136_vm1, %v3135_v1  ;;  %v2864_v59 = vpop.f32.mrf.mxu0  ;;  %v448_v4 = vrot.slane %v3464_v58, 4  ;;  %v1305_v45 = vld [vmem:[%s3916_s3 + $0xb0] sm:$0xff]  ;;  %v1610_v58 = vld [vmem:[%s3916_s3 + $0xf8] sm:$0xff] }
 0x132   :  { %v418_v61 = vsel %vm148_vm0, %v415_v32, %v417_v52  ;;  %v366_v62 = vmax.f32 %v339_v43, 0.0  ;;  %2874 = vmatprep.subr.mxu1 %v3135_v1  ;;  %v1077_v32 = vld [vmem:[%s3916_s3 + $0x80] sm:$0xff]  ;;  %v1457_v43 = vld [vmem:[%s3916_s3 + $0xd0] sm:$0xff] }
 0x133   :  { %v432_v2 = vmax.f32 %v358_v55, %v418_v61  ;;  %2875 = vmatpush3.msra.mxu1 %v470_v47  ;;  %v449_v31 = vsel %vm442_vm3, %v446_v11, %v448_v4  ;;  %v1533_v55 = vld [vmem:[%s3916_s3 + $0xe0] sm:$0xff]  ;;  %v1609_v59 = vld [vmem:[%s3916_s3 + $0xf0] sm:$0xff] }
 0x134   :  { %v419_v49 = vrot.slane %v366_v62, 2  ;;  %2879 = vmatprep.subr.mxu1 %v3135_v1  ;;  %2877 = vmatmul.mubr.msk.f32.vlgmr.msra.gmra.mxu1 %vm476_vm4, %v3446_v30  ;;  %v1078_v30 = vld [vmem:[%s3916_s3 + $0x88] sm:$0xff]  ;;  %v465_v34 = vmax.f32 %v3402_v14, %v449_v31  ;;  %v2487_v31 = vld [vmem:[%s3920_s7 + $0x78] sm:$0xff] }
 0x135   :  { %v450_v6 = vrot.slane %v432_v2, 4  ;;  %2880 = vmatpush3.msra.mxu1 %v622_v63  ;;  %2883 = vmatprep.mubr.msk.f32.mxu1 %vm3136_vm1, %v3135_v1  ;;  %v1686_v62 = vld [vmem:[%s3916_s3 + $0x108] sm:$0xff]  ;;  %v1685_v63 = vld [vmem:[%s3916_s3 + $0x100] sm:$0xff]  ;;  %v1761_v2 = vld [vmem:[%s3916_s3 + $0x110] sm:$0xff] }
 0x136   :  { %v420_v7 = vsel %vm148_vm0, %v417_v52, %v419_v49  ;;  %v434_v8 = vmax.f32 %v360_v56, %v419_v49  ;;  %2881 = vmatprep.subr.mxu1 %v3135_v1  ;;  %v1155_v14 = vrot.slane %v465_v34, 2  ;;  %v1231_v40 = vrot.slane %v465_v34, 4  ;;  %v1458_v52 = vld [vmem:[%s3916_s3 + $0xd8] sm:$0xff] }
 0x137   :  { %v451_v12 = vsel %vm442_vm3, %v448_v4, %v450_v6  ;;  %v433_v13 = vmax.f32 %v359_v3, %v420_v7  ;;  %2882 = vmatpush3.msra.mxu1 %v621_v50  ;;  %v1307_v46 = vrot.slane %v465_v34, 6  ;;  %v1838_v50 = vld [vmem:[%s3916_s3 + $0x128] sm:$0xff]  ;;  %v2393_v3 = vld [vmem:[%s3918_s5 + $0x78] sm:$0xff]  ;;  %v1837_v4 = vld [vmem:[%s3916_s3 + $0x120] sm:$0xff] }
 0x138   :  { %v454_v15 = vrot.slane %v434_v8, 4  ;;  %2886 = vmatprep.subr.mxu1 %v3135_v1  ;;  %2884 = vmatmul.mubr.msk.f32.vlgmr.msra.gmra.mxu1 %vm476_vm4, %v623_v9  ;;  %v3502_v56 = vmax.f32 %v3407_v23, %v451_v12  ;;  %v447_v23 = vsel %vm442_vm3, %v444_v24, %v446_v11  ;;  %v850_v24 = vld [vmem:[%s3916_s3 + $0x58] sm:$0xff]  ;;  %v1913_v8 = vld [vmem:[%s3916_s3 + $0x130] sm:$0xff]  ;;  %v1989_v12 = vld [vmem:[%s3916_s3 + $0x140] sm:$0xff] }
 0x139   :  { %v452_v16 = vrot.slane %v433_v13, 4  ;;  %2887 = vmatpush3.msra.mxu1 %v698_v10  ;;  %2890 = vmatprep.mubr.msk.f32.mxu1 %vm3136_vm1, %v3135_v1  ;;  %v1914_v7 = vld [vmem:[%s3916_s3 + $0x138] sm:$0xff]  ;;  %v1990_v10 = vld [vmem:[%s3916_s3 + $0x148] sm:$0xff]  ;;  %v2392_v11 = vld [vmem:[%s3918_s5 + $0x70] sm:$0xff] }
 0x13a   :  { %v3507_v17 = vmax.f32 %v3416_v41, %v454_v15  ;;  %2888 = vmatprep.subr.mxu1 %v3135_v1  ;;  %v1459_v47 = vrot.slane %v3502_v56, 2  ;;  %v1535_v57 = vrot.slane %v3502_v56, 4  ;;  %v1611_v61 = vrot.slane %v3502_v56, 6  ;;  %3041 = vmatpush3.msra.mxu0 %v2393_v3  ;;  %v2066_v13 = vld [vmem:[%s3916_s3 + $0x158] sm:$0xff] }
 0x13b   :  { %v453_v21 = vsel %vm442_vm3, %v450_v6, %v452_v16  ;;  %v455_v35 = vsel %vm442_vm3, %v452_v16, %v454_v15  ;;  %2889 = vmatpush3.msra.mxu1 %v697_v53  ;;  %3042 = vmatprep.subr.mxu0 %v3135_v1  ;;  %v2065_v15 = vld [vmem:[%s3916_s3 + $0x150] sm:$0xff]  ;;  %v2391_v53 = vld [vmem:[%s3918_s5 + $0x68] sm:$0xff] }
 0x13c   :  { %v3520_v41 = vmax.f32 %v3418_v42, %v455_v35  ;;  %2893 = vmatprep.subr.mxu1 %v3135_v1  ;;  %2891 = vmatmul.mubr.msk.f32.vlgmr.msra.gmra.mxu1 %vm476_vm4, %v699_v19  ;;  %v3528_v18 = vmax.f32 %v3413_v33, %v453_v21  ;;  %v464_v42 = vmax.f32 %v3397_v5, %v447_v23  ;;  %v849_v33 = vld [vmem:[%s3916_s3 + $0x50] sm:$0xff]  ;;  %v2142_v16 = vld [vmem:[%s3916_s3 + $0x168] sm:$0xff]  ;;  %v2141_v19 = vld [vmem:[%s3916_s3 + $0x160] sm:$0xff] }
 0x13d   :  { %2894 = vmatpush3.msra.mxu1 %v774_v20  ;;  %2897 = vmatprep.mubr.msk.f32.mxu1 %vm3136_vm1, %v3135_v1  ;;  %v2218_v23 = vld [vmem:[%s3916_s3 + $0x178] sm:$0xff]  ;;  %v2390_v21 = vld [vmem:[%s3918_s5 + $0x60] sm:$0xff]  ;;  %v2217_v35 = vld [vmem:[%s3916_s3 + $0x170] sm:$0xff] }
 0x13e   :  { %2895 = vmatprep.subr.mxu1 %v3135_v1  ;;  %v851_v5 = vrot.slane %v464_v42, 2  ;;  %v927_v27 = vrot.slane %v464_v42, 4  ;;  %v1003_v29 = vrot.slane %v464_v42, 6  ;;  %v1763_v49 = vrot.slane %v3528_v18, 2  ;;  %3043 = vmatpush3.msra.mxu0 %v2392_v11 }
 0x13f   :  { %2896 = vmatpush3.msra.mxu1 %v773_v22  ;;  %v1839_v6 = vrot.slane %v3528_v18, 4  ;;  %v1915_v9 = vrot.slane %v3528_v18, 6  ;;  %3044 = vmatprep.subr.mxu0 %v3135_v1  ;;  %v2143_v20 = vrot.slane %v3520_v41, 4  ;;  %v2219_v22 = vrot.slane %v3520_v41, 6 }
 0x140   :  { %2900 = vmatprep.subr.mxu1 %v3135_v1  ;;  %2898 = vmatmul.mubr.msk.f32.vlgmr.msra.gmra.mxu1 %vm476_vm4, %v464_v42  ;;  %v2293_v42 = vld [vmem:[%s3916_s3 + $0x180] sm:$0xff] }
 0x141   :  { %2901 = vmatpush3.msra.mxu1 %v850_v24  ;;  %2904 = vmatprep.mubr.msk.f32.mxu1 %vm3136_vm1, %v3135_v1  ;;  %v2388_v24 = vld [vmem:[%s3918_s5 + $0x50] sm:$0xff] }
 0x142   :  { %2902 = vmatprep.subr.mxu1 %v3135_v1  ;;  %3045 = vmatpush3.msra.mxu0 %v2391_v53 }
 0x143   :  { %2903 = vmatpush3.msra.mxu1 %v849_v33  ;;  %3046 = vmatprep.subr.mxu0 %v3135_v1  ;;  %v2387_v33 = vld [vmem:[%s3918_s5 + $0x48] sm:$0xff] }
 0x144   :  { %2907 = vmatprep.subr.mxu1 %v3135_v1  ;;  %2905 = vmatmul.mubr.msk.f32.vlgmr.msra.gmra.mxu1 %vm476_vm4, %v851_v5  ;;  %v2385_v5 = vld [vmem:[%s3918_s5 + $0x38] sm:$0xff] }
 0x145   :  { %2908 = vmatpush3.msra.mxu1 %v926_v25  ;;  %2911 = vmatprep.mubr.msk.f32.mxu1 %vm3136_vm1, %v3135_v1  ;;  %v2384_v25 = vld [vmem:[%s3918_s5 + $0x30] sm:$0xff] }
 0x146   :  { %2909 = vmatprep.subr.mxu1 %v3135_v1  ;;  %3047 = vmatpush3.msra.mxu0 %v2390_v21 }
 0x147   :  { %2910 = vmatpush3.msra.mxu1 %v925_v26  ;;  %3048 = vmatprep.subr.mxu0 %v3135_v1  ;;  %v2383_v26 = vld [vmem:[%s3918_s5 + $0x28] sm:$0xff] }
 0x148   :  { %2914 = vmatprep.subr.mxu1 %v3135_v1  ;;  %2912 = vmatmul.mubr.msk.f32.vlgmr.msra.gmra.mxu1 %vm476_vm4, %v927_v27  ;;  %v2382_v27 = vld [vmem:[%s3918_s5 + $0x20] sm:$0xff] }
 0x149   :  { %2915 = vmatpush3.msra.mxu1 %v1002_v28  ;;  %2918 = vmatprep.mubr.msk.f32.mxu1 %vm3136_vm1, %v3135_v1  ;;  %v2381_v28 = vld [vmem:[%s3918_s5 + $0x18] sm:$0xff] }
 0x14a   :  { %2916 = vmatprep.subr.mxu1 %v3135_v1 }
 0x14b   :  { %2917 = vmatpush3.msra.mxu1 %v1001_v60  ;;  %v2380_v60 = vld [vmem:[%s3918_s5 + $0x10] sm:$0xff] }
 0x14c   :  { %2921 = vmatprep.subr.mxu1 %v3135_v1  ;;  %2919 = vmatmul.mubr.msk.f32.vlgmr.msra.gmra.mxu1 %vm476_vm4, %v1003_v29  ;;  %v2379_v29 = vld [vmem:[%s3918_s5 + $0x8] sm:$0xff] }
 0x14d   :  { %2922 = vmatpush3.msra.mxu1 %v1078_v30  ;;  %2925 = vmatprep.mubr.msk.f32.mxu1 %vm3136_vm1, %v3135_v1  ;;  %v2378_v30 = vld [vmem:[%s3918_s5] sm:$0xff] }
 0x14e   :  { %2923 = vmatprep.subr.mxu1 %v3135_v1 }
 0x14f   :  { %2924 = vmatpush3.msra.mxu1 %v1077_v32  ;;  %v2486_v32 = vld [vmem:[%s3920_s7 + $0x70] sm:$0xff] }
 0x150   :  { %2928 = vmatprep.subr.mxu1 %v3135_v1  ;;  %2926 = vmatmul.mubr.msk.f32.vlgmr.msra.gmra.mxu1 %vm476_vm4, %v465_v34  ;;  %v2485_v34 = vld [vmem:[%s3920_s7 + $0x68] sm:$0xff] }
 0x151   :  { %2929 = vmatpush3.msra.mxu1 %v1154_v36  ;;  %2932 = vmatprep.mubr.msk.f32.mxu1 %vm3136_vm1, %v3135_v1  ;;  %v2484_v36 = vld [vmem:[%s3920_s7 + $0x60] sm:$0xff] }
 0x152   :  { %2930 = vmatprep.subr.mxu1 %v3135_v1 }
 0x153   :  { %2931 = vmatpush3.msra.mxu1 %v1153_v37  ;;  %v2483_v37 = vld [vmem:[%s3920_s7 + $0x58] sm:$0xff] }
 0x154   :  { %2935 = vmatprep.subr.mxu1 %v3135_v1  ;;  %2933 = vmatmul.mubr.msk.f32.vlgmr.msra.gmra.mxu1 %vm476_vm4, %v1155_v14  ;;  %v2482_v14 = vld [vmem:[%s3920_s7 + $0x50] sm:$0xff] }
 0x155   :  { %2936 = vmatpush3.msra.mxu1 %v1230_v38  ;;  %2939 = vmatprep.mubr.msk.f32.mxu1 %vm3136_vm1, %v3135_v1  ;;  %v2481_v38 = vld [vmem:[%s3920_s7 + $0x48] sm:$0xff] }
 0x156   :  { %2937 = vmatprep.subr.mxu1 %v3135_v1 }
 0x157   :  { %2938 = vmatpush3.msra.mxu1 %v1229_v39  ;;  %v2480_v39 = vld [vmem:[%s3920_s7 + $0x40] sm:$0xff] }
 0x158   :  { %2942 = vmatprep.subr.mxu1 %v3135_v1  ;;  %2940 = vmatmul.mubr.msk.f32.vlgmr.msra.gmra.mxu1 %vm476_vm4, %v1231_v40  ;;  %v2479_v40 = vld [vmem:[%s3920_s7 + $0x38] sm:$0xff] }
 0x159   :  { %2943 = vmatpush3.msra.mxu1 %v1306_v44  ;;  %2946 = vmatprep.mubr.msk.f32.mxu1 %vm3136_vm1, %v3135_v1  ;;  %v2478_v44 = vld [vmem:[%s3920_s7 + $0x30] sm:$0xff] }
 0x15a   :  { %2944 = vmatprep.subr.mxu1 %v3135_v1 }
 0x15b   :  { %2945 = vmatpush3.msra.mxu1 %v1305_v45  ;;  %v2477_v45 = vld [vmem:[%s3920_s7 + $0x28] sm:$0xff] }
 0x15c   :  { %2949 = vmatprep.subr.mxu1 %v3135_v1  ;;  %2947 = vmatmul.mubr.msk.f32.vlgmr.msra.gmra.mxu1 %vm476_vm4, %v1307_v46  ;;  %v2476_v46 = vld [vmem:[%s3920_s7 + $0x20] sm:$0xff] }
 0x15d   :  { %2950 = vmatpush3.msra.mxu1 %v1382_v48  ;;  %2953 = vmatprep.mubr.msk.f32.mxu1 %vm3136_vm1, %v3135_v1  ;;  %v2475_v48 = vld [vmem:[%s3920_s7 + $0x18] sm:$0xff] }
 0x15e   :  { %2951 = vmatprep.subr.mxu1 %v3135_v1 }
 0x15f   :  { %2952 = vmatpush3.msra.mxu1 %v1381_v51 }
 0x160   :  { %2956 = vmatprep.subr.mxu1 %v3135_v1  ;;  %2954 = vmatmul.mubr.msk.f32.vlgmr.msra.gmra.mxu1 %vm476_vm4, %v3502_v56  ;;  %v2067_v56 = vrot.slane %v3520_v41, 2 }
 0x161   :  { %2957 = vmatpush3.msra.mxu1 %v1458_v52  ;;  %2960 = vmatprep.mubr.msk.f32.mxu1 %vm3136_vm1, %v3135_v1 }
 0x162   :  { %2958 = vmatprep.subr.mxu1 %v3135_v1 }
 0x163   :  { %2959 = vmatpush3.msra.mxu1 %v1457_v43 }
 0x164   :  { %2963 = vmatprep.subr.mxu1 %v3135_v1  ;;  %2961 = vmatmul.mubr.msk.f32.vlgmr.msra.gmra.mxu1 %vm476_vm4, %v1459_v47 }
 0x165   :  { %2964 = vmatpush3.msra.mxu1 %v1534_v54  ;;  %2967 = vmatprep.mubr.msk.f32.mxu1 %vm3136_vm1, %v3135_v1 }
 0x166   :  { %2965 = vmatprep.subr.mxu1 %v3135_v1 }
 0x167   :  { %2966 = vmatpush3.msra.mxu1 %v1533_v55 }
 0x168   :  { %2970 = vmatprep.subr.mxu1 %v3135_v1  ;;  %2968 = vmatmul.mubr.msk.f32.vlgmr.msra.gmra.mxu1 %vm476_vm4, %v1535_v57 }
 0x169   :  { %2971 = vmatpush3.msra.mxu1 %v1610_v58  ;;  %2974 = vmatprep.mubr.msk.f32.mxu1 %vm3136_vm1, %v3135_v1 }
 0x16a   :  { %2972 = vmatprep.subr.mxu1 %v3135_v1 }
 0x16b   :  { %2973 = vmatpush3.msra.mxu1 %v1609_v59 }
 0x16c   :  { %2977 = vmatprep.subr.mxu1 %v3135_v1  ;;  %2975 = vmatmul.mubr.msk.f32.vlgmr.msra.gmra.mxu1 %vm476_vm4, %v1611_v61 }
 0x16d   :  { %2978 = vmatpush3.msra.mxu1 %v1686_v62  ;;  %2981 = vmatprep.mubr.msk.f32.mxu1 %vm3136_vm1, %v3135_v1 }
 0x16e   :  { %2979 = vmatprep.subr.mxu1 %v3135_v1 }
 0x16f   :  { %2980 = vmatpush3.msra.mxu1 %v1685_v63 }
 0x170   :  { %2984 = vmatprep.subr.mxu1 %v3135_v1  ;;  %2982 = vmatmul.mubr.msk.f32.vlgmr.msra.gmra.mxu1 %vm476_vm4, %v3528_v18  ;;  %v2294_v18 = vld [vmem:[%s3916_s3 + $0x188] sm:$0xff] }
 0x171   :  { %2985 = vmatpush3.msra.mxu1 %v1762_v0  ;;  %2988 = vmatprep.mubr.msk.f32.mxu1 %vm3136_vm1, %v3135_v1 }
 0x172   :  { %2986 = vmatprep.subr.mxu1 %v3135_v1 }
 0x173   :  { %2987 = vmatpush3.msra.mxu1 %v1761_v2 }
 0x174   :  { %2991 = vmatprep.subr.mxu1 %v3135_v1  ;;  %2989 = vmatmul.mubr.msk.f32.vlgmr.msra.gmra.mxu1 %vm476_vm4, %v1763_v49 }
 0x175   :  { %2992 = vmatpush3.msra.mxu1 %v1838_v50  ;;  %2995 = vmatprep.mubr.msk.f32.mxu1 %vm3136_vm1, %v3135_v1 }
 0x176   :  { %2993 = vmatprep.subr.mxu1 %v3135_v1 }
 0x177   :  { %2994 = vmatpush3.msra.mxu1 %v1837_v4 }
 0x178   :  { %2998 = vmatprep.subr.mxu1 %v3135_v1  ;;  %2996 = vmatmul.mubr.msk.f32.vlgmr.msra.gmra.mxu1 %vm476_vm4, %v1839_v6 }
 0x179   :  { %2999 = vmatpush3.msra.mxu1 %v1914_v7  ;;  %3002 = vmatprep.mubr.msk.f32.mxu1 %vm3136_vm1, %v3135_v1 }
 0x17a   :  { %3000 = vmatprep.subr.mxu1 %v3135_v1 }
 0x17b   :  { %3001 = vmatpush3.msra.mxu1 %v1913_v8 }
 0x17c   :  { %3005 = vmatprep.subr.mxu1 %v3135_v1  ;;  %3003 = vmatmul.mubr.msk.f32.vlgmr.msra.gmra.mxu1 %vm476_vm4, %v1915_v9 }
 0x17d   :  { %3006 = vmatpush3.msra.mxu1 %v1990_v10  ;;  %3009 = vmatprep.mubr.msk.f32.mxu1 %vm3136_vm1, %v3135_v1 }
 0x17e   :  { %3007 = vmatprep.subr.mxu1 %v3135_v1 }
 0x17f   :  { %3008 = vmatpush3.msra.mxu1 %v1989_v12 }
 0x180   :  { %3012 = vmatprep.subr.mxu1 %v3135_v1  ;;  %3010 = vmatmul.mubr.msk.f32.vlgmr.msra.gmra.mxu1 %vm476_vm4, %v3520_v41  ;;  %v2389_v41 = vld [vmem:[%s3918_s5 + $0x58] sm:$0xff] }
 0x181   :  { %3013 = vmatpush3.msra.mxu1 %v2066_v13  ;;  %3016 = vmatprep.mubr.msk.f32.mxu1 %vm3136_vm1, %v3135_v1 }
 0x182   :  { %3014 = vmatprep.subr.mxu1 %v3135_v1  ;;  %3049 = vmatpush3.msra.mxu0 %v2389_v41 }
 0x183   :  { %3015 = vmatpush3.msra.mxu1 %v2065_v15  ;;  %3050 = vmatprep.subr.mxu0 %v3135_v1 }
 0x184   :  { %3019 = vmatprep.subr.mxu1 %v3135_v1  ;;  %3017 = vmatmul.mubr.msk.f32.vlgmr.msra.gmra.mxu1 %vm476_vm4, %v2067_v56 }
 0x185   :  { %3020 = vmatpush3.msra.mxu1 %v2142_v16  ;;  %3023 = vmatprep.mubr.msk.f32.mxu1 %vm3136_vm1, %v3135_v1 }
 0x186   :  { %3021 = vmatprep.subr.mxu1 %v3135_v1  ;;  %3051 = vmatpush3.msra.mxu0 %v2388_v24 }
 0x187   :  { %3022 = vmatpush3.msra.mxu1 %v2141_v19  ;;  %3052 = vmatprep.subr.mxu0 %v3135_v1 }
 0x188   :  { %3026 = vmatprep.subr.mxu1 %v3135_v1  ;;  %3024 = vmatmul.mubr.msk.f32.vlgmr.msra.gmra.mxu1 %vm476_vm4, %v2143_v20 }
 0x189   :  { %3027 = vmatpush3.msra.mxu1 %v2218_v23  ;;  %3030 = vmatprep.mubr.msk.f32.mxu1 %vm3136_vm1, %v3135_v1 }
 0x18a   :  { %3028 = vmatprep.subr.mxu1 %v3135_v1  ;;  %3053 = vmatpush3.msra.mxu0 %v2387_v33 }
 0x18b   :  { %3029 = vmatpush3.msra.mxu1 %v2217_v35  ;;  %3054 = vmatprep.subr.mxu0 %v3135_v1 }
 0x18c   :  { %3033 = vmatprep.subr.mxu1 %v3135_v1  ;;  %3031 = vmatmul.mubr.msk.f32.vlgmr.msra.gmra.mxu1 %vm476_vm4, %v2219_v22 }
 0x18d   :  { %3034 = vmatpush3.msra.mxu1 %v2294_v18  ;;  %3037 = vmatprep.mubr.msk.f32.mxu1 %vm3136_vm1, %v3135_v1 }
 0x18e   :  { %3035 = vmatprep.subr.mxu1 %v3135_v1 }
 0x18f   :  { %3036 = vmatpush3.msra.mxu1 %v2293_v42 }
 0x190   :  { %3038 = vmatmul.mubr.msk.f32.vlgmr.msra.gmra.mxu1 %vm476_vm4, %v3507_v17  ;;  %3075 = vmatprep.subr.mxu1 %v3135_v1  ;;  %v2386_v17 = vld [vmem:[%s3918_s5 + $0x40] sm:$0xff] }
 0x191   :  { %3107 = vmatprep.mubr.msk.f32.mxu1 %vm3136_vm1, %v3135_v1  ;;  %3055 = vmatpush3.msra.mxu0 %v2386_v17 }
 0x192   :  { %3056 = vmatprep.subr.mxu0 %v3135_v1  ;;  %3076 = vmatpush3.msra.mxu1 %v2487_v31 }
 0x193   :  { %3057 = vmatpush3.msra.mxu0 %v2385_v5  ;;  %3077 = vmatprep.subr.mxu1 %v3135_v1 }
 0x194   :  { %3058 = vmatprep.subr.mxu0 %v3135_v1  ;;  %3078 = vmatpush3.msra.mxu1 %v2486_v32 }
 0x195   :  { %3059 = vmatpush3.msra.mxu0 %v2384_v25  ;;  %3079 = vmatprep.subr.mxu1 %v3135_v1 }
 0x196   :  { %3060 = vmatprep.subr.mxu0 %v3135_v1  ;;  %3080 = vmatpush3.msra.mxu1 %v2485_v34 }
 0x197   :  { %3061 = vmatpush3.msra.mxu0 %v2383_v26  ;;  %3081 = vmatprep.subr.mxu1 %v3135_v1 }
 0x198   :  { %3062 = vmatprep.subr.mxu0 %v3135_v1  ;;  %3082 = vmatpush3.msra.mxu1 %v2484_v36 }
 0x199   :  { %3063 = vmatpush3.msra.mxu0 %v2382_v27  ;;  %3083 = vmatprep.subr.mxu1 %v3135_v1 }
 0x19a   :  { %3064 = vmatprep.subr.mxu0 %v3135_v1  ;;  %3084 = vmatpush3.msra.mxu1 %v2483_v37 }
 0x19b   :  { %3065 = vmatpush3.msra.mxu0 %v2381_v28  ;;  %3085 = vmatprep.subr.mxu1 %v3135_v1 }
 0x19c   :  { %3066 = vmatprep.subr.mxu0 %v3135_v1  ;;  %3086 = vmatpush3.msra.mxu1 %v2482_v14 }
 0x19d   :  { %3067 = vmatpush3.msra.mxu0 %v2380_v60  ;;  %3087 = vmatprep.subr.mxu1 %v3135_v1 }
 0x19e   :  { %3068 = vmatprep.subr.mxu0 %v3135_v1  ;;  %3088 = vmatpush3.msra.mxu1 %v2481_v38 }
 0x19f   :  { %3069 = vmatpush3.msra.mxu0 %v2379_v29  ;;  %3089 = vmatprep.subr.mxu1 %v3135_v1 }
 0x1a0   :  { %3070 = vmatprep.subr.mxu0 %v3135_v1  ;;  %3090 = vmatpush3.msra.mxu1 %v2480_v39 }
 0x1a1   :  { %3071 = vmatpush3.msra.mxu0 %v2378_v30  ;;  %3091 = vmatprep.subr.mxu1 %v3135_v1 }
 0x1a2   :  { %3092 = vmatpush3.msra.mxu1 %v2479_v40 }
 0x1a3   :  { %3093 = vmatprep.subr.mxu1 %v3135_v1 }
 0x1a4   :  { %3094 = vmatpush3.msra.mxu1 %v2478_v44 }
 0x1a5   :  { %3095 = vmatprep.subr.mxu1 %v3135_v1 }
 0x1a6   :  { %3096 = vmatpush3.msra.mxu1 %v2477_v45 }
 0x1a7   :  { %3097 = vmatprep.subr.mxu1 %v3135_v1 }
 0x1a8   :  { %3098 = vmatpush3.msra.mxu1 %v2476_v46 }
 0x1a9   :  { %3099 = vmatprep.subr.mxu1 %v3135_v1 }
 0x1aa   :  { %3100 = vmatpush3.msra.mxu1 %v2475_v48 }
 0x1ab   :  { %3101 = vmatprep.subr.mxu1 %v3135_v1 }
 0x1f0   :  { %v545_v51 = vpop.f32.mrf.mxu1 }
 0x1f2   :  { %v2871_v52 = vpop.f32.mrf.mxu1 }
 0x1f4   :  { %v617_v43 = vpop.f32.mrf.mxu1 }
 0x1f5   :  { %v618_v15 = vadd.f32 %v617_v43, %v545_v51 }
 0x1f6   :  { %v2878_v47 = vpop.f32.mrf.mxu1 }
 0x1f8   :  { %v692_v54 = vpop.f32.mrf.mxu1 }
 0x1f9   :  { %v696_v56 = vadd.f32 %v692_v54, %v618_v15 }
 0x1fa   :  { %v2885_v55 = vpop.f32.mrf.mxu1 }
 0x1fc   :  { %v768_v57 = vpop.f32.mrf.mxu1 }
 0x1fd   :  { %v772_v19 = vadd.f32 %v768_v57, %v696_v56 }
 0x1fe   :  { %v2892_v58 = vpop.f32.mrf.mxu1 }
 0x200   :  { %v844_v59 = vpop.f32.mrf.mxu1 }
 0x201   :  { %v848_v23 = vadd.f32 %v844_v59, %v772_v19 }
 0x202   :  { %v2899_v61 = vpop.f32.mrf.mxu1 }
 0x203   :  { %v2632_v61 = vld [vmem:[%s3917_s4] ss:$0 sm:$0xff] }
 0x204   :  { %v920_v62 = vpop.f32.mrf.mxu1 }
 0x205   :  { %v924_v35 = vadd.f32 %v920_v62, %v848_v23 }
 0x206   :  { %v2906_v63 = vpop.f32.mrf.mxu1 }
 0x208   :  { %v996_v0 = vpop.f32.mrf.mxu1 }
 0x209   :  { %v1000_v18 = vadd.f32 %v996_v0, %v924_v35 }
 0x20a   :  { %v2913_v2 = vpop.f32.mrf.mxu1 }
 0x20c   :  { %v1072_v49 = vpop.f32.mrf.mxu1 }
 0x20d   :  { %v1076_v41 = vadd.f32 %v1072_v49, %v1000_v18  ;;  %v2474_v49 = vld [vmem:[%s3920_s7 + $0x10] sm:$0xff] }
 0x20e   :  { %v2920_v50 = vpop.f32.mrf.mxu1  ;;  %3102 = vmatpush3.msra.mxu1 %v2474_v49 }
 0x20f   :  { %3103 = vmatprep.subr.mxu1 %v3135_v1  ;;  %v2473_v50 = vld [vmem:[%s3920_s7 + $0x8] sm:$0xff] }
 0x210   :  { %v1148_v3 = vpop.f32.mrf.mxu1  ;;  %3104 = vmatpush3.msra.mxu1 %v2473_v50 }
 0x211   :  { %v1152_v33 = vadd.f32 %v1148_v3, %v1076_v41  ;;  %v2472_v3 = vld [vmem:[%s3920_s7] sm:$0xff]  ;;  %3105 = vmatprep.subr.mxu1 %v3135_v1  ;;  %s3113_s7 = scalar_lea.vmem %s2573_s27, 32 }
 0x212   :  { %v2927_v4 = vpop.f32.mrf.mxu1  ;;  %3106 = vmatpush3.msra.mxu1 %v2472_v3  ;;  %p3114_p0 = scmp.ne.s32.totalorder %s2573_s27, %s3113_s7  ;;  %p3119_p2 = scmp.lt.s32.totalorder %s3113_s7, %s3113_s7 }
 0x213   :  { %v2633_v4 = vld [vmem:[%s3919_s6] ss:$0 sm:$0xff] }
 0x214   :  { %v1224_v6 = vpop.f32.mrf.mxu1  ;;  %p3120_p3 = por %p3119_p2, %p3118_p1 }
 0x215   :  { %v1228_v5 = vadd.f32 %v1224_v6, %v1152_v33 }
 0x216   :  { %v2934_v7 = vpop.f32.mrf.mxu1  ;;  %p3121_p4 = pnand %p3120_p3, %p3114_p0 }
 0x218   :  { %v1300_v8 = vpop.f32.mrf.mxu1 }
 0x219   :  { %v1304_v26 = vadd.f32 %v1300_v8, %v1228_v5 }
 0x21a   :  { %v2941_v9 = vpop.f32.mrf.mxu1 }
 0x21c   :  { %v1376_v10 = vpop.f32.mrf.mxu1 }
 0x21d   :  { %v1380_v28 = vadd.f32 %v1376_v10, %v1304_v26  ;;  %v2634_v10 = vld [vmem:[%s3921_s8] ss:$0 sm:$0xff] }
 0x21e   :  { %v2948_v11 = vpop.f32.mrf.mxu1 }
 0x220   :  { %v1452_v12 = vpop.f32.mrf.mxu1 }
 0x221   :  { %v1456_v29 = vadd.f32 %v1452_v12, %v1380_v28 }
 0x222   :  { %v2955_v13 = vpop.f32.mrf.mxu1 }
 0x224   :  { %v1528_v53 = vpop.f32.mrf.mxu1 }
 0x225   :  { %v1532_v31 = vadd.f32 %v1528_v53, %v1456_v29 }
 0x226   :  { %v2962_v16 = vpop.f32.mrf.mxu1 }
 0x228   :  { %v1604_v20 = vpop.f32.mrf.mxu1 }
 0x229   :  { %v1608_v34 = vadd.f32 %v1604_v20, %v1532_v31 }
 0x22a   :  { %v2969_v21 = vpop.f32.mrf.mxu1 }
 0x22c   :  { %v1680_v22 = vpop.f32.mrf.mxu1 }
 0x22d   :  { %v1684_v37 = vadd.f32 %v1680_v22, %v1608_v34 }
 0x22e   :  { %v2976_v42 = vpop.f32.mrf.mxu1 }
 0x230   :  { %v1756_v24 = vpop.f32.mrf.mxu1 }
 0x231   :  { %v1760_v38 = vadd.f32 %v1756_v24, %v1684_v37 }
 0x232   :  { %v2983_v17 = vpop.f32.mrf.mxu1 }
 0x234   :  { %v1832_v25 = vpop.f32.mrf.mxu1 }
 0x235   :  { %v1836_v40 = vadd.f32 %v1832_v25, %v1760_v38 }
 0x236   :  { %v2990_v27 = vpop.f32.mrf.mxu1 }
 0x238   :  { %v1908_v60 = vpop.f32.mrf.mxu1 }
 0x239   :  { %v1912_v45 = vadd.f32 %v1908_v60, %v1836_v40 }
 0x23a   :  { %v2997_v30 = vpop.f32.mrf.mxu1 }
 0x23c   :  { %v1984_v32 = vpop.f32.mrf.mxu1 }
 0x23d   :  { %v1988_v48 = vadd.f32 %v1984_v32, %v1912_v45 }
 0x23e   :  { %v3004_v36 = vpop.f32.mrf.mxu1 }
 0x240   :  { %v2060_v14 = vpop.f32.mrf.mxu1 }
 0x241   :  { %v2064_v52 = vadd.f32 %v2060_v14, %v1988_v48 }
 0x242   :  { %v3011_v39 = vpop.f32.mrf.mxu1 }
 0x244   :  { %v2136_v44 = vpop.f32.mrf.mxu1 }
 0x245   :  { %v2140_v47 = vadd.f32 %v2136_v44, %v2064_v52 }
 0x246   :  { %v3018_v46 = vpop.f32.mrf.mxu1 }
 0x248   :  { %v2212_v51 = vpop.f32.mrf.mxu1 }
 0x249   :  { %v2216_v55 = vadd.f32 %v2212_v51, %v2140_v47 }
 0x24a   :  { %v3025_v43 = vpop.f32.mrf.mxu1 }
 0x24c   :  { %v2288_v54 = vpop.f32.mrf.mxu1 }
 0x24d   :  { %v2292_v58 = vadd.f32 %v2288_v54, %v2216_v55 }
 0x24e   :  { %v3032_v57 = vpop.f32.mrf.mxu1 }
 0x250   :  { %v2364_v59 = vpop.f32.mrf.mxu1 }
 0x251   :  { %v2368_v62 = vadd.f32 %v2364_v59, %v2292_v58 }
 0x252   :  { %v3039_v63 = vpop.f32.mrf.mxu1 }
 0x253   :  { %v2376_v0 = vadd.f32 %v2632_v61, %v2368_v62 }
 0x255   :  { %v2377_v2 = vmax.f32 %v2376_v0, 0.0 }
 0x257   :  { %3073 = vmatmul.mubr.f32.vlgmr.msra.gmra.mxu0 %v2377_v2 }
 0x317   :  { %v2467_v6 = vpop.f32.mrf.mxu0 }
 0x318   :  { %v2468_v7 = vadd.f32 %v2633_v4, %v2467_v6 }
 0x319   :  { %v3074_v8 = vpop.f32.mrf.mxu0 }
 0x31a   :  { %v2471_v9 = vmax.f32 %v2468_v7, 0.0 }
 0x31c   :  { %3108 = vmatmul.mubr.f32.vlgmr.msra.gmra.mxu1 %v2471_v9 }
 0x3dc   :  { %v2561_v11 = vpop.f32.mrf.mxu1 }
 0x3dd   :  { %v2562_v12 = vadd.f32 %v2634_v10, %v2561_v11 }
 0x3de   :  { %v3109_v1 = vpop.f32.mrf.mxu1 }
 0x3df   :  { %2565 = vst [vmem:[#allocation2] sm:$0x3] %v2562_v12 }
 0x3e0   :  { %3124 = shalt.err (!%p3121_p4)
}
 0x3e1   :  { %2575 = dma.vmem_to_hbm [thread:$0]  %s2573_s27, 32, %s3922_s9, [#allocation3]  }
 0x3e2   :  { %3133 = dma.done.wait [#allocation3], 32  }
 0x3e3   :  { %3134 = vsyncadd [#allocation3], 4294967264 }
 0x3e4   :  { %2579 = vsyncpa [#allocation3], 1 }

</bundles_post_ra>
